<compile_context>
chip_gen: v7x
topology: tpu7x:2x2x1
jax: 0.10.0
libtpu: 0.0.40
codegen_flags: <defaults>
</compile_context>

<pallas_src>
import functools
import numpy as np
import jax
import jax.numpy as jnp
from jax import lax
from jax.experimental import pallas as pl
from jax.experimental.pallas import tpu as pltpu


def _round_up(v, m):
    return (v + m - 1) // m * m


def _repeat_conv_kernel(x_ref, w_ref, b_ref, m_ref, a_ref, o_ref, buf0, buf1, *,
                        n_conv, K, P, Cp, D, Wp, G, S, Tcomp):
    # x_ref : (Dp*Cp, Mbuf) bf16   padded input sample; row = dp*Cp + ci,
    #                              lane = G + hp*Wp + wp (halo/guard lanes are 0)
    # w_ref : (n_conv, K*K, Cp, K*Cp) bf16  weights; column = kd*Cp + ci
    # b_ref : (n_conv, Cp, 1) f32  biases
    # m_ref : (Cp, Tcomp)    f32   1.0 at interior plane positions, 0.0 at halo
    # a_ref : (n_conv,)      f32   PReLU slopes (SMEM scalars)
    # o_ref : (D*Cp, Tcomp)  bf16  last-layer output; row = d*Cp + co, lane = p
    # buf0/buf1 : (Dp*Cp, Mbuf) bf16  ping-pong activation buffers (canonical layout)
    valid = m_ref[...] > 0.5                       # (Cp, Tcomp) bool, loop-invariant

    # Ping-pong buffers that will be *read* must hold zeros in the depth halo / guards.
    if n_conv > 1:
        buf0[...] = jnp.zeros_like(buf0)
    if n_conv > 2:
        buf1[...] = jnp.zeros_like(buf1)

    bufs = [buf0, buf1]
    for l in range(n_conv):                        # static layer loop (unrolled)
        src = x_ref if l == 0 else bufs[(l - 1) % 2]
        last = (l == n_conv - 1)
        dst = o_ref if last else bufs[l % 2]
        alpha = a_ref[l]

        def depth_body(d, carry, src=src, dst=dst, l=l, last=last, alpha=alpha):
            row0 = pl.multiple_of(d * Cp, Cp)      # start of the K-deep input window
            acc = jnp.zeros((Cp, Tcomp), jnp.float32)
            for t in range(K * K):                 # 25 in-plane taps, unrolled
                kh, kw = divmod(t, K)
                off = G - S + kh * Wp + kw         # static lane shift of this tap
                x_tap = src[pl.ds(row0, K * Cp), pl.ds(off, Tcomp)]     # (K*Cp, Tcomp)
                acc = acc + jnp.dot(w_ref[l, t], x_tap,
                                    preferred_element_type=jnp.float32)
            y = acc + b_ref[l]                     # (Cp, Tcomp) + (Cp, 1)
            y = jnp.where(y > 0.0, y, alpha * y)   # PReLU (f32 epilogue)
            y = jnp.where(valid, y, 0.0)           # keep the plane halo exactly zero
            if last:
                o_row = pl.multiple_of(d * Cp, Cp)
                dst[pl.ds(o_row, Cp), :] = y.astype(dst.dtype)
            else:
                d_row = pl.multiple_of((d + P) * Cp, Cp)
                dst[pl.ds(d_row, Cp), pl.ds(G, Tcomp)] = y.astype(dst.dtype)
            return carry

        lax.fori_loop(0, D, depth_body, None)


def repeat_conv_pallas(x, params):
    """RepeatConv forward.  x: (N, C, D, H, W); params: list of (w, b, alpha)."""
    N, C, D, H, W = x.shape
    n_conv = len(params)
    K = params[0][0].shape[-1]
    P = K // 2
    Dp, Hp, Wp = D + 2 * P, H + 2 * P, W + 2 * P
    HWp = Hp * Wp
    Cp = _round_up(C, 16)                       # bf16 sublane-packing multiple
    S = P * Wp + P                              # max in-plane flat tap offset
    G = max(128, _round_up(S, 128))             # left guard -> 128-aligned writes
    Tcomp = _round_up(HWp, 128)                 # lane-dense compute/output width
    Mbuf = _round_up(G + Tcomp + S, 128)        # buffer lanes incl. right guard

    # ---- one-time host layout glue (O(|x|), no im2col) ----
    # canonical padded activation layout: row = dp*Cp + ci, lane = G + hp*Wp + wp
    xp = jnp.pad(x, ((0, 0), (0, Cp - C), (P, P), (P, P), (P, P)))
    xp = jnp.transpose(xp, (0, 2, 1, 3, 4)).reshape(N, Dp * Cp, HWp)
    xp = jnp.pad(xp, ((0, 0), (0, 0), (G, Mbuf - G - HWp))).astype(jnp.bfloat16)

    # weights: (Co,Ci,kd,kh,kw) -> [kh*K+kw, Co, kd*Cp+Ci], channel-padded, bf16
    w_list, b_list, a_list = [], [], []
    for w, b, alpha in params:
        wl = jnp.pad(w, ((0, Cp - C), (0, Cp - C), (0, 0), (0, 0), (0, 0)))
        wl = jnp.transpose(wl, (3, 4, 0, 2, 1)).reshape(K * K, Cp, K * Cp)
        w_list.append(wl.astype(jnp.bfloat16))
        b_list.append(jnp.pad(b, (0, Cp - C)).reshape(Cp, 1).astype(jnp.float32))
        a_list.append(jnp.reshape(alpha, ()).astype(jnp.float32))
    w_all = jnp.stack(w_list)                   # (n_conv, K*K, Cp, K*Cp)
    b_all = jnp.stack(b_list)                   # (n_conv, Cp, 1)
    a_all = jnp.stack(a_list)                   # (n_conv,)

    # validity mask of the Tcomp output lanes (interior of the padded plane)
    p_idx = np.arange(Tcomp)
    hp_i, wp_i = p_idx // Wp, p_idx % Wp
    valid_np = ((p_idx < HWp) & (hp_i >= P) & (hp_i < H + P)
                & (wp_i >= P) & (wp_i < W + P)).astype(np.float32)
    m_all = jnp.asarray(np.broadcast_to(valid_np, (Cp, Tcomp)))

    kernel = functools.partial(
        _repeat_conv_kernel, n_conv=n_conv, K=K, P=P, Cp=Cp, D=D,
        Wp=Wp, G=G, S=S, Tcomp=Tcomp)

    # useful (unpadded) work only
    flops = 2 * N * n_conv * C * C * K ** 3 * D * H * W
    bytes_accessed = (N * C * D * H * W * (4 + 2)
                      + n_conv * (C * C * K ** 3 * 2 + C * 4))

    out = pl.pallas_call(
        kernel,
        out_shape=jax.ShapeDtypeStruct((N, D * Cp, Tcomp), jnp.bfloat16),
        grid=(N,),
        in_specs=[
            # one whole padded sample per grid step
            pl.BlockSpec((None, Dp * Cp, Mbuf), lambda n: (n, 0, 0)),
            # all layers' weights, resident
            pl.BlockSpec((n_conv, K * K, Cp, K * Cp), lambda n: (0, 0, 0, 0)),
            # biases, resident
            pl.BlockSpec((n_conv, Cp, 1), lambda n: (0, 0, 0)),
            # plane-interior mask, resident
            pl.BlockSpec((Cp, Tcomp), lambda n: (0, 0)),
            # PReLU slopes as SMEM scalars
            pl.BlockSpec(memory_space=pltpu.MemorySpace.SMEM),
        ],
        out_specs=pl.BlockSpec((None, D * Cp, Tcomp), lambda n: (n, 0, 0)),
        scratch_shapes=[pltpu.VMEM((Dp * Cp, Mbuf), jnp.bfloat16),
                        pltpu.VMEM((Dp * Cp, Mbuf), jnp.bfloat16)],
        compiler_params=pltpu.CompilerParams(
            dimension_semantics=("parallel",)),
        cost_estimate=pl.CostEstimate(
            flops=flops, transcendentals=0, bytes_accessed=bytes_accessed),
    )(xp, w_all, b_all, m_all, a_all)

    # crop once: lane p = hp*Wp + wp, keep interior (h+P, w+P) and original channels
    out = out[:, :, :HWp].reshape(N, D, Cp, Hp, Wp)[:, :, :C, P:P + H, P:P + W]
    return jnp.transpose(out, (0, 2, 1, 3, 4)).astype(x.dtype)


def repeat_conv_ref(x, params):
    """Pure-JAX reference (lax conv) for validation."""
    for w, b, alpha in params:
        y = lax.conv_general_dilated(
            x, w, window_strides=(1, 1, 1), padding=[(2, 2)] * 3,
            dimension_numbers=("NCDHW", "OIDHW", "NCDHW"))
        y = y + b.reshape(1, -1, 1, 1, 1)
        x = jnp.where(y > 0, y, alpha * y)
    return x


if __name__ == "__main__":
    key = jax.random.PRNGKey(0)
    N, C, D, H, W = 2, 4, 8, 8, 8     # small NCDHW volume
    n_conv = 2
    K = 5

    key, kx = jax.random.split(key)
    x = jax.random.normal(kx, (N, C, D, H, W), jnp.float32)

    # Deterministic parameter init (PyTorch-default-like uniform bounds; PReLU a=0.25)
    params = []
    bound = 1.0 / float(np.sqrt(C * K ** 3))
    for _ in range(n_conv):
        key, kw_, kb_ = jax.random.split(key, 3)
        w = jax.random.uniform(kw_, (C, C, K, K, K), jnp.float32, -bound, bound)
        b = jax.random.uniform(kb_, (C,), jnp.float32, -bound, bound)
        params.append((w, b, jnp.float32(0.25)))

    out = repeat_conv_pallas(x, params)
    out = jax.block_until_ready(out)

    ref = repeat_conv_ref(x, params)
    assert out.shape == ref.shape == (N, C, D, H, W)
    # bf16 MXU operands / bf16 inter-layer activations with f32 accumulation.
    np.testing.assert_allclose(np.asarray(out), np.asarray(ref), atol=2e-2, rtol=2e-2)
    print("KERNEL_OK")
</pallas_src>

<mosaic_0001>
module attributes {stable_mosaic.version = 11 : i64} {
  func.func @_repeat_conv_kernel(%arg0: i32, %arg1: memref<1x192x512xbf16, #tpu.memory_space<vmem>>, %arg2: memref<2x25x16x80xbf16, #tpu.memory_space<vmem>>, %arg3: memref<2x16x1xf32, #tpu.memory_space<vmem>>, %arg4: memref<16x256xf32, #tpu.memory_space<vmem>>, %arg5: memref<2xf32, #tpu.memory_space<smem>>, %arg6: memref<1x128x256xbf16, #tpu.memory_space<vmem>>, %arg7: memref<192x512xbf16, #tpu.memory_space<vmem>>, %arg8: memref<192x512xbf16, #tpu.memory_space<vmem>>) attributes {dimension_semantics = [#tpu.dimension_semantics<parallel>], iteration_bounds = array<i64: 2>, scalar_prefetch = 0 : i64, scratch_operands = 2 : i64, tpu.core_type = #tpu.core_type<tc>, window_params = [{transform_indices = @transform_0, window_bounds = array<i64: 1, 192, 512>}, {pipeline_mode = #tpu.pipeline_mode<synchronous>, transform_indices = @transform_1, window_bounds = array<i64: 2, 25, 16, 80>}, {pipeline_mode = #tpu.pipeline_mode<synchronous>, transform_indices = @transform_2, window_bounds = array<i64: 2, 16, 1>}, {pipeline_mode = #tpu.pipeline_mode<synchronous>, transform_indices = @transform_3, window_bounds = array<i64: 16, 256>}, {transform_indices = @transform_4, window_bounds = array<i64: 2>}, {transform_indices = @transform_5, window_bounds = array<i64: 1, 128, 256>}]} {
    %c0 = arith.constant 0 : index
    %c0_0 = arith.constant 0 : index
    %0 = vector.load %arg4[%c0, %c0_0] : memref<16x256xf32, #tpu.memory_space<vmem>>, vector<16x256xf32>
    %cst = arith.constant 5.000000e-01 : f32
    %1 = vector.broadcast %cst : f32 to vector<16x256xf32>
    %2 = arith.cmpf ogt, %0, %1 : vector<16x256xf32>
    %cst_1 = arith.constant 0.000000e+00 : bf16
    %3 = vector.broadcast %cst_1 : bf16 to vector<192x512xbf16>
    %c0_2 = arith.constant 0 : index
    %c0_3 = arith.constant 0 : index
    %4 = vector.load %arg7[%c0_2, %c0_3] : memref<192x512xbf16, #tpu.memory_space<vmem>>, vector<192x512xbf16>
    tpu.vector_store %arg7[%c0_2, %c0_3], %3 {strides = array<i32>} : memref<192x512xbf16, #tpu.memory_space<vmem>>, vector<192x512xbf16>,
    %c0_4 = arith.constant 0 : index
    %5 = memref.load %arg5[%c0_4] : memref<2xf32, #tpu.memory_space<smem>>
    %c0_i32 = arith.constant 0 : i32
    %c8_i32 = arith.constant 8 : i32
    %6 = arith.addi %c0_i32, %c8_i32 : i32
    %c1_i32 = arith.constant 1 : i32
    scf.for %arg9 = %c0_i32 to %6 step %c1_i32  : i32 {
      %c16_i32 = arith.constant 16 : i32
      %9 = arith.muli %arg9, %c16_i32 : i32
      %10 = tpu.assume_multiple %9, 16 : i32
      %cst_10 = arith.constant 0.000000e+00 : f32
      %11 = vector.broadcast %cst_10 : f32 to vector<16x256xf32>
      %c0_11 = arith.constant 0 : index
      %12 = arith.index_cast %10 : i32 to index
      %c102 = arith.constant 102 : index
      %13 = vector.load %arg1[%c0_11, %12, %c102] : memref<1x192x512xbf16, #tpu.memory_space<vmem>>, vector<1x80x256xbf16>
      %14 = vector.shape_cast %13 : vector<1x80x256xbf16> to vector<80x256xbf16>
      %c0_12 = arith.constant 0 : index
      %c0_13 = arith.constant 0 : index
      %c0_14 = arith.constant 0 : index
      %c0_15 = arith.constant 0 : index
      %15 = vector.load %arg2[%c0_12, %c0_13, %c0_14, %c0_15] : memref<2x25x16x80xbf16, #tpu.memory_space<vmem>>, vector<1x1x16x80xbf16>
      %16 = vector.shape_cast %15 : vector<1x1x16x80xbf16> to vector<16x80xbf16>
      %cst_16 = arith.constant dense<0.000000e+00> : vector<16x256xf32>
      %17 = tpu.matmul %16, %14, %cst_16 {dimension_numbers = #tpu.dot_dimension_numbers<[1], [0], [0], [1], [0, 0, 1, 1], [], []>} : vector<16x80xbf16>, vector<80x256xbf16>, vector<16x256xf32> -> vector<16x256xf32>
      %18 = arith.addf %11, %17 : vector<16x256xf32>
      %c0_17 = arith.constant 0 : index
      %19 = arith.index_cast %10 : i32 to index
      %c103 = arith.constant 103 : index
      %20 = vector.load %arg1[%c0_17, %19, %c103] : memref<1x192x512xbf16, #tpu.memory_space<vmem>>, vector<1x80x256xbf16>
      %21 = vector.shape_cast %20 : vector<1x80x256xbf16> to vector<80x256xbf16>
      %c0_18 = arith.constant 0 : index
      %c1_19 = arith.constant 1 : index
      %c0_20 = arith.constant 0 : index
      %c0_21 = arith.constant 0 : index
      %22 = vector.load %arg2[%c0_18, %c1_19, %c0_20, %c0_21] : memref<2x25x16x80xbf16, #tpu.memory_space<vmem>>, vector<1x1x16x80xbf16>
      %23 = vector.shape_cast %22 : vector<1x1x16x80xbf16> to vector<16x80xbf16>
      %cst_22 = arith.constant dense<0.000000e+00> : vector<16x256xf32>
      %24 = tpu.matmul %23, %21, %cst_22 {dimension_numbers = #tpu.dot_dimension_numbers<[1], [0], [0], [1], [0, 0, 1, 1], [], []>} : vector<16x80xbf16>, vector<80x256xbf16>, vector<16x256xf32> -> vector<16x256xf32>
      %25 = arith.addf %18, %24 : vector<16x256xf32>
      %c0_23 = arith.constant 0 : index
      %26 = arith.index_cast %10 : i32 to index
      %c104 = arith.constant 104 : index
      %27 = vector.load %arg1[%c0_23, %26, %c104] : memref<1x192x512xbf16, #tpu.memory_space<vmem>>, vector<1x80x256xbf16>
      %28 = vector.shape_cast %27 : vector<1x80x256xbf16> to vector<80x256xbf16>
      %c0_24 = arith.constant 0 : index
      %c2 = arith.constant 2 : index
      %c0_25 = arith.constant 0 : index
      %c0_26 = arith.constant 0 : index
      %29 = vector.load %arg2[%c0_24, %c2, %c0_25, %c0_26] : memref<2x25x16x80xbf16, #tpu.memory_space<vmem>>, vector<1x1x16x80xbf16>
      %30 = vector.shape_cast %29 : vector<1x1x16x80xbf16> to vector<16x80xbf16>
      %cst_27 = arith.constant dense<0.000000e+00> : vector<16x256xf32>
      %31 = tpu.matmul %30, %28, %cst_27 {dimension_numbers = #tpu.dot_dimension_numbers<[1], [0], [0], [1], [0, 0, 1, 1], [], []>} : vector<16x80xbf16>, vector<80x256xbf16>, vector<16x256xf32> -> vector<16x256xf32>
      %32 = arith.addf %25, %31 : vector<16x256xf32>
      %c0_28 = arith.constant 0 : index
      %33 = arith.index_cast %10 : i32 to index
      %c105 = arith.constant 105 : index
      %34 = vector.load %arg1[%c0_28, %33, %c105] : memref<1x192x512xbf16, #tpu.memory_space<vmem>>, vector<1x80x256xbf16>
      %35 = vector.shape_cast %34 : vector<1x80x256xbf16> to vector<80x256xbf16>
      %c0_29 = arith.constant 0 : index
      %c3 = arith.constant 3 : index
      %c0_30 = arith.constant 0 : index
      %c0_31 = arith.constant 0 : index
      %36 = vector.load %arg2[%c0_29, %c3, %c0_30, %c0_31] : memref<2x25x16x80xbf16, #tpu.memory_space<vmem>>, vector<1x1x16x80xbf16>
      %37 = vector.shape_cast %36 : vector<1x1x16x80xbf16> to vector<16x80xbf16>
      %cst_32 = arith.constant dense<0.000000e+00> : vector<16x256xf32>
      %38 = tpu.matmul %37, %35, %cst_32 {dimension_numbers = #tpu.dot_dimension_numbers<[1], [0], [0], [1], [0, 0, 1, 1], [], []>} : vector<16x80xbf16>, vector<80x256xbf16>, vector<16x256xf32> -> vector<16x256xf32>
      %39 = arith.addf %32, %38 : vector<16x256xf32>
      %c0_33 = arith.constant 0 : index
      %40 = arith.index_cast %10 : i32 to index
      %c106 = arith.constant 106 : index
      %41 = vector.load %arg1[%c0_33, %40, %c106] : memref<1x192x512xbf16, #tpu.memory_space<vmem>>, vector<1x80x256xbf16>
      %42 = vector.shape_cast %41 : vector<1x80x256xbf16> to vector<80x256xbf16>
      %c0_34 = arith.constant 0 : index
      %c4 = arith.constant 4 : index
      %c0_35 = arith.constant 0 : index
      %c0_36 = arith.constant 0 : index
      %43 = vector.load %arg2[%c0_34, %c4, %c0_35, %c0_36] : memref<2x25x16x80xbf16, #tpu.memory_space<vmem>>, vector<1x1x16x80xbf16>
      %44 = vector.shape_cast %43 : vector<1x1x16x80xbf16> to vector<16x80xbf16>
      %cst_37 = arith.constant dense<0.000000e+00> : vector<16x256xf32>
      %45 = tpu.matmul %44, %42, %cst_37 {dimension_numbers = #tpu.dot_dimension_numbers<[1], [0], [0], [1], [0, 0, 1, 1], [], []>} : vector<16x80xbf16>, vector<80x256xbf16>, vector<16x256xf32> -> vector<16x256xf32>
      %46 = arith.addf %39, %45 : vector<16x256xf32>
      %c0_38 = arith.constant 0 : index
      %47 = arith.index_cast %10 : i32 to index
      %c114 = arith.constant 114 : index
      %48 = vector.load %arg1[%c0_38, %47, %c114] : memref<1x192x512xbf16, #tpu.memory_space<vmem>>, vector<1x80x256xbf16>
      %49 = vector.shape_cast %48 : vector<1x80x256xbf16> to vector<80x256xbf16>
      %c0_39 = arith.constant 0 : index
      %c5 = arith.constant 5 : index
      %c0_40 = arith.constant 0 : index
      %c0_41 = arith.constant 0 : index
      %50 = vector.load %arg2[%c0_39, %c5, %c0_40, %c0_41] : memref<2x25x16x80xbf16, #tpu.memory_space<vmem>>, vector<1x1x16x80xbf16>
      %51 = vector.shape_cast %50 : vector<1x1x16x80xbf16> to vector<16x80xbf16>
      %cst_42 = arith.constant dense<0.000000e+00> : vector<16x256xf32>
      %52 = tpu.matmul %51, %49, %cst_42 {dimension_numbers = #tpu.dot_dimension_numbers<[1], [0], [0], [1], [0, 0, 1, 1], [], []>} : vector<16x80xbf16>, vector<80x256xbf16>, vector<16x256xf32> -> vector<16x256xf32>
      %53 = arith.addf %46, %52 : vector<16x256xf32>
      %c0_43 = arith.constant 0 : index
      %54 = arith.index_cast %10 : i32 to index
      %c115 = arith.constant 115 : index
      %55 = vector.load %arg1[%c0_43, %54, %c115] : memref<1x192x512xbf16, #tpu.memory_space<vmem>>, vector<1x80x256xbf16>
      %56 = vector.shape_cast %55 : vector<1x80x256xbf16> to vector<80x256xbf16>
      %c0_44 = arith.constant 0 : index
      %c6 = arith.constant 6 : index
      %c0_45 = arith.constant 0 : index
      %c0_46 = arith.constant 0 : index
      %57 = vector.load %arg2[%c0_44, %c6, %c0_45, %c0_46] : memref<2x25x16x80xbf16, #tpu.memory_space<vmem>>, vector<1x1x16x80xbf16>
      %58 = vector.shape_cast %57 : vector<1x1x16x80xbf16> to vector<16x80xbf16>
      %cst_47 = arith.constant dense<0.000000e+00> : vector<16x256xf32>
      %59 = tpu.matmul %58, %56, %cst_47 {dimension_numbers = #tpu.dot_dimension_numbers<[1], [0], [0], [1], [0, 0, 1, 1], [], []>} : vector<16x80xbf16>, vector<80x256xbf16>, vector<16x256xf32> -> vector<16x256xf32>
      %60 = arith.addf %53, %59 : vector<16x256xf32>
      %c0_48 = arith.constant 0 : index
      %61 = arith.index_cast %10 : i32 to index
      %c116 = arith.constant 116 : index
      %62 = vector.load %arg1[%c0_48, %61, %c116] : memref<1x192x512xbf16, #tpu.memory_space<vmem>>, vector<1x80x256xbf16>
      %63 = vector.shape_cast %62 : vector<1x80x256xbf16> to vector<80x256xbf16>
      %c0_49 = arith.constant 0 : index
      %c7 = arith.constant 7 : index
      %c0_50 = arith.constant 0 : index
      %c0_51 = arith.constant 0 : index
      %64 = vector.load %arg2[%c0_49, %c7, %c0_50, %c0_51] : memref<2x25x16x80xbf16, #tpu.memory_space<vmem>>, vector<1x1x16x80xbf16>
      %65 = vector.shape_cast %64 : vector<1x1x16x80xbf16> to vector<16x80xbf16>
      %cst_52 = arith.constant dense<0.000000e+00> : vector<16x256xf32>
      %66 = tpu.matmul %65, %63, %cst_52 {dimension_numbers = #tpu.dot_dimension_numbers<[1], [0], [0], [1], [0, 0, 1, 1], [], []>} : vector<16x80xbf16>, vector<80x256xbf16>, vector<16x256xf32> -> vector<16x256xf32>
      %67 = arith.addf %60, %66 : vector<16x256xf32>
      %c0_53 = arith.constant 0 : index
      %68 = arith.index_cast %10 : i32 to index
      %c117 = arith.constant 117 : index
      %69 = vector.load %arg1[%c0_53, %68, %c117] : memref<1x192x512xbf16, #tpu.memory_space<vmem>>, vector<1x80x256xbf16>
      %70 = vector.shape_cast %69 : vector<1x80x256xbf16> to vector<80x256xbf16>
      %c0_54 = arith.constant 0 : index
      %c8 = arith.constant 8 : index
      %c0_55 = arith.constant 0 : index
      %c0_56 = arith.constant 0 : index
      %71 = vector.load %arg2[%c0_54, %c8, %c0_55, %c0_56] : memref<2x25x16x80xbf16, #tpu.memory_space<vmem>>, vector<1x1x16x80xbf16>
      %72 = vector.shape_cast %71 : vector<1x1x16x80xbf16> to vector<16x80xbf16>
      %cst_57 = arith.constant dense<0.000000e+00> : vector<16x256xf32>
      %73 = tpu.matmul %72, %70, %cst_57 {dimension_numbers = #tpu.dot_dimension_numbers<[1], [0], [0], [1], [0, 0, 1, 1], [], []>} : vector<16x80xbf16>, vector<80x256xbf16>, vector<16x256xf32> -> vector<16x256xf32>
      %74 = arith.addf %67, %73 : vector<16x256xf32>
      %c0_58 = arith.constant 0 : index
      %75 = arith.index_cast %10 : i32 to index
      %c118 = arith.constant 118 : index
      %76 = vector.load %arg1[%c0_58, %75, %c118] : memref<1x192x512xbf16, #tpu.memory_space<vmem>>, vector<1x80x256xbf16>
      %77 = vector.shape_cast %76 : vector<1x80x256xbf16> to vector<80x256xbf16>
      %c0_59 = arith.constant 0 : index
      %c9 = arith.constant 9 : index
      %c0_60 = arith.constant 0 : index
      %c0_61 = arith.constant 0 : index
      %78 = vector.load %arg2[%c0_59, %c9, %c0_60, %c0_61] : memref<2x25x16x80xbf16, #tpu.memory_space<vmem>>, vector<1x1x16x80xbf16>
      %79 = vector.shape_cast %78 : vector<1x1x16x80xbf16> to vector<16x80xbf16>
      %cst_62 = arith.constant dense<0.000000e+00> : vector<16x256xf32>
      %80 = tpu.matmul %79, %77, %cst_62 {dimension_numbers = #tpu.dot_dimension_numbers<[1], [0], [0], [1], [0, 0, 1, 1], [], []>} : vector<16x80xbf16>, vector<80x256xbf16>, vector<16x256xf32> -> vector<16x256xf32>
      %81 = arith.addf %74, %80 : vector<16x256xf32>
      %c0_63 = arith.constant 0 : index
      %82 = arith.index_cast %10 : i32 to index
      %c126 = arith.constant 126 : index
      %83 = vector.load %arg1[%c0_63, %82, %c126] : memref<1x192x512xbf16, #tpu.memory_space<vmem>>, vector<1x80x256xbf16>
      %84 = vector.shape_cast %83 : vector<1x80x256xbf16> to vector<80x256xbf16>
      %c0_64 = arith.constant 0 : index
      %c10 = arith.constant 10 : index
      %c0_65 = arith.constant 0 : index
      %c0_66 = arith.constant 0 : index
      %85 = vector.load %arg2[%c0_64, %c10, %c0_65, %c0_66] : memref<2x25x16x80xbf16, #tpu.memory_space<vmem>>, vector<1x1x16x80xbf16>
      %86 = vector.shape_cast %85 : vector<1x1x16x80xbf16> to vector<16x80xbf16>
      %cst_67 = arith.constant dense<0.000000e+00> : vector<16x256xf32>
      %87 = tpu.matmul %86, %84, %cst_67 {dimension_numbers = #tpu.dot_dimension_numbers<[1], [0], [0], [1], [0, 0, 1, 1], [], []>} : vector<16x80xbf16>, vector<80x256xbf16>, vector<16x256xf32> -> vector<16x256xf32>
      %88 = arith.addf %81, %87 : vector<16x256xf32>
      %c0_68 = arith.constant 0 : index
      %89 = arith.index_cast %10 : i32 to index
      %c127 = arith.constant 127 : index
      %90 = vector.load %arg1[%c0_68, %89, %c127] : memref<1x192x512xbf16, #tpu.memory_space<vmem>>, vector<1x80x256xbf16>
      %91 = vector.shape_cast %90 : vector<1x80x256xbf16> to vector<80x256xbf16>
      %c0_69 = arith.constant 0 : index
      %c11 = arith.constant 11 : index
      %c0_70 = arith.constant 0 : index
      %c0_71 = arith.constant 0 : index
      %92 = vector.load %arg2[%c0_69, %c11, %c0_70, %c0_71] : memref<2x25x16x80xbf16, #tpu.memory_space<vmem>>, vector<1x1x16x80xbf16>
      %93 = vector.shape_cast %92 : vector<1x1x16x80xbf16> to vector<16x80xbf16>
      %cst_72 = arith.constant dense<0.000000e+00> : vector<16x256xf32>
      %94 = tpu.matmul %93, %91, %cst_72 {dimension_numbers = #tpu.dot_dimension_numbers<[1], [0], [0], [1], [0, 0, 1, 1], [], []>} : vector<16x80xbf16>, vector<80x256xbf16>, vector<16x256xf32> -> vector<16x256xf32>
      %95 = arith.addf %88, %94 : vector<16x256xf32>
      %c0_73 = arith.constant 0 : index
      %96 = arith.index_cast %10 : i32 to index
      %c128 = arith.constant 128 : index
      %97 = vector.load %arg1[%c0_73, %96, %c128] : memref<1x192x512xbf16, #tpu.memory_space<vmem>>, vector<1x80x256xbf16>
      %98 = vector.shape_cast %97 : vector<1x80x256xbf16> to vector<80x256xbf16>
      %c0_74 = arith.constant 0 : index
      %c12 = arith.constant 12 : index
      %c0_75 = arith.constant 0 : index
      %c0_76 = arith.constant 0 : index
      %99 = vector.load %arg2[%c0_74, %c12, %c0_75, %c0_76] : memref<2x25x16x80xbf16, #tpu.memory_space<vmem>>, vector<1x1x16x80xbf16>
      %100 = vector.shape_cast %99 : vector<1x1x16x80xbf16> to vector<16x80xbf16>
      %cst_77 = arith.constant dense<0.000000e+00> : vector<16x256xf32>
      %101 = tpu.matmul %100, %98, %cst_77 {dimension_numbers = #tpu.dot_dimension_numbers<[1], [0], [0], [1], [0, 0, 1, 1], [], []>} : vector<16x80xbf16>, vector<80x256xbf16>, vector<16x256xf32> -> vector<16x256xf32>
      %102 = arith.addf %95, %101 : vector<16x256xf32>
      %c0_78 = arith.constant 0 : index
      %103 = arith.index_cast %10 : i32 to index
      %c129 = arith.constant 129 : index
      %104 = vector.load %arg1[%c0_78, %103, %c129] : memref<1x192x512xbf16, #tpu.memory_space<vmem>>, vector<1x80x256xbf16>
      %105 = vector.shape_cast %104 : vector<1x80x256xbf16> to vector<80x256xbf16>
      %c0_79 = arith.constant 0 : index
      %c13 = arith.constant 13 : index
      %c0_80 = arith.constant 0 : index
      %c0_81 = arith.constant 0 : index
      %106 = vector.load %arg2[%c0_79, %c13, %c0_80, %c0_81] : memref<2x25x16x80xbf16, #tpu.memory_space<vmem>>, vector<1x1x16x80xbf16>
      %107 = vector.shape_cast %106 : vector<1x1x16x80xbf16> to vector<16x80xbf16>
      %cst_82 = arith.constant dense<0.000000e+00> : vector<16x256xf32>
      %108 = tpu.matmul %107, %105, %cst_82 {dimension_numbers = #tpu.dot_dimension_numbers<[1], [0], [0], [1], [0, 0, 1, 1], [], []>} : vector<16x80xbf16>, vector<80x256xbf16>, vector<16x256xf32> -> vector<16x256xf32>
      %109 = arith.addf %102, %108 : vector<16x256xf32>
      %c0_83 = arith.constant 0 : index
      %110 = arith.index_cast %10 : i32 to index
      %c130 = arith.constant 130 : index
      %111 = vector.load %arg1[%c0_83, %110, %c130] : memref<1x192x512xbf16, #tpu.memory_space<vmem>>, vector<1x80x256xbf16>
      %112 = vector.shape_cast %111 : vector<1x80x256xbf16> to vector<80x256xbf16>
      %c0_84 = arith.constant 0 : index
      %c14 = arith.constant 14 : index
      %c0_85 = arith.constant 0 : index
      %c0_86 = arith.constant 0 : index
      %113 = vector.load %arg2[%c0_84, %c14, %c0_85, %c0_86] : memref<2x25x16x80xbf16, #tpu.memory_space<vmem>>, vector<1x1x16x80xbf16>
      %114 = vector.shape_cast %113 : vector<1x1x16x80xbf16> to vector<16x80xbf16>
      %cst_87 = arith.constant dense<0.000000e+00> : vector<16x256xf32>
      %115 = tpu.matmul %114, %112, %cst_87 {dimension_numbers = #tpu.dot_dimension_numbers<[1], [0], [0], [1], [0, 0, 1, 1], [], []>} : vector<16x80xbf16>, vector<80x256xbf16>, vector<16x256xf32> -> vector<16x256xf32>
      %116 = arith.addf %109, %115 : vector<16x256xf32>
      %c0_88 = arith.constant 0 : index
      %117 = arith.index_cast %10 : i32 to index
      %c138 = arith.constant 138 : index
      %118 = vector.load %arg1[%c0_88, %117, %c138] : memref<1x192x512xbf16, #tpu.memory_space<vmem>>, vector<1x80x256xbf16>
      %119 = vector.shape_cast %118 : vector<1x80x256xbf16> to vector<80x256xbf16>
      %c0_89 = arith.constant 0 : index
      %c15 = arith.constant 15 : index
      %c0_90 = arith.constant 0 : index
      %c0_91 = arith.constant 0 : index
      %120 = vector.load %arg2[%c0_89, %c15, %c0_90, %c0_91] : memref<2x25x16x80xbf16, #tpu.memory_space<vmem>>, vector<1x1x16x80xbf16>
      %121 = vector.shape_cast %120 : vector<1x1x16x80xbf16> to vector<16x80xbf16>
      %cst_92 = arith.constant dense<0.000000e+00> : vector<16x256xf32>
      %122 = tpu.matmul %121, %119, %cst_92 {dimension_numbers = #tpu.dot_dimension_numbers<[1], [0], [0], [1], [0, 0, 1, 1], [], []>} : vector<16x80xbf16>, vector<80x256xbf16>, vector<16x256xf32> -> vector<16x256xf32>
      %123 = arith.addf %116, %122 : vector<16x256xf32>
      %c0_93 = arith.constant 0 : index
      %124 = arith.index_cast %10 : i32 to index
      %c139 = arith.constant 139 : index
      %125 = vector.load %arg1[%c0_93, %124, %c139] : memref<1x192x512xbf16, #tpu.memory_space<vmem>>, vector<1x80x256xbf16>
      %126 = vector.shape_cast %125 : vector<1x80x256xbf16> to vector<80x256xbf16>
      %c0_94 = arith.constant 0 : index
      %c16 = arith.constant 16 : index
      %c0_95 = arith.constant 0 : index
      %c0_96 = arith.constant 0 : index
      %127 = vector.load %arg2[%c0_94, %c16, %c0_95, %c0_96] : memref<2x25x16x80xbf16, #tpu.memory_space<vmem>>, vector<1x1x16x80xbf16>
      %128 = vector.shape_cast %127 : vector<1x1x16x80xbf16> to vector<16x80xbf16>
      %cst_97 = arith.constant dense<0.000000e+00> : vector<16x256xf32>
      %129 = tpu.matmul %128, %126, %cst_97 {dimension_numbers = #tpu.dot_dimension_numbers<[1], [0], [0], [1], [0, 0, 1, 1], [], []>} : vector<16x80xbf16>, vector<80x256xbf16>, vector<16x256xf32> -> vector<16x256xf32>
      %130 = arith.addf %123, %129 : vector<16x256xf32>
      %c0_98 = arith.constant 0 : index
      %131 = arith.index_cast %10 : i32 to index
      %c140 = arith.constant 140 : index
      %132 = vector.load %arg1[%c0_98, %131, %c140] : memref<1x192x512xbf16, #tpu.memory_space<vmem>>, vector<1x80x256xbf16>
      %133 = vector.shape_cast %132 : vector<1x80x256xbf16> to vector<80x256xbf16>
      %c0_99 = arith.constant 0 : index
      %c17 = arith.constant 17 : index
      %c0_100 = arith.constant 0 : index
      %c0_101 = arith.constant 0 : index
      %134 = vector.load %arg2[%c0_99, %c17, %c0_100, %c0_101] : memref<2x25x16x80xbf16, #tpu.memory_space<vmem>>, vector<1x1x16x80xbf16>
      %135 = vector.shape_cast %134 : vector<1x1x16x80xbf16> to vector<16x80xbf16>
      %cst_102 = arith.constant dense<0.000000e+00> : vector<16x256xf32>
      %136 = tpu.matmul %135, %133, %cst_102 {dimension_numbers = #tpu.dot_dimension_numbers<[1], [0], [0], [1], [0, 0, 1, 1], [], []>} : vector<16x80xbf16>, vector<80x256xbf16>, vector<16x256xf32> -> vector<16x256xf32>
      %137 = arith.addf %130, %136 : vector<16x256xf32>
      %c0_103 = arith.constant 0 : index
      %138 = arith.index_cast %10 : i32 to index
      %c141 = arith.constant 141 : index
      %139 = vector.load %arg1[%c0_103, %138, %c141] : memref<1x192x512xbf16, #tpu.memory_space<vmem>>, vector<1x80x256xbf16>
      %140 = vector.shape_cast %139 : vector<1x80x256xbf16> to vector<80x256xbf16>
      %c0_104 = arith.constant 0 : index
      %c18 = arith.constant 18 : index
      %c0_105 = arith.constant 0 : index
      %c0_106 = arith.constant 0 : index
      %141 = vector.load %arg2[%c0_104, %c18, %c0_105, %c0_106] : memref<2x25x16x80xbf16, #tpu.memory_space<vmem>>, vector<1x1x16x80xbf16>
      %142 = vector.shape_cast %141 : vector<1x1x16x80xbf16> to vector<16x80xbf16>
      %cst_107 = arith.constant dense<0.000000e+00> : vector<16x256xf32>
      %143 = tpu.matmul %142, %140, %cst_107 {dimension_numbers = #tpu.dot_dimension_numbers<[1], [0], [0], [1], [0, 0, 1, 1], [], []>} : vector<16x80xbf16>, vector<80x256xbf16>, vector<16x256xf32> -> vector<16x256xf32>
      %144 = arith.addf %137, %143 : vector<16x256xf32>
      %c0_108 = arith.constant 0 : index
      %145 = arith.index_cast %10 : i32 to index
      %c142 = arith.constant 142 : index
      %146 = vector.load %arg1[%c0_108, %145, %c142] : memref<1x192x512xbf16, #tpu.memory_space<vmem>>, vector<1x80x256xbf16>
      %147 = vector.shape_cast %146 : vector<1x80x256xbf16> to vector<80x256xbf16>
      %c0_109 = arith.constant 0 : index
      %c19 = arith.constant 19 : index
      %c0_110 = arith.constant 0 : index
      %c0_111 = arith.constant 0 : index
      %148 = vector.load %arg2[%c0_109, %c19, %c0_110, %c0_111] : memref<2x25x16x80xbf16, #tpu.memory_space<vmem>>, vector<1x1x16x80xbf16>
      %149 = vector.shape_cast %148 : vector<1x1x16x80xbf16> to vector<16x80xbf16>
      %cst_112 = arith.constant dense<0.000000e+00> : vector<16x256xf32>
      %150 = tpu.matmul %149, %147, %cst_112 {dimension_numbers = #tpu.dot_dimension_numbers<[1], [0], [0], [1], [0, 0, 1, 1], [], []>} : vector<16x80xbf16>, vector<80x256xbf16>, vector<16x256xf32> -> vector<16x256xf32>
      %151 = arith.addf %144, %150 : vector<16x256xf32>
      %c0_113 = arith.constant 0 : index
      %152 = arith.index_cast %10 : i32 to index
      %c150 = arith.constant 150 : index
      %153 = vector.load %arg1[%c0_113, %152, %c150] : memref<1x192x512xbf16, #tpu.memory_space<vmem>>, vector<1x80x256xbf16>
      %154 = vector.shape_cast %153 : vector<1x80x256xbf16> to vector<80x256xbf16>
      %c0_114 = arith.constant 0 : index
      %c20 = arith.constant 20 : index
      %c0_115 = arith.constant 0 : index
      %c0_116 = arith.constant 0 : index
      %155 = vector.load %arg2[%c0_114, %c20, %c0_115, %c0_116] : memref<2x25x16x80xbf16, #tpu.memory_space<vmem>>, vector<1x1x16x80xbf16>
      %156 = vector.shape_cast %155 : vector<1x1x16x80xbf16> to vector<16x80xbf16>
      %cst_117 = arith.constant dense<0.000000e+00> : vector<16x256xf32>
      %157 = tpu.matmul %156, %154, %cst_117 {dimension_numbers = #tpu.dot_dimension_numbers<[1], [0], [0], [1], [0, 0, 1, 1], [], []>} : vector<16x80xbf16>, vector<80x256xbf16>, vector<16x256xf32> -> vector<16x256xf32>
      %158 = arith.addf %151, %157 : vector<16x256xf32>
      %c0_118 = arith.constant 0 : index
      %159 = arith.index_cast %10 : i32 to index
      %c151 = arith.constant 151 : index
      %160 = vector.load %arg1[%c0_118, %159, %c151] : memref<1x192x512xbf16, #tpu.memory_space<vmem>>, vector<1x80x256xbf16>
      %161 = vector.shape_cast %160 : vector<1x80x256xbf16> to vector<80x256xbf16>
      %c0_119 = arith.constant 0 : index
      %c21 = arith.constant 21 : index
      %c0_120 = arith.constant 0 : index
      %c0_121 = arith.constant 0 : index
      %162 = vector.load %arg2[%c0_119, %c21, %c0_120, %c0_121] : memref<2x25x16x80xbf16, #tpu.memory_space<vmem>>, vector<1x1x16x80xbf16>
      %163 = vector.shape_cast %162 : vector<1x1x16x80xbf16> to vector<16x80xbf16>
      %cst_122 = arith.constant dense<0.000000e+00> : vector<16x256xf32>
      %164 = tpu.matmul %163, %161, %cst_122 {dimension_numbers = #tpu.dot_dimension_numbers<[1], [0], [0], [1], [0, 0, 1, 1], [], []>} : vector<16x80xbf16>, vector<80x256xbf16>, vector<16x256xf32> -> vector<16x256xf32>
      %165 = arith.addf %158, %164 : vector<16x256xf32>
      %c0_123 = arith.constant 0 : index
      %166 = arith.index_cast %10 : i32 to index
      %c152 = arith.constant 152 : index
      %167 = vector.load %arg1[%c0_123, %166, %c152] : memref<1x192x512xbf16, #tpu.memory_space<vmem>>, vector<1x80x256xbf16>
      %168 = vector.shape_cast %167 : vector<1x80x256xbf16> to vector<80x256xbf16>
      %c0_124 = arith.constant 0 : index
      %c22 = arith.constant 22 : index
      %c0_125 = arith.constant 0 : index
      %c0_126 = arith.constant 0 : index
      %169 = vector.load %arg2[%c0_124, %c22, %c0_125, %c0_126] : memref<2x25x16x80xbf16, #tpu.memory_space<vmem>>, vector<1x1x16x80xbf16>
      %170 = vector.shape_cast %169 : vector<1x1x16x80xbf16> to vector<16x80xbf16>
      %cst_127 = arith.constant dense<0.000000e+00> : vector<16x256xf32>
      %171 = tpu.matmul %170, %168, %cst_127 {dimension_numbers = #tpu.dot_dimension_numbers<[1], [0], [0], [1], [0, 0, 1, 1], [], []>} : vector<16x80xbf16>, vector<80x256xbf16>, vector<16x256xf32> -> vector<16x256xf32>
      %172 = arith.addf %165, %171 : vector<16x256xf32>
      %c0_128 = arith.constant 0 : index
      %173 = arith.index_cast %10 : i32 to index
      %c153 = arith.constant 153 : index
      %174 = vector.load %arg1[%c0_128, %173, %c153] : memref<1x192x512xbf16, #tpu.memory_space<vmem>>, vector<1x80x256xbf16>
      %175 = vector.shape_cast %174 : vector<1x80x256xbf16> to vector<80x256xbf16>
      %c0_129 = arith.constant 0 : index
      %c23 = arith.constant 23 : index
      %c0_130 = arith.constant 0 : index
      %c0_131 = arith.constant 0 : index
      %176 = vector.load %arg2[%c0_129, %c23, %c0_130, %c0_131] : memref<2x25x16x80xbf16, #tpu.memory_space<vmem>>, vector<1x1x16x80xbf16>
      %177 = vector.shape_cast %176 : vector<1x1x16x80xbf16> to vector<16x80xbf16>
      %cst_132 = arith.constant dense<0.000000e+00> : vector<16x256xf32>
      %178 = tpu.matmul %177, %175, %cst_132 {dimension_numbers = #tpu.dot_dimension_numbers<[1], [0], [0], [1], [0, 0, 1, 1], [], []>} : vector<16x80xbf16>, vector<80x256xbf16>, vector<16x256xf32> -> vector<16x256xf32>
      %179 = arith.addf %172, %178 : vector<16x256xf32>
      %c0_133 = arith.constant 0 : index
      %180 = arith.index_cast %10 : i32 to index
      %c154 = arith.constant 154 : index
      %181 = vector.load %arg1[%c0_133, %180, %c154] : memref<1x192x512xbf16, #tpu.memory_space<vmem>>, vector<1x80x256xbf16>
      %182 = vector.shape_cast %181 : vector<1x80x256xbf16> to vector<80x256xbf16>
      %c0_134 = arith.constant 0 : index
      %c24 = arith.constant 24 : index
      %c0_135 = arith.constant 0 : index
      %c0_136 = arith.constant 0 : index
      %183 = vector.load %arg2[%c0_134, %c24, %c0_135, %c0_136] : memref<2x25x16x80xbf16, #tpu.memory_space<vmem>>, vector<1x1x16x80xbf16>
      %184 = vector.shape_cast %183 : vector<1x1x16x80xbf16> to vector<16x80xbf16>
      %cst_137 = arith.constant dense<0.000000e+00> : vector<16x256xf32>
      %185 = tpu.matmul %184, %182, %cst_137 {dimension_numbers = #tpu.dot_dimension_numbers<[1], [0], [0], [1], [0, 0, 1, 1], [], []>} : vector<16x80xbf16>, vector<80x256xbf16>, vector<16x256xf32> -> vector<16x256xf32>
      %186 = arith.addf %179, %185 : vector<16x256xf32>
      %c0_138 = arith.constant 0 : index
      %c0_139 = arith.constant 0 : index
      %c0_140 = arith.constant 0 : index
      %187 = vector.load %arg3[%c0_138, %c0_139, %c0_140] : memref<2x16x1xf32, #tpu.memory_space<vmem>>, vector<1x16x1xf32>
      %188 = vector.shape_cast %187 : vector<1x16x1xf32> to vector<16x1xf32>
      %189 = vector.broadcast %188 : vector<16x1xf32> to vector<16x256xf32>
      %190 = arith.addf %186, %189 : vector<16x256xf32>
      %cst_141 = arith.constant 0.000000e+00 : f32
      %191 = vector.broadcast %cst_141 : f32 to vector<16x256xf32>
      %192 = arith.cmpf ogt, %190, %191 : vector<16x256xf32>
      %193 = vector.broadcast %5 : f32 to vector<16x256xf32>
      %194 = arith.mulf %193, %190 : vector<16x256xf32>
      %195 = arith.select %192, %190, %194 : vector<16x256xi1>, vector<16x256xf32>
      %cst_142 = arith.constant 0.000000e+00 : f32
      %196 = vector.broadcast %cst_142 : f32 to vector<16x256xf32>
      %197 = arith.select %2, %195, %196 : vector<16x256xi1>, vector<16x256xf32>
      %c2_i32 = arith.constant 2 : i32
      %198 = arith.addi %arg9, %c2_i32 : i32
      %c16_i32_143 = arith.constant 16 : i32
      %199 = arith.muli %198, %c16_i32_143 : i32
      %200 = tpu.assume_multiple %199, 16 : i32
      %201 = arith.truncf %197 : vector<16x256xf32> to vector<16x256xbf16>
      %202 = arith.index_cast %200 : i32 to index
      %c128_144 = arith.constant 128 : index
      %203 = vector.load %arg7[%202, %c128_144] : memref<192x512xbf16, #tpu.memory_space<vmem>>, vector<16x256xbf16>
      tpu.vector_store %arg7[%202, %c128_144], %201 {strides = array<i32>} : memref<192x512xbf16, #tpu.memory_space<vmem>>, vector<16x256xbf16>,
    }
    %c8_i32_5 = arith.constant 8 : i32
    %c1 = arith.constant 1 : index
    %7 = memref.load %arg5[%c1] : memref<2xf32, #tpu.memory_space<smem>>
    %c0_i32_6 = arith.constant 0 : i32
    %c8_i32_7 = arith.constant 8 : i32
    %8 = arith.addi %c0_i32_6, %c8_i32_7 : i32
    %c1_i32_8 = arith.constant 1 : i32
    scf.for %arg9 = %c0_i32_6 to %8 step %c1_i32_8  : i32 {
      %c16_i32 = arith.constant 16 : i32
      %9 = arith.muli %arg9, %c16_i32 : i32
      %10 = tpu.assume_multiple %9, 16 : i32
      %cst_10 = arith.constant 0.000000e+00 : f32
      %11 = vector.broadcast %cst_10 : f32 to vector<16x256xf32>
      %12 = arith.index_cast %10 : i32 to index
      %c102 = arith.constant 102 : index
      %13 = vector.load %arg7[%12, %c102] : memref<192x512xbf16, #tpu.memory_space<vmem>>, vector<80x256xbf16>
      %c1_11 = arith.constant 1 : index
      %c0_12 = arith.constant 0 : index
      %c0_13 = arith.constant 0 : index
      %c0_14 = arith.constant 0 : index
      %14 = vector.load %arg2[%c1_11, %c0_12, %c0_13, %c0_14] : memref<2x25x16x80xbf16, #tpu.memory_space<vmem>>, vector<1x1x16x80xbf16>
      %15 = vector.shape_cast %14 : vector<1x1x16x80xbf16> to vector<16x80xbf16>
      %cst_15 = arith.constant dense<0.000000e+00> : vector<16x256xf32>
      %16 = tpu.matmul %15, %13, %cst_15 {dimension_numbers = #tpu.dot_dimension_numbers<[1], [0], [0], [1], [0, 0, 1, 1], [], []>} : vector<16x80xbf16>, vector<80x256xbf16>, vector<16x256xf32> -> vector<16x256xf32>
      %17 = arith.addf %11, %16 : vector<16x256xf32>
      %18 = arith.index_cast %10 : i32 to index
      %c103 = arith.constant 103 : index
      %19 = vector.load %arg7[%18, %c103] : memref<192x512xbf16, #tpu.memory_space<vmem>>, vector<80x256xbf16>
      %c1_16 = arith.constant 1 : index
      %c1_17 = arith.constant 1 : index
      %c0_18 = arith.constant 0 : index
      %c0_19 = arith.constant 0 : index
      %20 = vector.load %arg2[%c1_16, %c1_17, %c0_18, %c0_19] : memref<2x25x16x80xbf16, #tpu.memory_space<vmem>>, vector<1x1x16x80xbf16>
      %21 = vector.shape_cast %20 : vector<1x1x16x80xbf16> to vector<16x80xbf16>
      %cst_20 = arith.constant dense<0.000000e+00> : vector<16x256xf32>
      %22 = tpu.matmul %21, %19, %cst_20 {dimension_numbers = #tpu.dot_dimension_numbers<[1], [0], [0], [1], [0, 0, 1, 1], [], []>} : vector<16x80xbf16>, vector<80x256xbf16>, vector<16x256xf32> -> vector<16x256xf32>
      %23 = arith.addf %17, %22 : vector<16x256xf32>
      %24 = arith.index_cast %10 : i32 to index
      %c104 = arith.constant 104 : index
      %25 = vector.load %arg7[%24, %c104] : memref<192x512xbf16, #tpu.memory_space<vmem>>, vector<80x256xbf16>
      %c1_21 = arith.constant 1 : index
      %c2 = arith.constant 2 : index
      %c0_22 = arith.constant 0 : index
      %c0_23 = arith.constant 0 : index
      %26 = vector.load %arg2[%c1_21, %c2, %c0_22, %c0_23] : memref<2x25x16x80xbf16, #tpu.memory_space<vmem>>, vector<1x1x16x80xbf16>
      %27 = vector.shape_cast %26 : vector<1x1x16x80xbf16> to vector<16x80xbf16>
      %cst_24 = arith.constant dense<0.000000e+00> : vector<16x256xf32>
      %28 = tpu.matmul %27, %25, %cst_24 {dimension_numbers = #tpu.dot_dimension_numbers<[1], [0], [0], [1], [0, 0, 1, 1], [], []>} : vector<16x80xbf16>, vector<80x256xbf16>, vector<16x256xf32> -> vector<16x256xf32>
      %29 = arith.addf %23, %28 : vector<16x256xf32>
      %30 = arith.index_cast %10 : i32 to index
      %c105 = arith.constant 105 : index
      %31 = vector.load %arg7[%30, %c105] : memref<192x512xbf16, #tpu.memory_space<vmem>>, vector<80x256xbf16>
      %c1_25 = arith.constant 1 : index
      %c3 = arith.constant 3 : index
      %c0_26 = arith.constant 0 : index
      %c0_27 = arith.constant 0 : index
      %32 = vector.load %arg2[%c1_25, %c3, %c0_26, %c0_27] : memref<2x25x16x80xbf16, #tpu.memory_space<vmem>>, vector<1x1x16x80xbf16>
      %33 = vector.shape_cast %32 : vector<1x1x16x80xbf16> to vector<16x80xbf16>
      %cst_28 = arith.constant dense<0.000000e+00> : vector<16x256xf32>
      %34 = tpu.matmul %33, %31, %cst_28 {dimension_numbers = #tpu.dot_dimension_numbers<[1], [0], [0], [1], [0, 0, 1, 1], [], []>} : vector<16x80xbf16>, vector<80x256xbf16>, vector<16x256xf32> -> vector<16x256xf32>
      %35 = arith.addf %29, %34 : vector<16x256xf32>
      %36 = arith.index_cast %10 : i32 to index
      %c106 = arith.constant 106 : index
      %37 = vector.load %arg7[%36, %c106] : memref<192x512xbf16, #tpu.memory_space<vmem>>, vector<80x256xbf16>
      %c1_29 = arith.constant 1 : index
      %c4 = arith.constant 4 : index
      %c0_30 = arith.constant 0 : index
      %c0_31 = arith.constant 0 : index
      %38 = vector.load %arg2[%c1_29, %c4, %c0_30, %c0_31] : memref<2x25x16x80xbf16, #tpu.memory_space<vmem>>, vector<1x1x16x80xbf16>
      %39 = vector.shape_cast %38 : vector<1x1x16x80xbf16> to vector<16x80xbf16>
      %cst_32 = arith.constant dense<0.000000e+00> : vector<16x256xf32>
      %40 = tpu.matmul %39, %37, %cst_32 {dimension_numbers = #tpu.dot_dimension_numbers<[1], [0], [0], [1], [0, 0, 1, 1], [], []>} : vector<16x80xbf16>, vector<80x256xbf16>, vector<16x256xf32> -> vector<16x256xf32>
      %41 = arith.addf %35, %40 : vector<16x256xf32>
      %42 = arith.index_cast %10 : i32 to index
      %c114 = arith.constant 114 : index
      %43 = vector.load %arg7[%42, %c114] : memref<192x512xbf16, #tpu.memory_space<vmem>>, vector<80x256xbf16>
      %c1_33 = arith.constant 1 : index
      %c5 = arith.constant 5 : index
      %c0_34 = arith.constant 0 : index
      %c0_35 = arith.constant 0 : index
      %44 = vector.load %arg2[%c1_33, %c5, %c0_34, %c0_35] : memref<2x25x16x80xbf16, #tpu.memory_space<vmem>>, vector<1x1x16x80xbf16>
      %45 = vector.shape_cast %44 : vector<1x1x16x80xbf16> to vector<16x80xbf16>
      %cst_36 = arith.constant dense<0.000000e+00> : vector<16x256xf32>
      %46 = tpu.matmul %45, %43, %cst_36 {dimension_numbers = #tpu.dot_dimension_numbers<[1], [0], [0], [1], [0, 0, 1, 1], [], []>} : vector<16x80xbf16>, vector<80x256xbf16>, vector<16x256xf32> -> vector<16x256xf32>
      %47 = arith.addf %41, %46 : vector<16x256xf32>
      %48 = arith.index_cast %10 : i32 to index
      %c115 = arith.constant 115 : index
      %49 = vector.load %arg7[%48, %c115] : memref<192x512xbf16, #tpu.memory_space<vmem>>, vector<80x256xbf16>
      %c1_37 = arith.constant 1 : index
      %c6 = arith.constant 6 : index
      %c0_38 = arith.constant 0 : index
      %c0_39 = arith.constant 0 : index
      %50 = vector.load %arg2[%c1_37, %c6, %c0_38, %c0_39] : memref<2x25x16x80xbf16, #tpu.memory_space<vmem>>, vector<1x1x16x80xbf16>
      %51 = vector.shape_cast %50 : vector<1x1x16x80xbf16> to vector<16x80xbf16>
      %cst_40 = arith.constant dense<0.000000e+00> : vector<16x256xf32>
      %52 = tpu.matmul %51, %49, %cst_40 {dimension_numbers = #tpu.dot_dimension_numbers<[1], [0], [0], [1], [0, 0, 1, 1], [], []>} : vector<16x80xbf16>, vector<80x256xbf16>, vector<16x256xf32> -> vector<16x256xf32>
      %53 = arith.addf %47, %52 : vector<16x256xf32>
      %54 = arith.index_cast %10 : i32 to index
      %c116 = arith.constant 116 : index
      %55 = vector.load %arg7[%54, %c116] : memref<192x512xbf16, #tpu.memory_space<vmem>>, vector<80x256xbf16>
      %c1_41 = arith.constant 1 : index
      %c7 = arith.constant 7 : index
      %c0_42 = arith.constant 0 : index
      %c0_43 = arith.constant 0 : index
      %56 = vector.load %arg2[%c1_41, %c7, %c0_42, %c0_43] : memref<2x25x16x80xbf16, #tpu.memory_space<vmem>>, vector<1x1x16x80xbf16>
      %57 = vector.shape_cast %56 : vector<1x1x16x80xbf16> to vector<16x80xbf16>
      %cst_44 = arith.constant dense<0.000000e+00> : vector<16x256xf32>
      %58 = tpu.matmul %57, %55, %cst_44 {dimension_numbers = #tpu.dot_dimension_numbers<[1], [0], [0], [1], [0, 0, 1, 1], [], []>} : vector<16x80xbf16>, vector<80x256xbf16>, vector<16x256xf32> -> vector<16x256xf32>
      %59 = arith.addf %53, %58 : vector<16x256xf32>
      %60 = arith.index_cast %10 : i32 to index
      %c117 = arith.constant 117 : index
      %61 = vector.load %arg7[%60, %c117] : memref<192x512xbf16, #tpu.memory_space<vmem>>, vector<80x256xbf16>
      %c1_45 = arith.constant 1 : index
      %c8 = arith.constant 8 : index
      %c0_46 = arith.constant 0 : index
      %c0_47 = arith.constant 0 : index
      %62 = vector.load %arg2[%c1_45, %c8, %c0_46, %c0_47] : memref<2x25x16x80xbf16, #tpu.memory_space<vmem>>, vector<1x1x16x80xbf16>
      %63 = vector.shape_cast %62 : vector<1x1x16x80xbf16> to vector<16x80xbf16>
      %cst_48 = arith.constant dense<0.000000e+00> : vector<16x256xf32>
      %64 = tpu.matmul %63, %61, %cst_48 {dimension_numbers = #tpu.dot_dimension_numbers<[1], [0], [0], [1], [0, 0, 1, 1], [], []>} : vector<16x80xbf16>, vector<80x256xbf16>, vector<16x256xf32> -> vector<16x256xf32>
      %65 = arith.addf %59, %64 : vector<16x256xf32>
      %66 = arith.index_cast %10 : i32 to index
      %c118 = arith.constant 118 : index
      %67 = vector.load %arg7[%66, %c118] : memref<192x512xbf16, #tpu.memory_space<vmem>>, vector<80x256xbf16>
      %c1_49 = arith.constant 1 : index
      %c9 = arith.constant 9 : index
      %c0_50 = arith.constant 0 : index
      %c0_51 = arith.constant 0 : index
      %68 = vector.load %arg2[%c1_49, %c9, %c0_50, %c0_51] : memref<2x25x16x80xbf16, #tpu.memory_space<vmem>>, vector<1x1x16x80xbf16>
      %69 = vector.shape_cast %68 : vector<1x1x16x80xbf16> to vector<16x80xbf16>
      %cst_52 = arith.constant dense<0.000000e+00> : vector<16x256xf32>
      %70 = tpu.matmul %69, %67, %cst_52 {dimension_numbers = #tpu.dot_dimension_numbers<[1], [0], [0], [1], [0, 0, 1, 1], [], []>} : vector<16x80xbf16>, vector<80x256xbf16>, vector<16x256xf32> -> vector<16x256xf32>
      %71 = arith.addf %65, %70 : vector<16x256xf32>
      %72 = arith.index_cast %10 : i32 to index
      %c126 = arith.constant 126 : index
      %73 = vector.load %arg7[%72, %c126] : memref<192x512xbf16, #tpu.memory_space<vmem>>, vector<80x256xbf16>
      %c1_53 = arith.constant 1 : index
      %c10 = arith.constant 10 : index
      %c0_54 = arith.constant 0 : index
      %c0_55 = arith.constant 0 : index
      %74 = vector.load %arg2[%c1_53, %c10, %c0_54, %c0_55] : memref<2x25x16x80xbf16, #tpu.memory_space<vmem>>, vector<1x1x16x80xbf16>
      %75 = vector.shape_cast %74 : vector<1x1x16x80xbf16> to vector<16x80xbf16>
      %cst_56 = arith.constant dense<0.000000e+00> : vector<16x256xf32>
      %76 = tpu.matmul %75, %73, %cst_56 {dimension_numbers = #tpu.dot_dimension_numbers<[1], [0], [0], [1], [0, 0, 1, 1], [], []>} : vector<16x80xbf16>, vector<80x256xbf16>, vector<16x256xf32> -> vector<16x256xf32>
      %77 = arith.addf %71, %76 : vector<16x256xf32>
      %78 = arith.index_cast %10 : i32 to index
      %c127 = arith.constant 127 : index
      %79 = vector.load %arg7[%78, %c127] : memref<192x512xbf16, #tpu.memory_space<vmem>>, vector<80x256xbf16>
      %c1_57 = arith.constant 1 : index
      %c11 = arith.constant 11 : index
      %c0_58 = arith.constant 0 : index
      %c0_59 = arith.constant 0 : index
      %80 = vector.load %arg2[%c1_57, %c11, %c0_58, %c0_59] : memref<2x25x16x80xbf16, #tpu.memory_space<vmem>>, vector<1x1x16x80xbf16>
      %81 = vector.shape_cast %80 : vector<1x1x16x80xbf16> to vector<16x80xbf16>
      %cst_60 = arith.constant dense<0.000000e+00> : vector<16x256xf32>
      %82 = tpu.matmul %81, %79, %cst_60 {dimension_numbers = #tpu.dot_dimension_numbers<[1], [0], [0], [1], [0, 0, 1, 1], [], []>} : vector<16x80xbf16>, vector<80x256xbf16>, vector<16x256xf32> -> vector<16x256xf32>
      %83 = arith.addf %77, %82 : vector<16x256xf32>
      %84 = arith.index_cast %10 : i32 to index
      %c128 = arith.constant 128 : index
      %85 = vector.load %arg7[%84, %c128] : memref<192x512xbf16, #tpu.memory_space<vmem>>, vector<80x256xbf16>
      %c1_61 = arith.constant 1 : index
      %c12 = arith.constant 12 : index
      %c0_62 = arith.constant 0 : index
      %c0_63 = arith.constant 0 : index
      %86 = vector.load %arg2[%c1_61, %c12, %c0_62, %c0_63] : memref<2x25x16x80xbf16, #tpu.memory_space<vmem>>, vector<1x1x16x80xbf16>
      %87 = vector.shape_cast %86 : vector<1x1x16x80xbf16> to vector<16x80xbf16>
      %cst_64 = arith.constant dense<0.000000e+00> : vector<16x256xf32>
      %88 = tpu.matmul %87, %85, %cst_64 {dimension_numbers = #tpu.dot_dimension_numbers<[1], [0], [0], [1], [0, 0, 1, 1], [], []>} : vector<16x80xbf16>, vector<80x256xbf16>, vector<16x256xf32> -> vector<16x256xf32>
      %89 = arith.addf %83, %88 : vector<16x256xf32>
      %90 = arith.index_cast %10 : i32 to index
      %c129 = arith.constant 129 : index
      %91 = vector.load %arg7[%90, %c129] : memref<192x512xbf16, #tpu.memory_space<vmem>>, vector<80x256xbf16>
      %c1_65 = arith.constant 1 : index
      %c13 = arith.constant 13 : index
      %c0_66 = arith.constant 0 : index
      %c0_67 = arith.constant 0 : index
      %92 = vector.load %arg2[%c1_65, %c13, %c0_66, %c0_67] : memref<2x25x16x80xbf16, #tpu.memory_space<vmem>>, vector<1x1x16x80xbf16>
      %93 = vector.shape_cast %92 : vector<1x1x16x80xbf16> to vector<16x80xbf16>
      %cst_68 = arith.constant dense<0.000000e+00> : vector<16x256xf32>
      %94 = tpu.matmul %93, %91, %cst_68 {dimension_numbers = #tpu.dot_dimension_numbers<[1], [0], [0], [1], [0, 0, 1, 1], [], []>} : vector<16x80xbf16>, vector<80x256xbf16>, vector<16x256xf32> -> vector<16x256xf32>
      %95 = arith.addf %89, %94 : vector<16x256xf32>
      %96 = arith.index_cast %10 : i32 to index
      %c130 = arith.constant 130 : index
      %97 = vector.load %arg7[%96, %c130] : memref<192x512xbf16, #tpu.memory_space<vmem>>, vector<80x256xbf16>
      %c1_69 = arith.constant 1 : index
      %c14 = arith.constant 14 : index
      %c0_70 = arith.constant 0 : index
      %c0_71 = arith.constant 0 : index
      %98 = vector.load %arg2[%c1_69, %c14, %c0_70, %c0_71] : memref<2x25x16x80xbf16, #tpu.memory_space<vmem>>, vector<1x1x16x80xbf16>
      %99 = vector.shape_cast %98 : vector<1x1x16x80xbf16> to vector<16x80xbf16>
      %cst_72 = arith.constant dense<0.000000e+00> : vector<16x256xf32>
      %100 = tpu.matmul %99, %97, %cst_72 {dimension_numbers = #tpu.dot_dimension_numbers<[1], [0], [0], [1], [0, 0, 1, 1], [], []>} : vector<16x80xbf16>, vector<80x256xbf16>, vector<16x256xf32> -> vector<16x256xf32>
      %101 = arith.addf %95, %100 : vector<16x256xf32>
      %102 = arith.index_cast %10 : i32 to index
      %c138 = arith.constant 138 : index
      %103 = vector.load %arg7[%102, %c138] : memref<192x512xbf16, #tpu.memory_space<vmem>>, vector<80x256xbf16>
      %c1_73 = arith.constant 1 : index
      %c15 = arith.constant 15 : index
      %c0_74 = arith.constant 0 : index
      %c0_75 = arith.constant 0 : index
      %104 = vector.load %arg2[%c1_73, %c15, %c0_74, %c0_75] : memref<2x25x16x80xbf16, #tpu.memory_space<vmem>>, vector<1x1x16x80xbf16>
      %105 = vector.shape_cast %104 : vector<1x1x16x80xbf16> to vector<16x80xbf16>
      %cst_76 = arith.constant dense<0.000000e+00> : vector<16x256xf32>
      %106 = tpu.matmul %105, %103, %cst_76 {dimension_numbers = #tpu.dot_dimension_numbers<[1], [0], [0], [1], [0, 0, 1, 1], [], []>} : vector<16x80xbf16>, vector<80x256xbf16>, vector<16x256xf32> -> vector<16x256xf32>
      %107 = arith.addf %101, %106 : vector<16x256xf32>
      %108 = arith.index_cast %10 : i32 to index
      %c139 = arith.constant 139 : index
      %109 = vector.load %arg7[%108, %c139] : memref<192x512xbf16, #tpu.memory_space<vmem>>, vector<80x256xbf16>
      %c1_77 = arith.constant 1 : index
      %c16 = arith.constant 16 : index
      %c0_78 = arith.constant 0 : index
      %c0_79 = arith.constant 0 : index
      %110 = vector.load %arg2[%c1_77, %c16, %c0_78, %c0_79] : memref<2x25x16x80xbf16, #tpu.memory_space<vmem>>, vector<1x1x16x80xbf16>
      %111 = vector.shape_cast %110 : vector<1x1x16x80xbf16> to vector<16x80xbf16>
      %cst_80 = arith.constant dense<0.000000e+00> : vector<16x256xf32>
      %112 = tpu.matmul %111, %109, %cst_80 {dimension_numbers = #tpu.dot_dimension_numbers<[1], [0], [0], [1], [0, 0, 1, 1], [], []>} : vector<16x80xbf16>, vector<80x256xbf16>, vector<16x256xf32> -> vector<16x256xf32>
      %113 = arith.addf %107, %112 : vector<16x256xf32>
      %114 = arith.index_cast %10 : i32 to index
      %c140 = arith.constant 140 : index
      %115 = vector.load %arg7[%114, %c140] : memref<192x512xbf16, #tpu.memory_space<vmem>>, vector<80x256xbf16>
      %c1_81 = arith.constant 1 : index
      %c17 = arith.constant 17 : index
      %c0_82 = arith.constant 0 : index
      %c0_83 = arith.constant 0 : index
      %116 = vector.load %arg2[%c1_81, %c17, %c0_82, %c0_83] : memref<2x25x16x80xbf16, #tpu.memory_space<vmem>>, vector<1x1x16x80xbf16>
      %117 = vector.shape_cast %116 : vector<1x1x16x80xbf16> to vector<16x80xbf16>
      %cst_84 = arith.constant dense<0.000000e+00> : vector<16x256xf32>
      %118 = tpu.matmul %117, %115, %cst_84 {dimension_numbers = #tpu.dot_dimension_numbers<[1], [0], [0], [1], [0, 0, 1, 1], [], []>} : vector<16x80xbf16>, vector<80x256xbf16>, vector<16x256xf32> -> vector<16x256xf32>
      %119 = arith.addf %113, %118 : vector<16x256xf32>
      %120 = arith.index_cast %10 : i32 to index
      %c141 = arith.constant 141 : index
      %121 = vector.load %arg7[%120, %c141] : memref<192x512xbf16, #tpu.memory_space<vmem>>, vector<80x256xbf16>
      %c1_85 = arith.constant 1 : index
      %c18 = arith.constant 18 : index
      %c0_86 = arith.constant 0 : index
      %c0_87 = arith.constant 0 : index
      %122 = vector.load %arg2[%c1_85, %c18, %c0_86, %c0_87] : memref<2x25x16x80xbf16, #tpu.memory_space<vmem>>, vector<1x1x16x80xbf16>
      %123 = vector.shape_cast %122 : vector<1x1x16x80xbf16> to vector<16x80xbf16>
      %cst_88 = arith.constant dense<0.000000e+00> : vector<16x256xf32>
      %124 = tpu.matmul %123, %121, %cst_88 {dimension_numbers = #tpu.dot_dimension_numbers<[1], [0], [0], [1], [0, 0, 1, 1], [], []>} : vector<16x80xbf16>, vector<80x256xbf16>, vector<16x256xf32> -> vector<16x256xf32>
      %125 = arith.addf %119, %124 : vector<16x256xf32>
      %126 = arith.index_cast %10 : i32 to index
      %c142 = arith.constant 142 : index
      %127 = vector.load %arg7[%126, %c142] : memref<192x512xbf16, #tpu.memory_space<vmem>>, vector<80x256xbf16>
      %c1_89 = arith.constant 1 : index
      %c19 = arith.constant 19 : index
      %c0_90 = arith.constant 0 : index
      %c0_91 = arith.constant 0 : index
      %128 = vector.load %arg2[%c1_89, %c19, %c0_90, %c0_91] : memref<2x25x16x80xbf16, #tpu.memory_space<vmem>>, vector<1x1x16x80xbf16>
      %129 = vector.shape_cast %128 : vector<1x1x16x80xbf16> to vector<16x80xbf16>
      %cst_92 = arith.constant dense<0.000000e+00> : vector<16x256xf32>
      %130 = tpu.matmul %129, %127, %cst_92 {dimension_numbers = #tpu.dot_dimension_numbers<[1], [0], [0], [1], [0, 0, 1, 1], [], []>} : vector<16x80xbf16>, vector<80x256xbf16>, vector<16x256xf32> -> vector<16x256xf32>
      %131 = arith.addf %125, %130 : vector<16x256xf32>
      %132 = arith.index_cast %10 : i32 to index
      %c150 = arith.constant 150 : index
      %133 = vector.load %arg7[%132, %c150] : memref<192x512xbf16, #tpu.memory_space<vmem>>, vector<80x256xbf16>
      %c1_93 = arith.constant 1 : index
      %c20 = arith.constant 20 : index
      %c0_94 = arith.constant 0 : index
      %c0_95 = arith.constant 0 : index
      %134 = vector.load %arg2[%c1_93, %c20, %c0_94, %c0_95] : memref<2x25x16x80xbf16, #tpu.memory_space<vmem>>, vector<1x1x16x80xbf16>
      %135 = vector.shape_cast %134 : vector<1x1x16x80xbf16> to vector<16x80xbf16>
      %cst_96 = arith.constant dense<0.000000e+00> : vector<16x256xf32>
      %136 = tpu.matmul %135, %133, %cst_96 {dimension_numbers = #tpu.dot_dimension_numbers<[1], [0], [0], [1], [0, 0, 1, 1], [], []>} : vector<16x80xbf16>, vector<80x256xbf16>, vector<16x256xf32> -> vector<16x256xf32>
      %137 = arith.addf %131, %136 : vector<16x256xf32>
      %138 = arith.index_cast %10 : i32 to index
      %c151 = arith.constant 151 : index
      %139 = vector.load %arg7[%138, %c151] : memref<192x512xbf16, #tpu.memory_space<vmem>>, vector<80x256xbf16>
      %c1_97 = arith.constant 1 : index
      %c21 = arith.constant 21 : index
      %c0_98 = arith.constant 0 : index
      %c0_99 = arith.constant 0 : index
      %140 = vector.load %arg2[%c1_97, %c21, %c0_98, %c0_99] : memref<2x25x16x80xbf16, #tpu.memory_space<vmem>>, vector<1x1x16x80xbf16>
      %141 = vector.shape_cast %140 : vector<1x1x16x80xbf16> to vector<16x80xbf16>
      %cst_100 = arith.constant dense<0.000000e+00> : vector<16x256xf32>
      %142 = tpu.matmul %141, %139, %cst_100 {dimension_numbers = #tpu.dot_dimension_numbers<[1], [0], [0], [1], [0, 0, 1, 1], [], []>} : vector<16x80xbf16>, vector<80x256xbf16>, vector<16x256xf32> -> vector<16x256xf32>
      %143 = arith.addf %137, %142 : vector<16x256xf32>
      %144 = arith.index_cast %10 : i32 to index
      %c152 = arith.constant 152 : index
      %145 = vector.load %arg7[%144, %c152] : memref<192x512xbf16, #tpu.memory_space<vmem>>, vector<80x256xbf16>
      %c1_101 = arith.constant 1 : index
      %c22 = arith.constant 22 : index
      %c0_102 = arith.constant 0 : index
      %c0_103 = arith.constant 0 : index
      %146 = vector.load %arg2[%c1_101, %c22, %c0_102, %c0_103] : memref<2x25x16x80xbf16, #tpu.memory_space<vmem>>, vector<1x1x16x80xbf16>
      %147 = vector.shape_cast %146 : vector<1x1x16x80xbf16> to vector<16x80xbf16>
      %cst_104 = arith.constant dense<0.000000e+00> : vector<16x256xf32>
      %148 = tpu.matmul %147, %145, %cst_104 {dimension_numbers = #tpu.dot_dimension_numbers<[1], [0], [0], [1], [0, 0, 1, 1], [], []>} : vector<16x80xbf16>, vector<80x256xbf16>, vector<16x256xf32> -> vector<16x256xf32>
      %149 = arith.addf %143, %148 : vector<16x256xf32>
      %150 = arith.index_cast %10 : i32 to index
      %c153 = arith.constant 153 : index
      %151 = vector.load %arg7[%150, %c153] : memref<192x512xbf16, #tpu.memory_space<vmem>>, vector<80x256xbf16>
      %c1_105 = arith.constant 1 : index
      %c23 = arith.constant 23 : index
      %c0_106 = arith.constant 0 : index
      %c0_107 = arith.constant 0 : index
      %152 = vector.load %arg2[%c1_105, %c23, %c0_106, %c0_107] : memref<2x25x16x80xbf16, #tpu.memory_space<vmem>>, vector<1x1x16x80xbf16>
      %153 = vector.shape_cast %152 : vector<1x1x16x80xbf16> to vector<16x80xbf16>
      %cst_108 = arith.constant dense<0.000000e+00> : vector<16x256xf32>
      %154 = tpu.matmul %153, %151, %cst_108 {dimension_numbers = #tpu.dot_dimension_numbers<[1], [0], [0], [1], [0, 0, 1, 1], [], []>} : vector<16x80xbf16>, vector<80x256xbf16>, vector<16x256xf32> -> vector<16x256xf32>
      %155 = arith.addf %149, %154 : vector<16x256xf32>
      %156 = arith.index_cast %10 : i32 to index
      %c154 = arith.constant 154 : index
      %157 = vector.load %arg7[%156, %c154] : memref<192x512xbf16, #tpu.memory_space<vmem>>, vector<80x256xbf16>
      %c1_109 = arith.constant 1 : index
      %c24 = arith.constant 24 : index
      %c0_110 = arith.constant 0 : index
      %c0_111 = arith.constant 0 : index
      %158 = vector.load %arg2[%c1_109, %c24, %c0_110, %c0_111] : memref<2x25x16x80xbf16, #tpu.memory_space<vmem>>, vector<1x1x16x80xbf16>
      %159 = vector.shape_cast %158 : vector<1x1x16x80xbf16> to vector<16x80xbf16>
      %cst_112 = arith.constant dense<0.000000e+00> : vector<16x256xf32>
      %160 = tpu.matmul %159, %157, %cst_112 {dimension_numbers = #tpu.dot_dimension_numbers<[1], [0], [0], [1], [0, 0, 1, 1], [], []>} : vector<16x80xbf16>, vector<80x256xbf16>, vector<16x256xf32> -> vector<16x256xf32>
      %161 = arith.addf %155, %160 : vector<16x256xf32>
      %c1_113 = arith.constant 1 : index
      %c0_114 = arith.constant 0 : index
      %c0_115 = arith.constant 0 : index
      %162 = vector.load %arg3[%c1_113, %c0_114, %c0_115] : memref<2x16x1xf32, #tpu.memory_space<vmem>>, vector<1x16x1xf32>
      %163 = vector.shape_cast %162 : vector<1x16x1xf32> to vector<16x1xf32>
      %164 = vector.broadcast %163 : vector<16x1xf32> to vector<16x256xf32>
      %165 = arith.addf %161, %164 : vector<16x256xf32>
      %cst_116 = arith.constant 0.000000e+00 : f32
      %166 = vector.broadcast %cst_116 : f32 to vector<16x256xf32>
      %167 = arith.cmpf ogt, %165, %166 : vector<16x256xf32>
      %168 = vector.broadcast %7 : f32 to vector<16x256xf32>
      %169 = arith.mulf %168, %165 : vector<16x256xf32>
      %170 = arith.select %167, %165, %169 : vector<16x256xi1>, vector<16x256xf32>
      %cst_117 = arith.constant 0.000000e+00 : f32
      %171 = vector.broadcast %cst_117 : f32 to vector<16x256xf32>
      %172 = arith.select %2, %170, %171 : vector<16x256xi1>, vector<16x256xf32>
      %c16_i32_118 = arith.constant 16 : i32
      %173 = arith.muli %arg9, %c16_i32_118 : i32
      %174 = tpu.assume_multiple %173, 16 : i32
      %175 = arith.truncf %172 : vector<16x256xf32> to vector<16x256xbf16>
      %c0_119 = arith.constant 0 : index
      %176 = arith.index_cast %174 : i32 to index
      %c0_120 = arith.constant 0 : index
      %177 = vector.load %arg6[%c0_119, %176, %c0_120] : memref<1x128x256xbf16, #tpu.memory_space<vmem>>, vector<1x16x256xbf16>
      %178 = vector.shape_cast %177 : vector<1x16x256xbf16> to vector<16x256xbf16>
      %179 = vector.shape_cast %175 : vector<16x256xbf16> to vector<1x16x256xbf16>
      tpu.vector_store %arg6[%c0_119, %176, %c0_120], %179 {strides = array<i32>} : memref<1x128x256xbf16, #tpu.memory_space<vmem>>, vector<1x16x256xbf16>,
    }
    %c8_i32_9 = arith.constant 8 : i32
    return
  }
  func.func @transform_0(%arg0: i32) -> (i32, i32, i32) {
    %c0_i32 = arith.constant 0 : i32
    %c0_i32_0 = arith.constant 0 : i32
    %c0_i32_1 = arith.constant 0 : i32
    return %arg0, %c0_i32, %c0_i32_0 : i32, i32, i32
  }
  func.func @transform_1(%arg0: i32) -> (i32, i32, i32, i32) {
    %c0_i32 = arith.constant 0 : i32
    %c0_i32_0 = arith.constant 0 : i32
    %c0_i32_1 = arith.constant 0 : i32
    %c0_i32_2 = arith.constant 0 : i32
    %c0_i32_3 = arith.constant 0 : i32
    return %c0_i32, %c0_i32_0, %c0_i32_1, %c0_i32_2 : i32, i32, i32, i32
  }
  func.func @transform_2(%arg0: i32) -> (i32, i32, i32) {
    %c0_i32 = arith.constant 0 : i32
    %c0_i32_0 = arith.constant 0 : i32
    %c0_i32_1 = arith.constant 0 : i32
    %c0_i32_2 = arith.constant 0 : i32
    return %c0_i32, %c0_i32_0, %c0_i32_1 : i32, i32, i32
  }
  func.func @transform_3(%arg0: i32) -> (i32, i32) {
    %c0_i32 = arith.constant 0 : i32
    %c0_i32_0 = arith.constant 0 : i32
    %c0_i32_1 = arith.constant 0 : i32
    return %c0_i32, %c0_i32_0 : i32, i32
  }
  func.func @transform_4(%arg0: i32) -> i32 {
    %c0_i32 = arith.constant 0 : i32
    %c0_i32_0 = arith.constant 0 : i32
    return %c0_i32 : i32
  }
  func.func @transform_5(%arg0: i32) -> (i32, i32, i32) {
    %c0_i32 = arith.constant 0 : i32
    %c0_i32_0 = arith.constant 0 : i32
    %c0_i32_1 = arith.constant 0 : i32
    return %arg0, %c0_i32, %c0_i32_0 : i32, i32, i32
  }
}

</mosaic_0001>

<bundles_post_ra>
// kernel: tpu_custom_call.1
= control target key start
LH: loop header
LB: loop body
LE: loop exit
PB: predicated region body
PF: predicated region fallthrough
CT: control target
= control target key end

     0   :  { %10 = vsyncpa [#allocation5], 0  ;;  %s9714_s0 = inlined_call_operand.hbm [shape: bf16[2,192,512], index: 0, kind: input, shape index: {}]   ;;  %s9715_s1 = inlined_call_operand.hbm [shape: bf16[2,25,16,80], index: 1, kind: input, shape index: {}]   ;;  %s9716_s2 = inlined_call_operand.vmem [shape: f32[2,16,1], index: 2, kind: input, shape index: {}]   ;;  %s9717_s3 = inlined_call_operand.vmem [shape: f32[16,256], index: 3, kind: input, shape index: {}]   ;;  %s9718_s4 = inlined_call_operand.vmem [shape: f32[2], index: 4, kind: input, shape index: {}]   ;;  %s9719_s5 = inlined_call_operand.hbm [shape: bf16[2,128,256], index: 5, kind: output, shape index: {}]  }
   0x1   :  { %12 = vsyncpa [#allocation5 + $0x1], 0 }
   0x2   :  { %13 = vsyncpa [#allocation9], 0 }
   0x3   :  { %14 = vsyncpa [#allocation7], 0 }
   0x4   :  { %15 = vsyncpa [#allocation6], 0 }
   0x5   :  { %17 = vsyncpa [#allocation6 + $0x1], 0  ;;  %s7141_s18 = smov 0   ;;  %s7143_s19 = smov 0  }
   0x6   :  { %s7145_s20 = smov 0   ;;  %s7147_s21 = smov 0  }
   0x7 LB: > { %s7162_s22 = sadd.s32 4294967295, %s7040_s21   ;;  %s6202_s23 = sadd.s32 4294967294, %s7040_s21   ;;  %s7040_s21 = sphi %s7147_s21, %s9897_s21   ;;  %s7036_s20 = sphi %s7145_s20, %s9896_s20   ;;  %s7032_s19 = sphi %s7143_s19, %s9895_s19   ;;  %s7028_s18 = sphi %s7141_s18, %s9894_s18  }
   0x8   : > { %p43_p0 = scmp.ne.s32.totalorder %s7032_s19, %s7028_s18  ;;  %p9720_p1 = scmp.eq.s32.totalorder %s7162_s22, 0 }
   0x9   : > { %p157_p3 = scmp.eq.s32.totalorder %s6202_s23, 1  ;;  %p6203_p5 = scmp.ge.s32.totalorder %s7040_s21, 1 }
   0xa   : > { %p7171_p4 = por %p9720_p1, %p43_p0  ;;  %p164_p7 = scmp.lt.s32.totalorder %s7040_s21, 3 }
   0xb   : > { %p7176_p6 = por %p157_p3, %p43_p0  ;;  %s7050_s27 = smov [#allocation8]  }
   0xc   : > { %s9742_s24 = scalar_select %p7171_p4, 1, 0 }
   0xd   : > { %s9743_s25 = scalar_select %p7176_p6, 1, 0 }
   0xe   : > { %p7181_p8 = pnand %p6203_p5, %p164_p7  ;;  %s176_s28 = sshll.u32 %s7050_s27, 4  ;;  %s177_s28 = int_to_ptr.vmem [resolvable:$true] %s176_s28 }
   0xf   : > { %s196_s6 = sshll.u32 %s9718_s4, 4  ;;  %s6885_s10 = scalar_lea.hbm %s9715_s1, 6400  ;;  %s7197_s6 = int_to_ptr.vmem [resolvable:$true] %s196_s6 }
  0x10   : > { %s9744_s26 = scalar_select %p7181_p8, 1, 0 }
  0x11   : > { %p6589_p9 = pneg %p7181_p8  ;;  %p6886_p12 = scmp.ne.s32.totalorder %s9715_s1, %s6885_s10 }
  0x12   : > { %p6892_p5 = scmp.lt.u32.totalorder %s6885_s10, %s9715_s1 }
  0x13   : > { %p7193_p11 = pnand %p6589_p9, %p9720_p1 }
  0x15   : > { %p6887_p13 = pneg %p7193_p11 }
  0x17   : > { %p6888_p0 = pnand %p6887_p13, %p6886_p12 }
  0x19   : > { %p6889_p3 = pneg %p6888_p0 }
  0x1b   : > { %p6894_p7 = pnand %p6892_p5, %p6889_p3 }
  0x1d   : > { %6897 = shalt.err (!%p6894_p7)
}
  0x1e   : > { %s6898_s15 = scalar_lea.vmem %s177_s28, 6400  ;;  %p6906_p2 = scmp.lt.s32.totalorder %s177_s28, %s177_s28 }
  0x1f   : > { %p6899_p9 = scmp.ne.s32.totalorder %s177_s28, %s6898_s15  ;;  %p6907_p6 = scmp.lt.s32.totalorder %s6898_s15, %s6898_s15 }
  0x21   : > { %p6901_p10 = pnand %p6899_p9, %p6887_p13  ;;  %p6908_p4 = por %p6907_p6, %p6906_p2 }
  0x23   : > { %p6902_p1 = pneg %p6901_p10 }
  0x25   : > { %p6909_p8 = pnand %p6908_p4, %p6902_p1 }
  0x27   : > { %6912 = shalt.err (!%p6909_p8)
}
  0x28   : > { %s7051_s16 = smov 64   ;;  %s7052_s17 = smov 4  }
  0x29   : > { %6592 = dma.hbm_to_vmem [thread:$0]  (!%p7193_p11), %s9715_s1, 6400, %s177_s28, [#allocation9], %s7051_s16, %s7051_s16, %s7052_s17  }
  0x2a   : > { %s6913_s29 = scalar_lea.vmem %s7197_s6, 16  ;;  %p6921_p1 = scmp.lt.s32.totalorder %s7197_s6, %s7197_s6 }
  0x2b   : > { %p6914_p12 = scmp.ne.s32.totalorder %s7197_s6, %s6913_s29  ;;  %p6922_p4 = scmp.lt.s32.totalorder %s6913_s29, %s6913_s29 }
  0x2d   : > { %p6916_p10 = pnand %p6914_p12, %p6887_p13  ;;  %p6923_p6 = por %p6922_p4, %p6921_p1 }
  0x2f   : > { %p6917_p2 = pneg %p6916_p10 }
  0x31   : > { %p6924_p8 = pnand %p6923_p6, %p6917_p2 }
  0x33   : > { %6927 = shalt.err (!%p6924_p8)
}
  0x34   : > { %s7053_s30 = smov [#allocation10]   ;;  %s7232_s28 = sadd.s32 1, %s7040_s21  }
  0x35   : > { %6595 = dma.vmem_to_smem (!%p7193_p11), %s7197_s6, 16, %s7053_s30, [#allocation7]  }
  0x36   : > { %s30_s8 = sadd.s32 1, %s7036_s20  ;;  %s27_s9 = ssub.s32 %s7040_s21, %s7232_s28 }
  0x37   : > { %p37_p13 = scmp.ne.s32.totalorder %s7036_s20, %s7032_s19  ;;  %p28_p0 = scmp.eq.s32.totalorder %s27_s9, 0 }
  0x38   : > { %p38_p3 = scmp.eq.s32.totalorder %s7040_s21, 0  ;;  %p9746_p5 = scmp.eq.s32.totalorder %s7162_s22, 1 }
  0x39   : > { %p6606_p9 = scmp.lt.s32.totalorder %s7040_s21, 2  ;;  %s207_s11 = sand.u32 1, %s7036_s20  }
  0x3a   : > { %p7242_p7 = por %p9746_p5, %p37_p13  ;;  %p39_p12 = por %p38_p3, %p37_p13 }
  0x3b   : > { %s7248_s10 = scalar_select %p28_p0, %s7036_s20, %s30_s8  }
  0x3c   : > { %s6574_s12 = smul.u32 384, %s207_s11  ;;  %p7252_p11 = pnand %p6606_p9, %p39_p12 }
  0x3d   : > { %s6575_s6 = smul.u32 6144, %s7040_s21  ;;  %s7263_s27 = scalar_lea.sflag [#allocation5], %s207_s11 }
  0x3e   : > { %s211_s17 = scalar_lea.vmem [#allocation4], %s6574_s12  ;;  %p6930_p2 = pneg %p7252_p11 }
  0x3f   : > { %s7259_s16 = scalar_lea.hbm %s9714_s0, %s6575_s6  ;;  %s218_s23 = sshll.u32 %s211_s17, 4  ;;  %s7261_s23 = int_to_ptr.vmem [resolvable:$true] %s218_s23 }
  0x40   : > { %s6928_s29 = scalar_lea.hbm %s7259_s16, 6144  ;;  %s6933_s9 = scalar_lea.hbm %s9714_s0, 12288 }
  0x41   : > { %p6929_p10 = scmp.ne.s32.totalorder %s7259_s16, %s6928_s29  ;;  %p6934_p6 = scmp.lt.u32.totalorder %s7259_s16, %s9714_s0 }
  0x42   : > { %p6935_p8 = scmp.lt.u32.totalorder %s6933_s9, %s6928_s29  ;;  %p6937_p0 = scmp.lt.u32.totalorder %s6928_s29, %s7259_s16 }
  0x43   : > { %p6931_p1 = pnand %p6930_p2, %p6929_p10 }
  0x44   : > { %p6936_p13 = por %p6935_p8, %p6934_p6 }
  0x45   : > { %p6932_p4 = pneg %p6931_p1 }
  0x46   : > { %p6938_p3 = por %p6937_p0, %p6936_p13 }
  0x48   : > { %p6939_p5 = pnand %p6938_p3, %p6932_p4 }
  0x4a   : > { %6942 = shalt.err (!%p6939_p5)
}
  0x4b   : > { %s6943_s11 = scalar_lea.vmem %s7261_s23, 6144  ;;  %s7054_s12 = smov [#allocation4]  }
  0x4c   : > { %p6944_p9 = scmp.ne.s32.totalorder %s7261_s23, %s6943_s11  ;;  %s6948_s15 = sshll.u32 %s7054_s12, 4  ;;  %s6949_s15 = int_to_ptr.vmem [resolvable:$false] %s6948_s15 }
  0x4d   : > { %s6950_s17 = scalar_lea.vmem %s6949_s15, 12288  ;;  %p6951_p1 = scmp.lt.s32.totalorder %s7261_s23, %s6949_s15 }
  0x4e   : > { %p6946_p12 = pnand %p6944_p9, %p6930_p2  ;;  %p6952_p6 = scmp.lt.s32.totalorder %s6950_s17, %s6943_s11 }
  0x50   : > { %p6947_p10 = pneg %p6946_p12  ;;  %p6953_p8 = por %p6952_p6, %p6951_p1 }
  0x52   : > { %p6954_p13 = pnand %p6953_p8, %p6947_p10 }
  0x54   : > { %6957 = shalt.err (!%p6954_p13)
}
  0x55   : > { %s7055_s29 = smov 256   ;;  %s7056_s30 = smov 16  }
  0x56   : > { %6599 = dma.hbm_to_vmem [thread:$0]  (!%p7252_p11), %s7259_s16, 6144, %s7261_s23, %s7263_s27, %s7055_s29, %s7055_s29, %s7056_s30  }
  0x57   : > { %p9749_p2 = scmp.ne.s32.totalorder %s9744_s26, 0 }
  0x58   : > { %s7294_s8 = sand.u32 (!%p9749_p2), 1, %s7032_s19   ;;  %p9750_p4 = scmp.ne.s32.totalorder (!%p9749_p2), %s9742_s24, 0 }
  0x59   : > { %230 = sbr.rel (%p9749_p2) target bundleno = 2280 (0x8e8), region = 40  ;;  %s233_s6 = scalar_lea.sflag (!%p9749_p2), [#allocation5], %s7294_s8 }
  0x5a   : > { %s6576_s9 = smul.u32 (!%p9749_p2), 384, %s7294_s8 }
  0x5c   : > { %s7298_s14 = scalar_lea.vmem (!%p9749_p2), [#allocation4], %s6576_s9 }
  0x60   : > { %7011 = dma.done.wait (%p9750_p4), %s233_s6, 6144  }
  0x61   : > { %7013 = vsyncadd (%p9750_p4), %s233_s6, 4294961152  ;;  %p9751_p11 = scmp.eq.s32.totalorder %s7162_s22, 0 }
  0x63   : > { %7015 = dma.done.wait (%p9751_p11), [#allocation9], 6400   ;;  %p9752_p0 = pmov %p9751_p11 }
  0x65   : > { %7017 = vsyncadd (%p9752_p0), [#allocation9], 4294960896  ;;  %p9753_p3 = pmov %p9752_p0 }
  0x66   : > { %p9754_p5 = pmov %p9752_p0 }
  0x67   : > { %7019 = dma.done.wait (%p9753_p3), [#allocation7], 16  }
  0x68   : > { %7021 = vsyncadd (%p9754_p5), [#allocation7], 4294967280 }
  0x69   : > { %249 = sfence }
  0x6a   : > { %s6211_s26 = sshll.u32 %s7294_s8, 7  ;;  %v7316_v0 = vld [vmem:[%s9717_s3] sm:$0xff]  ;;  %v7321_v1 = vld [vmem:[%s9717_s3 + $0x8] sm:$0xff]  ;;  %v7326_v2 = vld [vmem:[%s9717_s3 + $0x10] sm:$0xff]  ;;  %v7057_v4 = vmov 0   ;;  %s7337_s17 = sld [smem:[#allocation10]] }
  0x6b   : > { %v7331_v3 = vld [vmem:[%s9717_s3 + $0x18] sm:$0xff]  ;;  %vm277_vm0 = vcmp.gt.f32.partialorder %v7316_v0, 0.5  ;;  %vm278_vm1 = vcmp.gt.f32.partialorder %v7321_v1, 0.5  ;;  %vm279_vm2 = vcmp.gt.f32.partialorder %v7326_v2, 0.5  ;;  %281 = vst [vmem:[#allocation2] sm:$0xff] %v7057_v4  ;;  %282 = vst [vmem:[#allocation2 + $0x8] sm:$0xff] %v7057_v4 }
  0x6c   : > { %283 = vst [vmem:[#allocation2 + $0x10] sm:$0xff] %v7057_v4  ;;  %284 = vst [vmem:[#allocation2 + $0x18] sm:$0xff] %v7057_v4  ;;  %vm280_vm3 = vcmp.gt.f32.partialorder %v7331_v3, 0.5  ;;  %s7341_s29 = scalar_lea.vmem [#allocation11], %s6211_s26  ;;  %s7343_s30 = smov 0  }
  0x6d   : > { %285 = vst [vmem:[#allocation2 + $0x20] sm:$0xff] %v7057_v4  ;;  %286 = vst [vmem:[#allocation2 + $0x28] sm:$0xff] %v7057_v4 }
  0x6e   : > { %287 = vst [vmem:[#allocation2 + $0x30] sm:$0xff] %v7057_v4  ;;  %288 = vst [vmem:[#allocation2 + $0x38] sm:$0xff] %v7057_v4 }
  0x6f   : > { %289 = vst [vmem:[#allocation2 + $0x40] sm:$0xff] %v7057_v4  ;;  %290 = vst [vmem:[#allocation2 + $0x48] sm:$0xff] %v7057_v4 }
  0x70   : > { %291 = vst [vmem:[#allocation2 + $0x50] sm:$0xff] %v7057_v4  ;;  %292 = vst [vmem:[#allocation2 + $0x58] sm:$0xff] %v7057_v4 }
  0x71   : > { %293 = vst [vmem:[#allocation2 + $0x60] sm:$0xff] %v7057_v4  ;;  %294 = vst [vmem:[#allocation2 + $0x68] sm:$0xff] %v7057_v4 }
  0x72   : > { %295 = vst [vmem:[#allocation2 + $0x70] sm:$0xff] %v7057_v4  ;;  %296 = vst [vmem:[#allocation2 + $0x78] sm:$0xff] %v7057_v4 }
  0x73   : > { %297 = vst [vmem:[#allocation2 + $0x80] sm:$0xff] %v7057_v4  ;;  %298 = vst [vmem:[#allocation2 + $0x88] sm:$0xff] %v7057_v4 }
  0x74   : > { %299 = vst [vmem:[#allocation2 + $0x90] sm:$0xff] %v7057_v4  ;;  %300 = vst [vmem:[#allocation2 + $0x98] sm:$0xff] %v7057_v4 }
  0x75   : > { %301 = vst [vmem:[#allocation2 + $0xa0] sm:$0xff] %v7057_v4  ;;  %302 = vst [vmem:[#allocation2 + $0xa8] sm:$0xff] %v7057_v4 }
  0x76   : > { %303 = vst [vmem:[#allocation2 + $0xb0] sm:$0xff] %v7057_v4  ;;  %304 = vst [vmem:[#allocation2 + $0xb8] sm:$0xff] %v7057_v4 }
  0x77   : > { %305 = vst [vmem:[#allocation2 + $0xc0] sm:$0xff] %v7057_v4  ;;  %306 = vst [vmem:[#allocation2 + $0xc8] sm:$0xff] %v7057_v4 }
  0x78   : > { %307 = vst [vmem:[#allocation2 + $0xd0] sm:$0xff] %v7057_v4  ;;  %308 = vst [vmem:[#allocation2 + $0xd8] sm:$0xff] %v7057_v4 }
  0x79   : > { %309 = vst [vmem:[#allocation2 + $0xe0] sm:$0xff] %v7057_v4  ;;  %310 = vst [vmem:[#allocation2 + $0xe8] sm:$0xff] %v7057_v4 }
  0x7a   : > { %311 = vst [vmem:[#allocation2 + $0xf0] sm:$0xff] %v7057_v4  ;;  %312 = vst [vmem:[#allocation2 + $0xf8] sm:$0xff] %v7057_v4 }
  0x7b   : > { %313 = vst [vmem:[#allocation2 + $0x100] sm:$0xff] %v7057_v4  ;;  %314 = vst [vmem:[#allocation2 + $0x108] sm:$0xff] %v7057_v4 }
  0x7c   : > { %315 = vst [vmem:[#allocation2 + $0x110] sm:$0xff] %v7057_v4  ;;  %316 = vst [vmem:[#allocation2 + $0x118] sm:$0xff] %v7057_v4 }
  0x7d   : > { %317 = vst [vmem:[#allocation2 + $0x120] sm:$0xff] %v7057_v4  ;;  %318 = vst [vmem:[#allocation2 + $0x128] sm:$0xff] %v7057_v4 }
  0x7e   : > { %319 = vst [vmem:[#allocation2 + $0x130] sm:$0xff] %v7057_v4  ;;  %320 = vst [vmem:[#allocation2 + $0x138] sm:$0xff] %v7057_v4 }
  0x7f   : > { %321 = vst [vmem:[#allocation2 + $0x140] sm:$0xff] %v7057_v4  ;;  %322 = vst [vmem:[#allocation2 + $0x148] sm:$0xff] %v7057_v4 }
  0x80   : > { %323 = vst [vmem:[#allocation2 + $0x150] sm:$0xff] %v7057_v4  ;;  %324 = vst [vmem:[#allocation2 + $0x158] sm:$0xff] %v7057_v4 }
  0x81   : > { %325 = vst [vmem:[#allocation2 + $0x160] sm:$0xff] %v7057_v4  ;;  %326 = vst [vmem:[#allocation2 + $0x168] sm:$0xff] %v7057_v4 }
  0x82   : > { %327 = vst [vmem:[#allocation2 + $0x170] sm:$0xff] %v7057_v4  ;;  %328 = vst [vmem:[#allocation2 + $0x178] sm:$0xff] %v7057_v4 }
  0x83 LB: >> { %s6212_s9 = sshll.u32 %s7044_s30, 4  ;;  %s7058_s26 = smov 25   ;;  %v7059_v18 = vmov 0   ;;  %vm9740_vm4 = vcmask 203776   ;;  %vm9741_vm5 = vcmask 211968   ;;  %v6739_v58 = vld [vmem:[#allocation8 + $0x8] sm:$0xff]   ;;  %s7044_s30 = sphi %s7343_s30, %s335_s30  }
  0x84   : >> { %s337_s6 = sshra.s32 %s6212_s9, 3  ;;  %524 = vmatprep.mubr.bf16.mxu1 %v7059_v18  ;;  %1830 = vmatprep.mubr.bf16.mxu0 %v7059_v18  ;;  %s7060_s24 = smov 26   ;;  %vm488_vm6 = vcmask 654336   ;;  %vm675_vm7 = vcmask 195584   ;;  %vm784_vm8 = vcmask 187392   ;;  %vm893_vm9 = vcmask 179200  }
  0x85   : >> { %s6373_s13 = sshll.u32 %s337_s6, 4  ;;  %6717 = vset.pattern.permute.xlu0 %v7059_v18  ;;  %6718 = vset.pattern.permute.xlu1 %v7059_v18  ;;  %s7061_s23 = smov 24   ;;  %vm1002_vm10 = vcmask 113664   ;;  %vm1111_vm11 = vcmask 105472   ;;  %vm9739_vm12 = vcmask 1039360   ;;  %vm9728_vm13 = vcmask 1031168  }
  0x86   : >> { %s7352_s16 = scalar_lea.vmem %s7298_s14, %s6373_s13 [#allocation4]  ;;  %s7062_s27 = smov 23   ;;  %vm9723_vm14 = vcmask 965632   ;;  %vm9724_vm15 = vcmask 957440  }
  0x87   : >> { %v7355_v5 = vld [vmem:[%s7352_s16 + $0x8] ss:$16 sps:$4 sm:$0xff]   ;;  %v7358_v6 = vld [vmem:[%s7352_s16] ss:$16 sps:$4 sm:$0xff]   ;;  %v7368_v8 = vld [vmem:[%s7352_s16 + $0x4] ss:$16 sps:$4 sm:$0xff]  }
  0x88   : >> { %441 = vrot.lane.b32.xlu1 %v7355_v5, %s7058_s26  ;;  %v7363_v7 = vld [vmem:[%s7352_s16 + $0x20] ss:$16 sps:$4 sm:$0xff]   ;;  %437 = vrot.lane.b32.xlu0 %v7358_v6, %s7058_s26  ;;  %v7373_v9 = vld [vmem:[%s7352_s16 + $0x28] ss:$16 sps:$4 sm:$0xff]   ;;  %s7063_s11 = smov 22   ;;  %s7064_s12 = smov 14  }
  0x89   : >> { %v7378_v10 = vld [vmem:[%s7352_s16 + $0x24] ss:$16 sps:$4 sm:$0xff]   ;;  %v7388_v12 = vld [vmem:[%s7352_s16 + $0x40] ss:$16 sps:$4 sm:$0xff]   ;;  %v7394_v14 = vld [vmem:[%s7352_s16 + $0x48] ss:$16 sps:$4 sm:$0xff]  }
  0x8a   : >> { %v7383_v11 = vld [vmem:[%s7352_s16 + $0x44] ss:$16 sps:$4 sm:$0xff]   ;;  %v7391_v13 = vld [vmem:[%s7352_s16 + $0x60] ss:$16 sps:$4 sm:$0xff]   ;;  %v7401_v15 = vld [vmem:[%s7352_s16 + $0x68] ss:$16 sps:$4 sm:$0xff]  }
  0x8b   : >> { %v7404_v16 = vld [vmem:[%s7352_s16 + $0x64] ss:$16 sps:$4 sm:$0xff]   ;;  %v7419_v19 = vld [vmem:[%s7352_s16 + $0x80] ss:$16 sps:$4 sm:$0xff]   ;;  %v7425_v20 = vld [vmem:[%s7352_s16 + $0x88] ss:$16 sps:$4 sm:$0xff]  }
  0x8c   : >> { %443 = vrot.lane.b32.xlu1 %v7363_v7, %s7058_s26  ;;  %439 = vrot.lane.b32.xlu0 %v7368_v8, %s7058_s26  ;;  %v7413_v17 = vld [vmem:[%s7352_s16 + $0x84] ss:$16 sps:$4 sm:$0xff]   ;;  %v7458_v21 = vld [vmem:[%s7352_s16 + $0x8] ss:$16 sps:$4 sm:$0xff]   ;;  %s7065_s15 = smov 13   ;;  %s7066_s6 = smov 127  }
  0x8d   : >> { %1798 = vmatprep.subr.bf16.mxu0 %v7458_v21  ;;  %v7464_v22 = vld [vmem:[%s7352_s16 + $0x4] ss:$16 sps:$4 sm:$0xff]   ;;  %v7468_v23 = vld [vmem:[%s7352_s16 + $0x28] ss:$16 sps:$4 sm:$0xff]   ;;  %s7067_s13 = smov 126   ;;  %s335_s30 = sadd.s32 1, %s7044_s30  }
  0x8e   : >> { %1799 = vmatpush1.bf16.msra.mxu0 %v7464_v22  ;;  %v7474_v24 = vld [vmem:[%s7352_s16 + $0x24] ss:$16 sps:$4 sm:$0xff]   ;;  %v7480_v25 = vld [vmem:[%s7352_s16 + $0x48] ss:$16 sps:$4 sm:$0xff]   ;;  %p332_p9 = scmp.ge.s32.totalorder %s335_s30, 8  }
  0x8f   : >> { %1800 = vmatprep.subr.bf16.mxu0 %v7468_v23  ;;  %v7486_v26 = vld [vmem:[%s7352_s16 + $0x44] ss:$16 sps:$4 sm:$0xff]   ;;  %v7490_v27 = vld [vmem:[%s7352_s16 + $0x68] ss:$16 sps:$4 sm:$0xff]  }
  0x90   : >> { %447 = vrot.lane.b32.xlu1 %v7373_v9, %s7058_s26  ;;  %445 = vrot.lane.b32.xlu0 %v7378_v10, %s7058_s26  ;;  %v7496_v28 = vld [vmem:[%s7352_s16 + $0x64] ss:$16 sps:$4 sm:$0xff]   ;;  %v7502_v29 = vld [vmem:[%s7352_s16 + $0x88] ss:$16 sps:$4 sm:$0xff]  }
  0x91   : >> { %v7508_v30 = vld [vmem:[%s7352_s16 + $0x84] ss:$16 sps:$4 sm:$0xff]  }
  0x92   : >> { %1801 = vmatpush1.bf16.msra.mxu0 %v7474_v24 }
  0x93   : >> { %1802 = vmatprep.subr.bf16.mxu0 %v7480_v25 }
  0x94   : >> { %451 = vrot.lane.b32.xlu1 %v7383_v11, %s7058_s26  ;;  %449 = vrot.lane.b32.xlu0 %v7388_v12, %s7058_s26 }
  0x96   : >> { %1803 = vmatpush1.bf16.msra.mxu0 %v7486_v26 }
  0x97   : >> { %1804 = vmatprep.subr.bf16.mxu0 %v7490_v27 }
  0x98   : >> { %455 = vrot.lane.b32.xlu1 %v7391_v13, %s7058_s26  ;;  %453 = vrot.lane.b32.xlu0 %v7394_v14, %s7058_s26 }
  0x9a   : >> { %1805 = vmatpush1.bf16.msra.mxu0 %v7496_v28 }
  0x9b   : >> { %1806 = vmatprep.subr.bf16.mxu0 %v7502_v29 }
  0x9c   : >> { %459 = vrot.lane.b32.xlu1 %v7401_v15, %s7058_s26  ;;  %457 = vrot.lane.b32.xlu0 %v7404_v16, %s7058_s26 }
  0x9e   : >> { %1807 = vmatpush1.bf16.msra.mxu0 %v7508_v30 }
  0xa0   : >> { %463 = vrot.lane.b32.xlu1 %v7413_v17, %s7058_s26  ;;  %461 = vrot.lane.b32.xlu0 %v7419_v19, %s7058_s26 }
  0xa4   : >> { %540 = vrot.lane.b32.xlu1 %v7358_v6, %s7060_s24  ;;  %465 = vrot.lane.b32.xlu0 %v7425_v20, %s7058_s26  ;;  %s7068_s26 = smov 118  }
  0xa8   : >> { %544 = vrot.lane.b32.xlu1 %v7355_v5, %s7060_s24  ;;  %542 = vrot.lane.b32.xlu0 %v7368_v8, %s7060_s24 }
  0xac   : >> { %548 = vrot.lane.b32.xlu1 %v7378_v10, %s7060_s24  ;;  %546 = vrot.lane.b32.xlu0 %v7363_v7, %s7060_s24 }
  0xb0   : >> { %552 = vrot.lane.b32.xlu1 %v7388_v12, %s7060_s24  ;;  %550 = vrot.lane.b32.xlu0 %v7373_v9, %s7060_s24 }
  0xb4   : >> { %556 = vrot.lane.b32.xlu1 %v7394_v14, %s7060_s24  ;;  %554 = vrot.lane.b32.xlu0 %v7383_v11, %s7060_s24 }
  0xb8   : >> { %560 = vrot.lane.b32.xlu1 %v7404_v16, %s7060_s24  ;;  %558 = vrot.lane.b32.xlu0 %v7391_v13, %s7060_s24 }
  0xbc   : >> { %564 = vrot.lane.b32.xlu1 %v7419_v19, %s7060_s24  ;;  %562 = vrot.lane.b32.xlu0 %v7401_v15, %s7060_s24 }
  0xc0   : >> { %568 = vrot.lane.b32.xlu1 %v7425_v20, %s7060_s24  ;;  %566 = vrot.lane.b32.xlu0 %v7413_v17, %s7060_s24  ;;  %s7069_s24 = smov 117  }
  0xc4   : >> { %647 = vrot.lane.b32.xlu1 %v7368_v8, %s7061_s23  ;;  %645 = vrot.lane.b32.xlu0 %v7358_v6, %s7061_s23 }
  0xc8   : >> { %651 = vrot.lane.b32.xlu1 %v7363_v7, %s7061_s23  ;;  %649 = vrot.lane.b32.xlu0 %v7355_v5, %s7061_s23 }
  0xcc   : >> { %655 = vrot.lane.b32.xlu1 %v7373_v9, %s7061_s23  ;;  %653 = vrot.lane.b32.xlu0 %v7378_v10, %s7061_s23 }
  0xd0   : >> { %659 = vrot.lane.b32.xlu1 %v7383_v11, %s7061_s23  ;;  %657 = vrot.lane.b32.xlu0 %v7388_v12, %s7061_s23 }
  0xd4   : >> { %663 = vrot.lane.b32.xlu1 %v7391_v13, %s7061_s23  ;;  %661 = vrot.lane.b32.xlu0 %v7394_v14, %s7061_s23 }
  0xd8   : >> { %667 = vrot.lane.b32.xlu1 %v7401_v15, %s7061_s23  ;;  %665 = vrot.lane.b32.xlu0 %v7404_v16, %s7061_s23 }
  0xdc   : >> { %671 = vrot.lane.b32.xlu1 %v7413_v17, %s7061_s23  ;;  %669 = vrot.lane.b32.xlu0 %v7419_v19, %s7061_s23 }
  0xe0   : >> { %754 = vrot.lane.b32.xlu1 %v7358_v6, %s7062_s27  ;;  %673 = vrot.lane.b32.xlu0 %v7425_v20, %s7061_s23  ;;  %s7070_s23 = smov 116  }
  0xe4   : >> { %758 = vrot.lane.b32.xlu1 %v7355_v5, %s7062_s27  ;;  %756 = vrot.lane.b32.xlu0 %v7368_v8, %s7062_s27 }
  0xe8   : >> { %762 = vrot.lane.b32.xlu1 %v7378_v10, %s7062_s27  ;;  %760 = vrot.lane.b32.xlu0 %v7363_v7, %s7062_s27 }
  0xec   : >> { %766 = vrot.lane.b32.xlu1 %v7388_v12, %s7062_s27  ;;  %764 = vrot.lane.b32.xlu0 %v7373_v9, %s7062_s27 }
  0xf0   : >> { %770 = vrot.lane.b32.xlu1 %v7394_v14, %s7062_s27  ;;  %768 = vrot.lane.b32.xlu0 %v7383_v11, %s7062_s27 }
  0xf4   : >> { %774 = vrot.lane.b32.xlu1 %v7404_v16, %s7062_s27  ;;  %772 = vrot.lane.b32.xlu0 %v7391_v13, %s7062_s27 }
  0xf8   : >> { %778 = vrot.lane.b32.xlu1 %v7419_v19, %s7062_s27  ;;  %776 = vrot.lane.b32.xlu0 %v7401_v15, %s7062_s27 }
  0xfa   : >> { %v442_v31 = vpop.permute.xlu1 %441  ;;  %v438_v32 = vpop.permute.xlu0 %437 }
  0xfc   : >> { %782 = vrot.lane.b32.xlu1 %v7425_v20, %s7062_s27  ;;  %780 = vrot.lane.b32.xlu0 %v7413_v17, %s7062_s27  ;;  %s7071_s27 = smov 115  }
  0xfe   : >> { %v444_v33 = vpop.permute.xlu1 %443  ;;  %v440_v34 = vpop.permute.xlu0 %439 }
  0xff   : >> { %v469_v35 = vsel %vm9740_vm4, %v440_v34, %v442_v31  ;;  %v468_v36 = vsel %vm9740_vm4, %v438_v32, %v440_v34 }
 0x100   : >> { %865 = vrot.lane.b32.xlu1 %v7368_v8, %s7063_s11  ;;  %863 = vrot.lane.b32.xlu0 %v7358_v6, %s7063_s11 }
 0x101   : >> { %492 = vmatprep.subr.bf16.mxu1 %v469_v35 }
 0x102   : >> { %493 = vmatpush1.bf16.msra.mxu1 %v468_v36  ;;  %v448_v37 = vpop.permute.xlu1 %447  ;;  %v446_v38 = vpop.permute.xlu0 %445 }
 0x103   : >> { %v471_v39 = vsel %vm9740_vm4, %v446_v38, %v448_v37  ;;  %v470_v40 = vsel %vm9740_vm4, %v444_v33, %v446_v38 }
 0x104   : >> { %869 = vrot.lane.b32.xlu1 %v7363_v7, %s7063_s11  ;;  %867 = vrot.lane.b32.xlu0 %v7355_v5, %s7063_s11 }
 0x105   : >> { %494 = vmatprep.subr.bf16.mxu1 %v471_v39 }
 0x106   : >> { %495 = vmatpush1.bf16.msra.mxu1 %v470_v40  ;;  %v452_v41 = vpop.permute.xlu1 %451  ;;  %v450_v42 = vpop.permute.xlu0 %449 }
 0x107   : >> { %v472_v46 = vsel %vm9740_vm4, %v450_v42, %v452_v41 }
 0x108   : >> { %873 = vrot.lane.b32.xlu1 %v7373_v9, %s7063_s11  ;;  %871 = vrot.lane.b32.xlu0 %v7378_v10, %s7063_s11 }
 0x10a   : >> { %v456_v43 = vpop.permute.xlu1 %455  ;;  %v454_v44 = vpop.permute.xlu0 %453 }
 0x10b   : >> { %v473_v45 = vsel %vm9740_vm4, %v452_v41, %v454_v44 }
 0x10c   : >> { %877 = vrot.lane.b32.xlu1 %v7383_v11, %s7063_s11  ;;  %875 = vrot.lane.b32.xlu0 %v7388_v12, %s7063_s11 }
 0x10d   : >> { %496 = vmatprep.subr.bf16.mxu1 %v473_v45 }
 0x10e   : >> { %497 = vmatpush1.bf16.msra.mxu1 %v472_v46  ;;  %v460_v47 = vpop.permute.xlu1 %459  ;;  %v458_v48 = vpop.permute.xlu0 %457 }
 0x10f   : >> { %v475_v49 = vsel %vm9740_vm4, %v458_v48, %v460_v47  ;;  %v474_v50 = vsel %vm9740_vm4, %v456_v43, %v458_v48  ;;  %v6740_v48 = vld [vmem:[#allocation8] sm:$0xff]  }
 0x110   : >> { %881 = vrot.lane.b32.xlu1 %v7391_v13, %s7063_s11  ;;  %879 = vrot.lane.b32.xlu0 %v7394_v14, %s7063_s11 }
 0x111   : >> { %498 = vmatprep.subr.bf16.mxu1 %v475_v49 }
 0x112   : >> { %499 = vmatpush1.bf16.msra.mxu1 %v474_v50  ;;  %v464_v51 = vpop.permute.xlu1 %463  ;;  %v462_v52 = vpop.permute.xlu0 %461 }
 0x113   : >> { %v476_v56 = vsel %vm9740_vm4, %v462_v52, %v464_v51 }
 0x114   : >> { %885 = vrot.lane.b32.xlu1 %v7401_v15, %s7063_s11  ;;  %883 = vrot.lane.b32.xlu0 %v7404_v16, %s7063_s11 }
 0x116   : >> { %v541_v53 = vpop.permute.xlu1 %540  ;;  %v466_v54 = vpop.permute.xlu0 %465 }
 0x117   : >> { %v477_v55 = vsel %vm9740_vm4, %v464_v51, %v466_v54 }
 0x118   : >> { %889 = vrot.lane.b32.xlu1 %v7413_v17, %s7063_s11  ;;  %887 = vrot.lane.b32.xlu0 %v7419_v19, %s7063_s11 }
 0x119   : >> { %500 = vmatprep.subr.bf16.mxu1 %v477_v55 }
 0x11a   : >> { %501 = vmatpush1.bf16.msra.mxu1 %v476_v56  ;;  %v545_v57 = vpop.permute.xlu1 %544  ;;  %v543_v59 = vpop.permute.xlu0 %542 }
 0x11b   : >> { %v572_v60 = vsel %vm9741_vm5, %v543_v59, %v545_v57  ;;  %v571_v61 = vsel %vm9741_vm5, %v541_v53, %v543_v59 }
 0x11c   : >> { %972 = vrot.lane.b32.xlu1 %v7358_v6, %s7064_s12  ;;  %891 = vrot.lane.b32.xlu0 %v7425_v20, %s7063_s11  ;;  %s7072_s11 = smov 114  }
 0x11d   : >> { %594 = vmatprep.subr.bf16.mxu1 %v572_v60  ;;  %6231 = vmatmul.mubr.msk.bf16.vlgmr.msra.gmra.mrb[0].mxu1 %vm488_vm6, %v6739_v58 }
 0x11e   : >> { %v549_v62 = vpop.permute.xlu1 %548  ;;  %595 = vmatpush1.bf16.msra.mxu1 %v571_v61  ;;  %v547_v63 = vpop.permute.xlu0 %546  ;;  %626 = vmatprep.mubr.bf16.mxu1 %v7059_v18 }
 0x11f   : >> { %v573_v33 = vsel %vm9741_vm5, %v547_v63, %v549_v62 }
 0x120   : >> { %976 = vrot.lane.b32.xlu1 %v7355_v5, %s7064_s12  ;;  %974 = vrot.lane.b32.xlu0 %v7368_v8, %s7064_s12 }
 0x122   : >> { %v553_v4 = vpop.permute.xlu1 %552  ;;  %v551_v31 = vpop.permute.xlu0 %550 }
 0x123   : >> { %v574_v32 = vsel %vm9741_vm5, %v549_v62, %v551_v31 }
 0x124   : >> { %980 = vrot.lane.b32.xlu1 %v7378_v10, %s7064_s12  ;;  %978 = vrot.lane.b32.xlu0 %v7363_v7, %s7064_s12 }
 0x125   : >> { %596 = vmatprep.subr.bf16.mxu1 %v574_v32 }
 0x126   : >> { %597 = vmatpush1.bf16.msra.mxu1 %v573_v33  ;;  %v557_v34 = vpop.permute.xlu1 %556  ;;  %v555_v35 = vpop.permute.xlu0 %554  ;;  %v7652_v33 = vld [vmem:[%s7352_s16 + $0x2c] ss:$16 sps:$4 sm:$0xff]  }
 0x127   : >> { %v576_v36 = vsel %vm9741_vm5, %v555_v35, %v557_v34  ;;  %v575_v37 = vsel %vm9741_vm5, %v553_v4, %v555_v35 }
 0x128   : >> { %984 = vrot.lane.b32.xlu1 %v7388_v12, %s7064_s12  ;;  %982 = vrot.lane.b32.xlu0 %v7373_v9, %s7064_s12 }
 0x129   : >> { %598 = vmatprep.subr.bf16.mxu1 %v576_v36  ;;  %v7659_v36 = vld [vmem:[%s7352_s16 + $0x4c] ss:$16 sps:$4 sm:$0xff]  }
 0x12a   : >> { %599 = vmatpush1.bf16.msra.mxu1 %v575_v37  ;;  %v561_v38 = vpop.permute.xlu1 %560  ;;  %v559_v39 = vpop.permute.xlu0 %558 }
 0x12b   : >> { %v577_v43 = vsel %vm9741_vm5, %v559_v39, %v561_v38 }
 0x12c   : >> { %988 = vrot.lane.b32.xlu1 %v7394_v14, %s7064_s12  ;;  %986 = vrot.lane.b32.xlu0 %v7383_v11, %s7064_s12 }
 0x12e   : >> { %v565_v40 = vpop.permute.xlu1 %564  ;;  %v563_v41 = vpop.permute.xlu0 %562 }
 0x12f   : >> { %v578_v42 = vsel %vm9741_vm5, %v561_v38, %v563_v41 }
 0x130   : >> { %992 = vrot.lane.b32.xlu1 %v7404_v16, %s7064_s12  ;;  %990 = vrot.lane.b32.xlu0 %v7391_v13, %s7064_s12 }
 0x131   : >> { %600 = vmatprep.subr.bf16.mxu1 %v578_v42 }
 0x132   : >> { %601 = vmatpush1.bf16.msra.mxu1 %v577_v43  ;;  %v569_v44 = vpop.permute.xlu1 %568  ;;  %v567_v45 = vpop.permute.xlu0 %566 }
 0x133   : >> { %v580_v46 = vsel %vm9741_vm5, %v567_v45, %v569_v44  ;;  %v579_v47 = vsel %vm9741_vm5, %v565_v40, %v567_v45  ;;  %v7676_v45 = vld [vmem:[%s7352_s16 + $0x6c] ss:$16 sps:$4 sm:$0xff]  }
 0x134   : >> { %996 = vrot.lane.b32.xlu1 %v7419_v19, %s7064_s12  ;;  %994 = vrot.lane.b32.xlu0 %v7401_v15, %s7064_s12 }
 0x135   : >> { %602 = vmatprep.subr.bf16.mxu1 %v580_v46 }
 0x136   : >> { %603 = vmatpush1.bf16.msra.mxu1 %v579_v47  ;;  %v648_v49 = vpop.permute.xlu1 %647  ;;  %v646_v50 = vpop.permute.xlu0 %645 }
 0x137   : >> { %v676_v53 = vsel %vm675_vm7, %v646_v50, %v648_v49 }
 0x138   : >> { %1000 = vrot.lane.b32.xlu1 %v7425_v20, %s7064_s12  ;;  %998 = vrot.lane.b32.xlu0 %v7413_v17, %s7064_s12  ;;  %s7073_s12 = smov 12  }
 0x139   : >> { %6233 = vmatmul.mubr.msk.bf16.vlgmr.msra.gmra.mrb[0].mxu1 %vm488_vm6, %v6740_v48  ;;  %v7681_v48 = vld [vmem:[%s7352_s16 + $0x8c] ss:$16 sps:$4 sm:$0xff]  }
 0x13a   : >> { %v652_v19 = vpop.permute.xlu1 %651  ;;  %731 = vmatprep.mubr.bf16.mxu1 %v7059_v18  ;;  %v650_v51 = vpop.permute.xlu0 %649 }
 0x13b   : >> { %v677_v52 = vsel %vm675_vm7, %v648_v49, %v650_v51 }
 0x13c   : >> { %1083 = vrot.lane.b32.xlu1 %v7368_v8, %s7065_s15  ;;  %1081 = vrot.lane.b32.xlu0 %v7358_v6, %s7065_s15 }
 0x13d   : >> { %699 = vmatprep.subr.bf16.mxu1 %v677_v52 }
 0x13e   : >> { %700 = vmatpush1.bf16.msra.mxu1 %v676_v53  ;;  %v656_v17 = vpop.permute.xlu1 %655  ;;  %v654_v20 = vpop.permute.xlu0 %653 }
 0x13f   : >> { %v679_v54 = vsel %vm675_vm7, %v654_v20, %v656_v17  ;;  %v678_v55 = vsel %vm675_vm7, %v652_v19, %v654_v20 }
 0x140   : >> { %1087 = vrot.lane.b32.xlu1 %v7363_v7, %s7065_s15  ;;  %1085 = vrot.lane.b32.xlu0 %v7355_v5, %s7065_s15 }
 0x141   : >> { %701 = vmatprep.subr.bf16.mxu1 %v679_v54  ;;  %v6762_v54 = vld [vmem:[#allocation8 + $0x18] sm:$0xff]  }
 0x142   : >> { %702 = vmatpush1.bf16.msra.mxu1 %v678_v55  ;;  %v660_v8 = vpop.permute.xlu1 %659  ;;  %v658_v56 = vpop.permute.xlu0 %657 }
 0x143   : >> { %v680_v58 = vsel %vm675_vm7, %v658_v56, %v660_v8 }
 0x144   : >> { %1091 = vrot.lane.b32.xlu1 %v7373_v9, %s7065_s15  ;;  %1089 = vrot.lane.b32.xlu0 %v7378_v10, %s7065_s15 }
 0x146   : >> { %v664_v6 = vpop.permute.xlu1 %663  ;;  %v662_v57 = vpop.permute.xlu0 %661 }
 0x147   : >> { %v681_v7 = vsel %vm675_vm7, %v660_v8, %v662_v57 }
 0x148   : >> { %1095 = vrot.lane.b32.xlu1 %v7383_v11, %s7065_s15  ;;  %1093 = vrot.lane.b32.xlu0 %v7388_v12, %s7065_s15  ;;  %v6765_v11 = vld [vmem:[#allocation8 + $0x60] sm:$0xff]  }
 0x149   : >> { %703 = vmatprep.subr.bf16.mxu1 %v681_v7  ;;  %6265 = vmatmul.mubr.msk.bf16.vlgmr.msra.gmra.mrb[0].mxu0 %vm488_vm6, %v6765_v11 }
 0x14a   : >> { %704 = vmatpush1.bf16.msra.mxu1 %v680_v58  ;;  %v668_v5 = vpop.permute.xlu1 %667  ;;  %v666_v9 = vpop.permute.xlu0 %665  ;;  %2024 = vmatprep.mubr.bf16.mxu0 %v7059_v18 }
 0x14b   : >> { %v683_v10 = vsel %vm675_vm7, %v666_v9, %v668_v5  ;;  %v682_v59 = vsel %vm675_vm7, %v664_v6, %v666_v9 }
 0x14c   : >> { %1099 = vrot.lane.b32.xlu1 %v7391_v13, %s7065_s15  ;;  %1097 = vrot.lane.b32.xlu0 %v7394_v14, %s7065_s15  ;;  %v7635_v13 = vld [vmem:[%s7352_s16 + $0xc] ss:$16 sps:$4 sm:$0xff]  }
 0x14d   : >> { %705 = vmatprep.subr.bf16.mxu1 %v683_v10 }
 0x14e   : >> { %706 = vmatpush1.bf16.msra.mxu1 %v682_v59  ;;  %v672_v60 = vpop.permute.xlu1 %671  ;;  %v670_v12 = vpop.permute.xlu0 %669 }
 0x14f   : >> { %v684_v63 = vsel %vm675_vm7, %v670_v12, %v672_v60 }
 0x150   : >> { %1103 = vrot.lane.b32.xlu1 %v7401_v15, %s7065_s15  ;;  %1101 = vrot.lane.b32.xlu0 %v7404_v16, %s7065_s15  ;;  %v6747_v16 = vld [vmem:[#allocation8 + $0x10] sm:$0xff]  }
 0x152   : >> { %v755_v61 = vpop.permute.xlu1 %754  ;;  %v674_v62 = vpop.permute.xlu0 %673 }
 0x153   : >> { %v685_v14 = vsel %vm675_vm7, %v672_v60, %v674_v62 }
 0x154   : >> { %1942 = vrot.lane.b32.xlu1 %v7635_v13, %s7066_s6  ;;  %1940 = vrot.lane.b32.xlu0 %v7458_v21, %s7066_s6 }
 0x155   : >> { %707 = vmatprep.subr.bf16.mxu1 %v685_v14 }
 0x156   : >> { %708 = vmatpush1.bf16.msra.mxu1 %v684_v63  ;;  %v759_v15 = vpop.permute.xlu1 %758  ;;  %v757_v4 = vpop.permute.xlu0 %756 }
 0x157   : >> { %v786_v31 = vsel %vm784_vm8, %v757_v4, %v759_v15  ;;  %v785_v32 = vsel %vm784_vm8, %v755_v61, %v757_v4 }
 0x158   : >> { %1946 = vrot.lane.b32.xlu1 %v7468_v23, %s7066_s6  ;;  %1938 = vrot.lane.b32.xlu0 %v7464_v22, %s7066_s6 }
 0x159   : >> { %808 = vmatprep.subr.bf16.mxu1 %v786_v31  ;;  %6235 = vmatmul.mubr.msk.bf16.vlgmr.msra.gmra.mrb[0].mxu1 %vm488_vm6, %v6747_v16 }
 0x15a   : >> { %v763_v34 = vpop.permute.xlu1 %762  ;;  %809 = vmatpush1.bf16.msra.mxu1 %v785_v32  ;;  %v761_v35 = vpop.permute.xlu0 %760  ;;  %840 = vmatprep.mubr.bf16.mxu1 %v7059_v18 }
 0x15b   : >> { %v787_v40 = vsel %vm784_vm8, %v761_v35, %v763_v34 }
 0x15c   : >> { %1944 = vrot.lane.b32.xlu1 %v7474_v24, %s7066_s6  ;;  %1948 = vrot.lane.b32.xlu0 %v7652_v33, %s7066_s6 }
 0x15e   : >> { %v767_v37 = vpop.permute.xlu1 %766  ;;  %v765_v38 = vpop.permute.xlu0 %764 }
 0x15f   : >> { %v788_v39 = vsel %vm784_vm8, %v763_v34, %v765_v38 }
 0x160   : >> { %1954 = vrot.lane.b32.xlu1 %v7659_v36, %s7066_s6  ;;  %1952 = vrot.lane.b32.xlu0 %v7480_v25, %s7066_s6 }
 0x161   : >> { %810 = vmatprep.subr.bf16.mxu1 %v788_v39  ;;  %v6763_v39 = vld [vmem:[#allocation8 + $0x20] sm:$0xff]  }
 0x162   : >> { %811 = vmatpush1.bf16.msra.mxu1 %v787_v40  ;;  %v771_v41 = vpop.permute.xlu1 %770  ;;  %v769_v42 = vpop.permute.xlu0 %768 }
 0x163   : >> { %v790_v43 = vsel %vm784_vm8, %v769_v42, %v771_v41  ;;  %v789_v44 = vsel %vm784_vm8, %v767_v37, %v769_v42 }
 0x164   : >> { %1958 = vrot.lane.b32.xlu1 %v7490_v27, %s7066_s6  ;;  %1950 = vrot.lane.b32.xlu0 %v7486_v26, %s7066_s6 }
 0x165   : >> { %812 = vmatprep.subr.bf16.mxu1 %v790_v43 }
 0x166   : >> { %813 = vmatpush1.bf16.msra.mxu1 %v789_v44  ;;  %v775_v46 = vpop.permute.xlu1 %774  ;;  %v773_v47 = vpop.permute.xlu0 %772 }
 0x167   : >> { %v791_v51 = vsel %vm784_vm8, %v773_v47, %v775_v46 }
 0x168   : >> { %1956 = vrot.lane.b32.xlu1 %v7496_v28, %s7066_s6  ;;  %1960 = vrot.lane.b32.xlu0 %v7676_v45, %s7066_s6 }
 0x16a   : >> { %v779_v49 = vpop.permute.xlu1 %778  ;;  %v777_v50 = vpop.permute.xlu0 %776 }
 0x16b   : >> { %v792_v19 = vsel %vm784_vm8, %v775_v46, %v777_v50 }
 0x16c   : >> { %1966 = vrot.lane.b32.xlu1 %v7681_v48, %s7066_s6  ;;  %1964 = vrot.lane.b32.xlu0 %v7502_v29, %s7066_s6 }
 0x16d   : >> { %814 = vmatprep.subr.bf16.mxu1 %v792_v19 }
 0x16e   : >> { %815 = vmatpush1.bf16.msra.mxu1 %v791_v51  ;;  %v783_v52 = vpop.permute.xlu1 %782  ;;  %v781_v53 = vpop.permute.xlu0 %780 }
 0x16f   : >> { %v794_v17 = vsel %vm784_vm8, %v781_v53, %v783_v52  ;;  %v793_v20 = vsel %vm784_vm8, %v779_v49, %v781_v53 }
 0x170   : >> { %2049 = vrot.lane.b32.xlu1 %v7458_v21, %s7067_s13  ;;  %1962 = vrot.lane.b32.xlu0 %v7508_v30, %s7066_s6  ;;  %s7075_s6 = smov 11  }
 0x171   : >> { %816 = vmatprep.subr.bf16.mxu1 %v794_v17 }
 0x172   : >> { %817 = vmatpush1.bf16.msra.mxu1 %v793_v20  ;;  %v866_v55 = vpop.permute.xlu1 %865  ;;  %v864_v8 = vpop.permute.xlu0 %863 }
 0x173   : >> { %v894_v7 = vsel %vm893_vm9, %v864_v8, %v866_v55 }
 0x174   : >> { %2047 = vrot.lane.b32.xlu1 %v7464_v22, %s7067_s13  ;;  %2051 = vrot.lane.b32.xlu0 %v7635_v13, %s7067_s13 }
 0x175   : >> { %6237 = vmatmul.mubr.msk.bf16.vlgmr.msra.gmra.mrb[0].mxu1 %vm488_vm6, %v6762_v54 }
 0x176   : >> { %v870_v56 = vpop.permute.xlu1 %869  ;;  %949 = vmatprep.mubr.bf16.mxu1 %v7059_v18  ;;  %v868_v6 = vpop.permute.xlu0 %867 }
 0x177   : >> { %v895_v57 = vsel %vm893_vm9, %v866_v55, %v868_v6 }
 0x178   : >> { %2057 = vrot.lane.b32.xlu1 %v7652_v33, %s7067_s13  ;;  %2055 = vrot.lane.b32.xlu0 %v7468_v23, %s7067_s13 }
 0x179   : >> { %917 = vmatprep.subr.bf16.mxu1 %v895_v57 }
 0x17a   : >> { %918 = vmatpush1.bf16.msra.mxu1 %v894_v7  ;;  %v874_v58 = vpop.permute.xlu1 %873  ;;  %v872_v5 = vpop.permute.xlu0 %871 }
 0x17b   : >> { %v897_v9 = vsel %vm893_vm9, %v872_v5, %v874_v58  ;;  %v896_v10 = vsel %vm893_vm9, %v870_v56, %v872_v5  ;;  %v6764_v5 = vld [vmem:[#allocation8 + $0x28] sm:$0xff]  }
 0x17c   : >> { %2061 = vrot.lane.b32.xlu1 %v7480_v25, %s7067_s13  ;;  %2053 = vrot.lane.b32.xlu0 %v7474_v24, %s7067_s13 }
 0x17d   : >> { %919 = vmatprep.subr.bf16.mxu1 %v897_v9 }
 0x17e   : >> { %920 = vmatpush1.bf16.msra.mxu1 %v896_v10  ;;  %v878_v59 = vpop.permute.xlu1 %877  ;;  %v876_v11 = vpop.permute.xlu0 %875 }
 0x17f   : >> { %v898_v62 = vsel %vm893_vm9, %v876_v11, %v878_v59 }
 0x180   : >> { %2059 = vrot.lane.b32.xlu1 %v7486_v26, %s7067_s13  ;;  %2063 = vrot.lane.b32.xlu0 %v7659_v36, %s7067_s13 }
 0x182   : >> { %v882_v60 = vpop.permute.xlu1 %881  ;;  %v880_v12 = vpop.permute.xlu0 %879 }
 0x183   : >> { %v899_v61 = vsel %vm893_vm9, %v878_v59, %v880_v12 }
 0x184   : >> { %2069 = vrot.lane.b32.xlu1 %v7676_v45, %s7067_s13  ;;  %2067 = vrot.lane.b32.xlu0 %v7490_v27, %s7067_s13 }
 0x185   : >> { %921 = vmatprep.subr.bf16.mxu1 %v899_v61 }
 0x186   : >> { %922 = vmatpush1.bf16.msra.mxu1 %v898_v62  ;;  %v886_v14 = vpop.permute.xlu1 %885  ;;  %v884_v63 = vpop.permute.xlu0 %883 }
 0x187   : >> { %v901_v15 = vsel %vm893_vm9, %v884_v63, %v886_v14  ;;  %v900_v16 = vsel %vm893_vm9, %v882_v60, %v884_v63 }
 0x188   : >> { %2073 = vrot.lane.b32.xlu1 %v7502_v29, %s7067_s13  ;;  %2065 = vrot.lane.b32.xlu0 %v7496_v28, %s7067_s13 }
 0x189   : >> { %923 = vmatprep.subr.bf16.mxu1 %v901_v15 }
 0x18a   : >> { %924 = vmatpush1.bf16.msra.mxu1 %v900_v16  ;;  %v890_v4 = vpop.permute.xlu1 %889  ;;  %v888_v31 = vpop.permute.xlu0 %887 }
 0x18b   : >> { %v902_v37 = vsel %vm893_vm9, %v888_v31, %v890_v4 }
 0x18c   : >> { %2071 = vrot.lane.b32.xlu1 %v7508_v30, %s7067_s13  ;;  %2075 = vrot.lane.b32.xlu0 %v7681_v48, %s7067_s13  ;;  %s7076_s13 = smov 105  }
 0x18e   : >> { %v973_v32 = vpop.permute.xlu1 %972  ;;  %v892_v34 = vpop.permute.xlu0 %891 }
 0x18f   : >> { %v903_v35 = vsel %vm893_vm9, %v890_v4, %v892_v34 }
 0x190   : >> { %2160 = vrot.lane.b32.xlu1 %v7635_v13, %s7068_s26  ;;  %2158 = vrot.lane.b32.xlu0 %v7458_v21, %s7068_s26 }
 0x191   : >> { %925 = vmatprep.subr.bf16.mxu1 %v903_v35 }
 0x192   : >> { %926 = vmatpush1.bf16.msra.mxu1 %v902_v37  ;;  %v977_v38 = vpop.permute.xlu1 %976  ;;  %v975_v40 = vpop.permute.xlu0 %974 }
 0x193   : >> { %v1004_v41 = vsel %vm1002_vm10, %v975_v40, %v977_v38  ;;  %v1003_v42 = vsel %vm1002_vm10, %v973_v32, %v975_v40 }
 0x194   : >> { %2164 = vrot.lane.b32.xlu1 %v7468_v23, %s7068_s26  ;;  %2156 = vrot.lane.b32.xlu0 %v7464_v22, %s7068_s26 }
 0x195   : >> { %1026 = vmatprep.subr.bf16.mxu1 %v1004_v41  ;;  %6239 = vmatmul.mubr.msk.bf16.vlgmr.msra.gmra.mrb[0].mxu1 %vm488_vm6, %v6763_v39 }
 0x196   : >> { %v981_v43 = vpop.permute.xlu1 %980  ;;  %1027 = vmatpush1.bf16.msra.mxu1 %v1003_v42  ;;  %v979_v44 = vpop.permute.xlu0 %978  ;;  %1058 = vmatprep.mubr.bf16.mxu1 %v7059_v18 }
 0x197   : >> { %v1005_v50 = vsel %vm1002_vm10, %v979_v44, %v981_v43 }
 0x198   : >> { %2162 = vrot.lane.b32.xlu1 %v7474_v24, %s7068_s26  ;;  %2166 = vrot.lane.b32.xlu0 %v7652_v33, %s7068_s26 }
 0x19a   : >> { %v985_v46 = vpop.permute.xlu1 %984  ;;  %v983_v47 = vpop.permute.xlu0 %982 }
 0x19b   : >> { %v1006_v49 = vsel %vm1002_vm10, %v981_v43, %v983_v47 }
 0x19c   : >> { %2172 = vrot.lane.b32.xlu1 %v7659_v36, %s7068_s26  ;;  %2170 = vrot.lane.b32.xlu0 %v7480_v25, %s7068_s26 }
 0x19d   : >> { %1028 = vmatprep.subr.bf16.mxu1 %v1006_v49 }
 0x19e   : >> { %1029 = vmatpush1.bf16.msra.mxu1 %v1005_v50  ;;  %v989_v19 = vpop.permute.xlu1 %988  ;;  %v987_v51 = vpop.permute.xlu0 %986 }
 0x19f   : >> { %v1008_v52 = vsel %vm1002_vm10, %v987_v51, %v989_v19  ;;  %v1007_v53 = vsel %vm1002_vm10, %v985_v46, %v987_v51 }
 0x1a0   : >> { %2176 = vrot.lane.b32.xlu1 %v7490_v27, %s7068_s26  ;;  %2168 = vrot.lane.b32.xlu0 %v7486_v26, %s7068_s26 }
 0x1a1   : >> { %1030 = vmatprep.subr.bf16.mxu1 %v1008_v52 }
 0x1a2   : >> { %1031 = vmatpush1.bf16.msra.mxu1 %v1007_v53  ;;  %v993_v17 = vpop.permute.xlu1 %992  ;;  %v991_v20 = vpop.permute.xlu0 %990 }
 0x1a3   : >> { %v1009_v56 = vsel %vm1002_vm10, %v991_v20, %v993_v17 }
 0x1a4   : >> { %2174 = vrot.lane.b32.xlu1 %v7496_v28, %s7068_s26  ;;  %2178 = vrot.lane.b32.xlu0 %v7676_v45, %s7068_s26 }
 0x1a6   : >> { %v997_v54 = vpop.permute.xlu1 %996  ;;  %v995_v55 = vpop.permute.xlu0 %994 }
 0x1a7   : >> { %v1010_v8 = vsel %vm1002_vm10, %v993_v17, %v995_v55 }
 0x1a8   : >> { %2184 = vrot.lane.b32.xlu1 %v7681_v48, %s7068_s26  ;;  %2182 = vrot.lane.b32.xlu0 %v7502_v29, %s7068_s26 }
 0x1a9   : >> { %1032 = vmatprep.subr.bf16.mxu1 %v1010_v8 }
 0x1aa   : >> { %1033 = vmatpush1.bf16.msra.mxu1 %v1009_v56  ;;  %v1001_v6 = vpop.permute.xlu1 %1000  ;;  %v999_v57 = vpop.permute.xlu0 %998 }
 0x1ab   : >> { %v1012_v7 = vsel %vm1002_vm10, %v999_v57, %v1001_v6  ;;  %v1011_v58 = vsel %vm1002_vm10, %v997_v54, %v999_v57 }
 0x1ac   : >> { %2267 = vrot.lane.b32.xlu1 %v7458_v21, %s7069_s24  ;;  %2180 = vrot.lane.b32.xlu0 %v7508_v30, %s7068_s26  ;;  %s7077_s26 = smov 10  }
 0x1ad   : >> { %1034 = vmatprep.subr.bf16.mxu1 %v1012_v7 }
 0x1ae   : >> { %1035 = vmatpush1.bf16.msra.mxu1 %v1011_v58  ;;  %v1084_v9 = vpop.permute.xlu1 %1083  ;;  %v1082_v10 = vpop.permute.xlu0 %1081 }
 0x1af   : >> { %v1112_v12 = vsel %vm1111_vm11, %v1082_v10, %v1084_v9 }
 0x1b0   : >> { %2265 = vrot.lane.b32.xlu1 %v7464_v22, %s7069_s24  ;;  %2269 = vrot.lane.b32.xlu0 %v7635_v13, %s7069_s24 }
 0x1b1   : >> { %6241 = vmatmul.mubr.msk.bf16.vlgmr.msra.gmra.mrb[0].mxu1 %vm488_vm6, %v6764_v5 }
 0x1b2   : >> { %v1088_v59 = vpop.permute.xlu1 %1087  ;;  %1167 = vmatprep.mubr.bf16.mxu1 %v7059_v18  ;;  %v1086_v11 = vpop.permute.xlu0 %1085 }
 0x1b3   : >> { %v1113_v60 = vsel %vm1111_vm11, %v1084_v9, %v1086_v11 }
 0x1b4   : >> { %2275 = vrot.lane.b32.xlu1 %v7652_v33, %s7069_s24  ;;  %2273 = vrot.lane.b32.xlu0 %v7468_v23, %s7069_s24 }
 0x1b5   : >> { %1135 = vmatprep.subr.bf16.mxu1 %v1113_v60 }
 0x1b6   : >> { %1136 = vmatpush1.bf16.msra.mxu1 %v1112_v12  ;;  %v1092_v61 = vpop.permute.xlu1 %1091  ;;  %v1090_v62 = vpop.permute.xlu0 %1089 }
 0x1b7   : >> { %v1115_v14 = vsel %vm1111_vm11, %v1090_v62, %v1092_v61  ;;  %v1114_v63 = vsel %vm1111_vm11, %v1088_v59, %v1090_v62  ;;  %v6766_v59 = vld [vmem:[#allocation8 + $0x68] sm:$0xff]  }
 0x1b8   : >> { %2279 = vrot.lane.b32.xlu1 %v7480_v25, %s7069_s24  ;;  %2271 = vrot.lane.b32.xlu0 %v7474_v24, %s7069_s24 }
 0x1b9   : >> { %1137 = vmatprep.subr.bf16.mxu1 %v1115_v14 }
 0x1ba   : >> { %1138 = vmatpush1.bf16.msra.mxu1 %v1114_v63  ;;  %v1096_v15 = vpop.permute.xlu1 %1095  ;;  %v1094_v16 = vpop.permute.xlu0 %1093 }
 0x1bb   : >> { %v1116_v34 = vsel %vm1111_vm11, %v1094_v16, %v1096_v15 }
 0x1bc   : >> { %2277 = vrot.lane.b32.xlu1 %v7486_v26, %s7069_s24  ;;  %2281 = vrot.lane.b32.xlu0 %v7659_v36, %s7069_s24 }
 0x1be   : >> { %v1100_v4 = vpop.permute.xlu1 %1099  ;;  %v1098_v31 = vpop.permute.xlu0 %1097 }
 0x1bf   : >> { %v1117_v32 = vsel %vm1111_vm11, %v1096_v15, %v1098_v31 }
 0x1c0   : >> { %2287 = vrot.lane.b32.xlu1 %v7676_v45, %s7069_s24  ;;  %2285 = vrot.lane.b32.xlu0 %v7490_v27, %s7069_s24 }
 0x1c1   : >> { %1139 = vmatprep.subr.bf16.mxu1 %v1117_v32 }
 0x1c2   : >> { %1140 = vmatpush1.bf16.msra.mxu1 %v1116_v34  ;;  %v1104_v35 = vpop.permute.xlu1 %1103  ;;  %v1102_v37 = vpop.permute.xlu0 %1101 }
 0x1c3   : >> { %v1119_v38 = vsel %vm1111_vm11, %v1102_v37, %v1104_v35  ;;  %v1118_v39 = vsel %vm1111_vm11, %v1100_v4, %v1102_v37 }
 0x1c4   : >> { %2291 = vrot.lane.b32.xlu1 %v7502_v29, %s7069_s24  ;;  %2283 = vrot.lane.b32.xlu0 %v7496_v28, %s7069_s24 }
 0x1c5   : >> { %1141 = vmatprep.subr.bf16.mxu1 %v1119_v38 }
 0x1c6   : >> { %1142 = vmatpush1.bf16.msra.mxu1 %v1118_v39  ;;  %v1943_v40 = vpop.permute.xlu1 %1942  ;;  %v1941_v41 = vpop.permute.xlu0 %1940 }
 0x1c7   : >> { %v1970_v42 = vsel %vm9739_vm12, %v1941_v41, %v1943_v40 }
 0x1c8   : >> { %2289 = vrot.lane.b32.xlu1 %v7508_v30, %s7069_s24  ;;  %2293 = vrot.lane.b32.xlu0 %v7681_v48, %s7069_s24  ;;  %s7078_s24 = smov 104  }
 0x1c9   : >> { %1992 = vmatprep.subr.bf16.mxu0 %v1970_v42  ;;  %v6767_v42 = vld [vmem:[#allocation8 + $0x70] sm:$0xff]  }
 0x1ca   : >> { %v1947_v43 = vpop.permute.xlu1 %1946  ;;  %v1939_v44 = vpop.permute.xlu0 %1938 }
 0x1cb   : >> { %v1969_v46 = vsel %vm9739_vm12, %v1939_v44, %v1941_v41 }
 0x1cc   : >> { %2378 = vrot.lane.b32.xlu1 %v7635_v13, %s7070_s23  ;;  %2376 = vrot.lane.b32.xlu0 %v7458_v21, %s7070_s23 }
 0x1cd   : >> { %1993 = vmatpush1.bf16.msra.mxu0 %v1969_v46 }
 0x1ce   : >> { %v1945_v47 = vpop.permute.xlu1 %1944  ;;  %v1949_v50 = vpop.permute.xlu0 %1948 }
 0x1cf   : >> { %v1971_v49 = vsel %vm9739_vm12, %v1945_v47, %v1947_v43  ;;  %v1972_v19 = vsel %vm9739_vm12, %v1947_v43, %v1949_v50  ;;  %v7914_v50 = vld [vmem:[%s7352_s16 + $0x28] ss:$16 sps:$4 sm:$0xff]  }
 0x1d0   : >> { %2382 = vrot.lane.b32.xlu1 %v7468_v23, %s7070_s23  ;;  %2374 = vrot.lane.b32.xlu0 %v7464_v22, %s7070_s23 }
 0x1d1   : >> { %1994 = vmatprep.subr.bf16.mxu0 %v1972_v19 }
 0x1d2   : >> { %1995 = vmatpush1.bf16.msra.mxu0 %v1971_v49  ;;  %v1955_v51 = vpop.permute.xlu1 %1954  ;;  %v1953_v52 = vpop.permute.xlu0 %1952 }
 0x1d3   : >> { %v1974_v53 = vsel %vm9739_vm12, %v1953_v52, %v1955_v51  ;;  %v7920_v51 = vld [vmem:[%s7352_s16 + $0x4] ss:$16 sps:$4 sm:$0xff]  }
 0x1d4   : >> { %2380 = vrot.lane.b32.xlu1 %v7474_v24, %s7070_s23  ;;  %2384 = vrot.lane.b32.xlu0 %v7652_v33, %s7070_s23 }
 0x1d5   : >> { %1996 = vmatprep.subr.bf16.mxu0 %v1974_v53 }
 0x1d6   : >> { %v1959_v17 = vpop.permute.xlu1 %1958  ;;  %v1951_v20 = vpop.permute.xlu0 %1950 }
 0x1d7   : >> { %v1973_v54 = vsel %vm9739_vm12, %v1951_v20, %v1953_v52 }
 0x1d8   : >> { %2390 = vrot.lane.b32.xlu1 %v7659_v36, %s7070_s23  ;;  %2388 = vrot.lane.b32.xlu0 %v7480_v25, %s7070_s23 }
 0x1d9   : >> { %1997 = vmatpush1.bf16.msra.mxu0 %v1973_v54 }
 0x1da   : >> { %v1957_v55 = vpop.permute.xlu1 %1956  ;;  %v1961_v56 = vpop.permute.xlu0 %1960 }
 0x1db   : >> { %v1975_v8 = vsel %vm9739_vm12, %v1957_v55, %v1959_v17  ;;  %v1976_v6 = vsel %vm9739_vm12, %v1959_v17, %v1961_v56  ;;  %v7925_v17 = vld [vmem:[%s7352_s16 + $0x24] ss:$16 sps:$4 sm:$0xff]   ;;  %v7936_v56 = vld [vmem:[%s7352_s16 + $0x48] ss:$16 sps:$4 sm:$0xff]  }
 0x1dc   : >> { %2394 = vrot.lane.b32.xlu1 %v7490_v27, %s7070_s23  ;;  %2386 = vrot.lane.b32.xlu0 %v7486_v26, %s7070_s23 }
 0x1dd   : >> { %1998 = vmatprep.subr.bf16.mxu0 %v1976_v6 }
 0x1de   : >> { %1999 = vmatpush1.bf16.msra.mxu0 %v1975_v8  ;;  %v1967_v57 = vpop.permute.xlu1 %1966  ;;  %v1965_v7 = vpop.permute.xlu0 %1964 }
 0x1df   : >> { %v1978_v58 = vsel %vm9739_vm12, %v1965_v7, %v1967_v57 }
 0x1e0   : >> { %2392 = vrot.lane.b32.xlu1 %v7496_v28, %s7070_s23  ;;  %2396 = vrot.lane.b32.xlu0 %v7676_v45, %s7070_s23 }
 0x1e1   : >> { %2000 = vmatprep.subr.bf16.mxu0 %v1978_v58  ;;  %v7942_v58 = vld [vmem:[%s7352_s16 + $0x68] ss:$16 sps:$4 sm:$0xff]  }
 0x1e2   : >> { %v2050_v5 = vpop.permute.xlu1 %2049  ;;  %v1963_v9 = vpop.permute.xlu0 %1962 }
 0x1e3   : >> { %v1977_v10 = vsel %vm9739_vm12, %v1963_v9, %v1965_v7  ;;  %v7948_v9 = vld [vmem:[%s7352_s16 + $0x44] ss:$16 sps:$4 sm:$0xff]  }
 0x1e4   : >> { %2402 = vrot.lane.b32.xlu1 %v7681_v48, %s7070_s23  ;;  %2400 = vrot.lane.b32.xlu0 %v7502_v29, %s7070_s23 }
 0x1e5   : >> { %2001 = vmatpush1.bf16.msra.mxu0 %v1977_v10 }
 0x1e6   : >> { %v2048_v11 = vpop.permute.xlu1 %2047  ;;  %v2052_v12 = vpop.permute.xlu0 %2051 }
 0x1e7   : >> { %v2078_v60 = vsel %vm9728_vm13, %v2048_v11, %v2050_v5  ;;  %v2079_v61 = vsel %vm9728_vm13, %v2050_v5, %v2052_v12  ;;  %v7953_v11 = vld [vmem:[%s7352_s16 + $0x64] ss:$16 sps:$4 sm:$0xff]  }
 0x1e8   : >> { %2485 = vrot.lane.b32.xlu1 %v7458_v21, %s7071_s27  ;;  %6282 = vmatmul.mubr.msk.bf16.vlgmr.msra.gmra.mrb[0].mxu0 %vm488_vm6, %v6766_v59 }
 0x1e9   : >> { %2398 = vrot.lane.b32.xlu0 %v7508_v30, %s7070_s23  ;;  %2101 = vmatprep.subr.bf16.mxu0 %v2079_v61  ;;  %s7079_s23 = smov 2  }
 0x1ea   : >> { %2102 = vmatpush1.bf16.msra.mxu0 %v2078_v60  ;;  %v2058_v62 = vpop.permute.xlu1 %2057  ;;  %2133 = vmatprep.mubr.bf16.mxu0 %v7059_v18  ;;  %v2056_v14 = vpop.permute.xlu0 %2055 }
 0x1eb   : >> { %v2081_v63 = vsel %vm9728_vm13, %v2056_v14, %v2058_v62 }
 0x1ec   : >> { %2483 = vrot.lane.b32.xlu1 %v7464_v22, %s7071_s27  ;;  %2103 = vmatprep.subr.bf16.mxu0 %v2081_v63  ;;  %v6768_v63 = vld [vmem:[#allocation8 + $0x78] sm:$0xff]  }
 0x1ed   : >> { %2487 = vrot.lane.b32.xlu0 %v7635_v13, %s7071_s27 }
 0x1ee   : >> { %v2062_v21 = vpop.permute.xlu1 %2061  ;;  %v2054_v15 = vpop.permute.xlu0 %2053 }
 0x1ef   : >> { %v2080_v16 = vsel %vm9728_vm13, %v2054_v15, %v2056_v14  ;;  %v7962_v14 = vld [vmem:[%s7352_s16 + $0x88] ss:$16 sps:$4 sm:$0xff]  }
 0x1f0   : >> { %2493 = vrot.lane.b32.xlu1 %v7652_v33, %s7071_s27  ;;  %2104 = vmatpush1.bf16.msra.mxu0 %v2080_v16 }
 0x1f1   : >> { %2491 = vrot.lane.b32.xlu0 %v7468_v23, %s7071_s27 }
 0x1f2   : >> { %v2060_v4 = vpop.permute.xlu1 %2059  ;;  %v2064_v31 = vpop.permute.xlu0 %2063 }
 0x1f3   : >> { %v2082_v22 = vsel %vm9728_vm13, %v2060_v4, %v2062_v21  ;;  %v2083_v32 = vsel %vm9728_vm13, %v2062_v21, %v2064_v31  ;;  %v7967_v21 = vld [vmem:[%s7352_s16 + $0x84] ss:$16 sps:$4 sm:$0xff]   ;;  %v7977_v31 = vld [vmem:[%s7352_s16 + $0x88] ss:$16 sps:$4 sm:$0xff]  }
 0x1f4   : >> { %2497 = vrot.lane.b32.xlu1 %v7480_v25, %s7071_s27  ;;  %2105 = vmatprep.subr.bf16.mxu0 %v2083_v32 }
 0x1f5   : >> { %2489 = vrot.lane.b32.xlu0 %v7474_v24, %s7071_s27  ;;  %2106 = vmatpush1.bf16.msra.mxu0 %v2082_v22 }
 0x1f6   : >> { %v2070_v34 = vpop.permute.xlu1 %2069  ;;  %v2068_v35 = vpop.permute.xlu0 %2067 }
 0x1f7   : >> { %v2085_v23 = vsel %vm9728_vm13, %v2068_v35, %v2070_v34 }
 0x1f8   : >> { %2495 = vrot.lane.b32.xlu1 %v7486_v26, %s7071_s27  ;;  %2107 = vmatprep.subr.bf16.mxu0 %v2085_v23 }
 0x1f9   : >> { %2499 = vrot.lane.b32.xlu0 %v7659_v36, %s7071_s27 }
 0x1fa   : >> { %v2074_v37 = vpop.permute.xlu1 %2073  ;;  %v2066_v25 = vpop.permute.xlu0 %2065 }
 0x1fb   : >> { %v2084_v38 = vsel %vm9728_vm13, %v2066_v25, %v2068_v35  ;;  %v7983_v35 = vld [vmem:[%s7352_s16 + $0x84] ss:$16 sps:$4 sm:$0xff]  }
 0x1fc   : >> { %2505 = vrot.lane.b32.xlu1 %v7676_v45, %s7071_s27  ;;  %2108 = vmatpush1.bf16.msra.mxu0 %v2084_v38 }
 0x1fd   : >> { %2503 = vrot.lane.b32.xlu0 %v7490_v27, %s7071_s27 }
 0x1fe   : >> { %v2072_v24 = vpop.permute.xlu1 %2071  ;;  %v2076_v39 = vpop.permute.xlu0 %2075 }
 0x1ff   : >> { %v2086_v26 = vsel %vm9728_vm13, %v2072_v24, %v2074_v37  ;;  %v2087_v40 = vsel %vm9728_vm13, %v2074_v37, %v2076_v39  ;;  %v7989_v37 = vld [vmem:[%s7352_s16 + $0x80] ss:$16 sps:$4 sm:$0xff]   ;;  %v8000_v39 = vld [vmem:[%s7352_s16 + $0x4] ss:$16 sps:$4 sm:$0xff]   ;;  %vm9732_vm13 = vcmask 89088  }
 0x200   : >> { %2509 = vrot.lane.b32.xlu1 %v7502_v29, %s7071_s27  ;;  %2109 = vmatprep.subr.bf16.mxu0 %v2087_v40 }
 0x201   : >> { %2501 = vrot.lane.b32.xlu0 %v7496_v28, %s7071_s27  ;;  %2110 = vmatpush1.bf16.msra.mxu0 %v2086_v26  ;;  %v7995_v26 = vld [vmem:[%s7352_s16 + $0x8] ss:$16 sps:$4 sm:$0xff]  }
 0x202   : >> { %v2161_v41 = vpop.permute.xlu1 %2160  ;;  %v2159_v27 = vpop.permute.xlu0 %2158 }
 0x203   : >> { %v2188_v43 = vsel %vm9723_vm14, %v2159_v27, %v2161_v41 }
 0x204   : >> { %2507 = vrot.lane.b32.xlu1 %v7508_v30, %s7071_s27  ;;  %2210 = vmatprep.subr.bf16.mxu0 %v2188_v43  ;;  %v7908_v30 = vld [vmem:[%s7352_s16 + $0x8] ss:$16 sps:$4 sm:$0xff]  }
 0x205   : >> { %2511 = vrot.lane.b32.xlu0 %v7681_v48, %s7071_s27  ;;  %6284 = vmatmul.mubr.msk.bf16.vlgmr.msra.gmra.mrb[0].mxu0 %vm488_vm6, %v6767_v42  ;;  %s7080_s27 = smov 103  }
 0x206   : >> { %v2165_v29 = vpop.permute.xlu1 %2164  ;;  %v2157_v28 = vpop.permute.xlu0 %2156  ;;  %2242 = vmatprep.mubr.bf16.mxu0 %v7059_v18 }
 0x207   : >> { %v2187_v44 = vsel %vm9723_vm14, %v2157_v28, %v2159_v27 }
 0x208   : >> { %2596 = vrot.lane.b32.xlu1 %v7635_v13, %s7072_s11  ;;  %2211 = vmatpush1.bf16.msra.mxu0 %v2187_v44  ;;  %v8014_v44 = vld [vmem:[%s7352_s16] ss:$16 sps:$4 sm:$0xff]  }
 0x209   : >> { %2594 = vrot.lane.b32.xlu0 %v7908_v30, %s7072_s11 }
 0x20a   : >> { %v2163_v46 = vpop.permute.xlu1 %2162  ;;  %v2167_v49 = vpop.permute.xlu0 %2166 }
 0x20b   : >> { %v2189_v47 = vsel %vm9723_vm14, %v2163_v46, %v2165_v29  ;;  %v2190_v19 = vsel %vm9723_vm14, %v2165_v29, %v2167_v49  ;;  %v8020_v49 = vld [vmem:[%s7352_s16 + $0x28] ss:$16 sps:$4 sm:$0xff]  }
 0x20c   : >> { %2600 = vrot.lane.b32.xlu1 %v7914_v50, %s7072_s11  ;;  %2212 = vmatprep.subr.bf16.mxu0 %v2190_v19  ;;  %v8025_v19 = vld [vmem:[%s7352_s16 + $0x24] ss:$16 sps:$4 sm:$0xff]  }
 0x20d   : >> { %2592 = vrot.lane.b32.xlu0 %v7920_v51, %s7072_s11  ;;  %2213 = vmatpush1.bf16.msra.mxu0 %v2189_v47 }
 0x20e   : >> { %v2173_v52 = vpop.permute.xlu1 %2172  ;;  %v2171_v53 = vpop.permute.xlu0 %2170 }
 0x20f   : >> { %v2192_v20 = vsel %vm9723_vm14, %v2171_v53, %v2173_v52 }
 0x210   : >> { %2598 = vrot.lane.b32.xlu1 %v7925_v17, %s7072_s11  ;;  %2214 = vmatprep.subr.bf16.mxu0 %v2192_v20 }
 0x211   : >> { %2602 = vrot.lane.b32.xlu0 %v7652_v33, %s7072_s11 }
 0x212   : >> { %v2177_v54 = vpop.permute.xlu1 %2176  ;;  %v2169_v55 = vpop.permute.xlu0 %2168 }
 0x213   : >> { %v2191_v8 = vsel %vm9723_vm14, %v2169_v55, %v2171_v53 }
 0x214   : >> { %2608 = vrot.lane.b32.xlu1 %v7659_v36, %s7072_s11  ;;  %2215 = vmatpush1.bf16.msra.mxu0 %v2191_v8  ;;  %v6769_v8 = vld [vmem:[#allocation8 + $0x80] sm:$0xff]  }
 0x215   : >> { %2606 = vrot.lane.b32.xlu0 %v7936_v56, %s7072_s11 }
 0x216   : >> { %v2175_v6 = vpop.permute.xlu1 %2174  ;;  %v2179_v7 = vpop.permute.xlu0 %2178 }
 0x217   : >> { %v2193_v57 = vsel %vm9723_vm14, %v2175_v6, %v2177_v54  ;;  %v2194_v5 = vsel %vm9723_vm14, %v2177_v54, %v2179_v7  ;;  %v8039_v7 = vld [vmem:[%s7352_s16 + $0x20] ss:$16 sps:$4 sm:$0xff]  }
 0x218   : >> { %2612 = vrot.lane.b32.xlu1 %v7942_v58, %s7072_s11  ;;  %2216 = vmatprep.subr.bf16.mxu0 %v2194_v5 }
 0x219   : >> { %2604 = vrot.lane.b32.xlu0 %v7948_v9, %s7072_s11  ;;  %2217 = vmatpush1.bf16.msra.mxu0 %v2193_v57 }
 0x21a   : >> { %v2185_v10 = vpop.permute.xlu1 %2184  ;;  %v2183_v59 = vpop.permute.xlu0 %2182 }
 0x21b   : >> { %v2196_v60 = vsel %vm9723_vm14, %v2183_v59, %v2185_v10 }
 0x21c   : >> { %2610 = vrot.lane.b32.xlu1 %v7953_v11, %s7072_s11  ;;  %2218 = vmatprep.subr.bf16.mxu0 %v2196_v60  ;;  %v8052_v60 = vld [vmem:[%s7352_s16 + $0x44] ss:$16 sps:$4 sm:$0xff]  }
 0x21d   : >> { %2614 = vrot.lane.b32.xlu0 %v7676_v45, %s7072_s11 }
 0x21e   : >> { %v2268_v12 = vpop.permute.xlu1 %2267  ;;  %v2181_v61 = vpop.permute.xlu0 %2180 }
 0x21f   : >> { %v2195_v62 = vsel %vm9723_vm14, %v2181_v61, %v2183_v59  ;;  %vm9725_vm14 = vcmask 949248   ;;  %v8047_v59 = vld [vmem:[%s7352_s16 + $0x48] ss:$16 sps:$4 sm:$0xff]  }
 0x220   : >> { %1109 = vrot.lane.b32.xlu1 %v7962_v14, %s7065_s15  ;;  %2219 = vmatpush1.bf16.msra.mxu0 %v2195_v62 }
 0x221   : >> { %1107 = vrot.lane.b32.xlu0 %v7967_v21, %s7065_s15 }
 0x222   : >> { %v2266_v15 = vpop.permute.xlu1 %2265  ;;  %v2270_v4 = vpop.permute.xlu0 %2269 }
 0x223   : >> { %v2296_v16 = vsel %vm9724_vm15, %v2266_v15, %v2268_v12  ;;  %v2297_v22 = vsel %vm9724_vm15, %v2268_v12, %v2270_v4  ;;  %6286 = vmatmul.mubr.msk.bf16.vlgmr.msra.gmra.mrb[0].mxu0 %vm488_vm6, %v6768_v63 }
 0x224   : >> { %2620 = vrot.lane.b32.xlu1 %v7681_v48, %s7072_s11  ;;  %2319 = vmatprep.subr.bf16.mxu0 %v2297_v22  ;;  %v8066_v22 = vld [vmem:[%s7352_s16 + $0x40] ss:$16 sps:$4 sm:$0xff]  }
 0x225   : >> { %2618 = vrot.lane.b32.xlu0 %v7977_v31, %s7072_s11  ;;  %2320 = vmatpush1.bf16.msra.mxu0 %v2296_v16 }
 0x226   : >> { %v2276_v32 = vpop.permute.xlu1 %2275  ;;  %2351 = vmatprep.mubr.bf16.mxu0 %v7059_v18  ;;  %v2274_v34 = vpop.permute.xlu0 %2273 }
 0x227   : >> { %v2299_v23 = vsel %vm9724_vm15, %v2274_v34, %v2276_v32 }
 0x228   : >> { %2616 = vrot.lane.b32.xlu1 %v7983_v35, %s7072_s11  ;;  %2321 = vmatprep.subr.bf16.mxu0 %v2299_v23  ;;  %v8072_v23 = vld [vmem:[%s7352_s16 + $0x68] ss:$16 sps:$4 sm:$0xff]   ;;  %s7081_s11 = smov 1  }
 0x229   : >> { %1105 = vrot.lane.b32.xlu0 %v7989_v37, %s7065_s15  ;;  %s7074_s15 = smov 106  }
 0x22a   : >> { %v2280_v25 = vpop.permute.xlu1 %2279  ;;  %v2272_v38 = vpop.permute.xlu0 %2271 }
 0x22b   : >> { %v2298_v24 = vsel %vm9724_vm15, %v2272_v38, %v2274_v34 }
 0x22c   : >> { %1194 = vrot.lane.b32.xlu1 %v7995_v26, %s7073_s12  ;;  %2322 = vmatpush1.bf16.msra.mxu0 %v2298_v24 }
 0x22d   : >> { %1192 = vrot.lane.b32.xlu0 %v8000_v39, %s7073_s12 }
 0x22e   : >> { %v2278_v40 = vpop.permute.xlu1 %2277  ;;  %v2282_v42 = vpop.permute.xlu0 %2281 }
 0x22f   : >> { %v2300_v41 = vsel %vm9724_vm15, %v2278_v40, %v2280_v25  ;;  %v2301_v27 = vsel %vm9724_vm15, %v2280_v25, %v2282_v42  ;;  %v8077_v25 = vld [vmem:[%s7352_s16 + $0x64] ss:$16 sps:$4 sm:$0xff]  }
 0x230   : >> { %2705 = vrot.lane.b32.xlu1 %v7635_v13, %s7074_s15  ;;  %2323 = vmatprep.subr.bf16.mxu0 %v2301_v27 }
 0x231   : >> { %2703 = vrot.lane.b32.xlu0 %v7908_v30, %s7074_s15  ;;  %2324 = vmatpush1.bf16.msra.mxu0 %v2300_v41 }
 0x232   : >> { %v2288_v43 = vpop.permute.xlu1 %2287  ;;  %v2286_v29 = vpop.permute.xlu0 %2285 }
 0x233   : >> { %v2303_v28 = vsel %vm9724_vm15, %v2286_v29, %v2288_v43 }
 0x234   : >> { %2701 = vrot.lane.b32.xlu1 %v7920_v51, %s7074_s15  ;;  %2325 = vmatprep.subr.bf16.mxu0 %v2303_v28 }
 0x235   : >> { %1190 = vrot.lane.b32.xlu0 %v8014_v44, %s7073_s12 }
 0x236   : >> { %v2292_v13 = vpop.permute.xlu1 %2291  ;;  %v2284_v46 = vpop.permute.xlu0 %2283 }
 0x237   : >> { %v2302_v47 = vsel %vm9724_vm15, %v2284_v46, %v2286_v29  ;;  %v8091_v29 = vld [vmem:[%s7352_s16 + $0x60] ss:$16 sps:$4 sm:$0xff]   ;;  %v6770_v46 = vld [vmem:[#allocation8 + $0x88] sm:$0xff]  }
 0x238   : >> { %1200 = vrot.lane.b32.xlu1 %v8020_v49, %s7073_s12  ;;  %2326 = vmatpush1.bf16.msra.mxu0 %v2302_v47 }
 0x239   : >> { %1198 = vrot.lane.b32.xlu0 %v8025_v19, %s7073_s12 }
 0x23a   : >> { %v2290_v52 = vpop.permute.xlu1 %2289  ;;  %v2294_v20 = vpop.permute.xlu0 %2293 }
 0x23b   : >> { %v2304_v53 = vsel %vm9724_vm15, %v2290_v52, %v2292_v13  ;;  %v2305_v54 = vsel %vm9724_vm15, %v2292_v13, %v2294_v20  ;;  %vm9726_vm15 = vcmask 941056  }
 0x23c   : >> { %2711 = vrot.lane.b32.xlu1 %v7652_v33, %s7074_s15  ;;  %2327 = vmatprep.subr.bf16.mxu0 %v2305_v54 }
 0x23d   : >> { %2709 = vrot.lane.b32.xlu0 %v7914_v50, %s7074_s15  ;;  %2328 = vmatpush1.bf16.msra.mxu0 %v2304_v53 }
 0x23e   : >> { %v2379_v55 = vpop.permute.xlu1 %2378  ;;  %v2377_v6 = vpop.permute.xlu0 %2376 }
 0x23f   : >> { %v2406_v57 = vsel %vm9725_vm14, %v2377_v6, %v2379_v55 }
 0x240   : >> { %2707 = vrot.lane.b32.xlu1 %v7925_v17, %s7074_s15  ;;  %2428 = vmatprep.subr.bf16.mxu0 %v2406_v57 }
 0x241   : >> { %1196 = vrot.lane.b32.xlu0 %v8039_v7, %s7073_s12  ;;  %6288 = vmatmul.mubr.msk.bf16.vlgmr.msra.gmra.mrb[0].mxu0 %vm488_vm6, %v6769_v8 }
 0x242   : >> { %v2383_v33 = vpop.permute.xlu1 %2382  ;;  %v2375_v5 = vpop.permute.xlu0 %2374  ;;  %2460 = vmatprep.mubr.bf16.mxu0 %v7059_v18 }
 0x243   : >> { %v2405_v10 = vsel %vm9725_vm14, %v2375_v5, %v2377_v6 }
 0x244   : >> { %1206 = vrot.lane.b32.xlu1 %v8047_v59, %s7073_s12  ;;  %2429 = vmatpush1.bf16.msra.mxu0 %v2405_v10 }
 0x245   : >> { %1204 = vrot.lane.b32.xlu0 %v8052_v60, %s7073_s12 }
 0x246   : >> { %v2381_v12 = vpop.permute.xlu1 %2380  ;;  %v2385_v62 = vpop.permute.xlu0 %2384 }
 0x247   : >> { %v2407_v61 = vsel %vm9725_vm14, %v2381_v12, %v2383_v33  ;;  %v2408_v63 = vsel %vm9725_vm14, %v2383_v33, %v2385_v62  ;;  %v8120_v12 = vld [vmem:[%s7352_s16 + $0xc] ss:$16 sps:$4 sm:$0xff]  }
 0x248   : >> { %2717 = vrot.lane.b32.xlu1 %v7659_v36, %s7074_s15  ;;  %2430 = vmatprep.subr.bf16.mxu0 %v2408_v63 }
 0x249   : >> { %2715 = vrot.lane.b32.xlu0 %v7936_v56, %s7074_s15  ;;  %2431 = vmatpush1.bf16.msra.mxu0 %v2407_v61 }
 0x24a   : >> { %v2391_v15 = vpop.permute.xlu1 %2390  ;;  %v2389_v16 = vpop.permute.xlu0 %2388 }
 0x24b   : >> { %v2410_v4 = vsel %vm9725_vm14, %v2389_v16, %v2391_v15 }
 0x24c   : >> { %2713 = vrot.lane.b32.xlu1 %v7948_v9, %s7074_s15  ;;  %2432 = vmatprep.subr.bf16.mxu0 %v2410_v4 }
 0x24d   : >> { %1202 = vrot.lane.b32.xlu0 %v8066_v22, %s7073_s12 }
 0x24e   : >> { %v2395_v36 = vpop.permute.xlu1 %2394  ;;  %v2387_v32 = vpop.permute.xlu0 %2386 }
 0x24f   : >> { %v2409_v34 = vsel %vm9725_vm14, %v2387_v32, %v2389_v16 }
 0x250   : >> { %1212 = vrot.lane.b32.xlu1 %v8072_v23, %s7073_s12  ;;  %2433 = vmatpush1.bf16.msra.mxu0 %v2409_v34 }
 0x251   : >> { %1210 = vrot.lane.b32.xlu0 %v8077_v25, %s7073_s12 }
 0x252   : >> { %v2393_v38 = vpop.permute.xlu1 %2392  ;;  %v2397_v40 = vpop.permute.xlu0 %2396 }
 0x253   : >> { %v2411_v24 = vsel %vm9725_vm14, %v2393_v38, %v2395_v36  ;;  %v2412_v41 = vsel %vm9725_vm14, %v2395_v36, %v2397_v40 }
 0x254   : >> { %2723 = vrot.lane.b32.xlu1 %v7676_v45, %s7074_s15  ;;  %2434 = vmatprep.subr.bf16.mxu0 %v2412_v41 }
 0x255   : >> { %2721 = vrot.lane.b32.xlu0 %v7942_v58, %s7074_s15  ;;  %2435 = vmatpush1.bf16.msra.mxu0 %v2411_v24  ;;  %v8139_v24 = vld [vmem:[%s7352_s16 + $0x2c] ss:$16 sps:$4 sm:$0xff]  }
 0x256   : >> { %v2403_v42 = vpop.permute.xlu1 %2402  ;;  %v2401_v27 = vpop.permute.xlu0 %2400 }
 0x257   : >> { %v2414_v43 = vsel %vm9725_vm14, %v2401_v27, %v2403_v42  ;;  %v6771_v42 = vld [vmem:[#allocation8 + $0x90] sm:$0xff]  }
 0x258   : >> { %2719 = vrot.lane.b32.xlu1 %v7953_v11, %s7074_s15  ;;  %2436 = vmatprep.subr.bf16.mxu0 %v2414_v43 }
 0x259   : >> { %1208 = vrot.lane.b32.xlu0 %v8091_v29, %s7073_s12 }
 0x25a   : >> { %v2486_v45 = vpop.permute.xlu1 %2485 }
 0x25b   : >> { %v2399_v28 = vpop.permute.xlu0 %2398 }
 0x25c   : >> { %v2413_v13 = vsel %vm9725_vm14, %v2399_v28, %v2401_v27  ;;  %1218 = vrot.lane.b32.xlu1 %v7962_v14, %s7073_s12  ;;  %vm9727_vm14 = vcmask 932864  }
 0x25d   : >> { %1216 = vrot.lane.b32.xlu0 %v7967_v21, %s7073_s12  ;;  %2437 = vmatpush1.bf16.msra.mxu0 %v2413_v13 }
 0x25e   : >> { %v2484_v47 = vpop.permute.xlu1 %2483 }
 0x25f   : >> { %v2514_v52 = vsel %vm9726_vm15, %v2484_v47, %v2486_v45  ;;  %v2488_v53 = vpop.permute.xlu0 %2487 }
 0x260   : >> { %2729 = vrot.lane.b32.xlu1 %v7681_v48, %s7074_s15  ;;  %v2515_v20 = vsel %vm9726_vm15, %v2486_v45, %v2488_v53  ;;  %6290 = vmatmul.mubr.msk.bf16.vlgmr.msra.gmra.mrb[0].mxu0 %vm488_vm6, %v6770_v46  ;;  %v8160_v53 = vld [vmem:[%s7352_s16 + $0x4c] ss:$16 sps:$4 sm:$0xff]  }
 0x261   : >> { %2727 = vrot.lane.b32.xlu0 %v7977_v31, %s7074_s15  ;;  %2537 = vmatprep.subr.bf16.mxu0 %v2515_v20 }
 0x262   : >> { %2538 = vmatpush1.bf16.msra.mxu0 %v2514_v52  ;;  %v2494_v54 = vpop.permute.xlu1 %2493  ;;  %2569 = vmatprep.mubr.bf16.mxu0 %v7059_v18 }
 0x263   : >> { %v2492_v55 = vpop.permute.xlu0 %2491 }
 0x264   : >> { %2725 = vrot.lane.b32.xlu1 %v7983_v35, %s7074_s15  ;;  %v2517_v8 = vsel %vm9726_vm15, %v2492_v55, %v2494_v54 }
 0x265   : >> { %1214 = vrot.lane.b32.xlu0 %v7989_v37, %s7073_s12  ;;  %2539 = vmatprep.subr.bf16.mxu0 %v2517_v8  ;;  %s7082_s12 = smov 102  }
 0x266   : >> { %v2498_v48 = vpop.permute.xlu1 %2497 }
 0x267   : >> { %v2490_v6 = vpop.permute.xlu0 %2489 }
 0x268   : >> { %v2516_v57 = vsel %vm9726_vm15, %v2490_v6, %v2492_v55  ;;  %1303 = vrot.lane.b32.xlu1 %v7995_v26, %s7075_s6 }
 0x269   : >> { %1301 = vrot.lane.b32.xlu0 %v8000_v39, %s7075_s6  ;;  %2540 = vmatpush1.bf16.msra.mxu0 %v2516_v57 }
 0x26a   : >> { %v2496_v33 = vpop.permute.xlu1 %2495 }
 0x26b   : >> { %v2518_v5 = vsel %vm9726_vm15, %v2496_v33, %v2498_v48  ;;  %v2500_v10 = vpop.permute.xlu0 %2499 }
 0x26c   : >> { %2814 = vrot.lane.b32.xlu1 %v8120_v12, %s7076_s13  ;;  %v2519_v61 = vsel %vm9726_vm15, %v2498_v48, %v2500_v10 }
 0x26d   : >> { %2812 = vrot.lane.b32.xlu0 %v7908_v30, %s7076_s13  ;;  %2541 = vmatprep.subr.bf16.mxu0 %v2519_v61  ;;  %v8179_v61 = vld [vmem:[%s7352_s16 + $0x6c] ss:$16 sps:$4 sm:$0xff]  }
 0x26e   : >> { %2542 = vmatpush1.bf16.msra.mxu0 %v2518_v5  ;;  %v2506_v62 = vpop.permute.xlu1 %2505 }
 0x26f   : >> { %v2504_v63 = vpop.permute.xlu0 %2503 }
 0x270   : >> { %2810 = vrot.lane.b32.xlu1 %v7920_v51, %s7076_s13  ;;  %v2521_v15 = vsel %vm9726_vm15, %v2504_v63, %v2506_v62 }
 0x271   : >> { %1299 = vrot.lane.b32.xlu0 %v8014_v44, %s7075_s6  ;;  %2543 = vmatprep.subr.bf16.mxu0 %v2521_v15 }
 0x272   : >> { %v2510_v16 = vpop.permute.xlu1 %2509 }
 0x273   : >> { %v2502_v4 = vpop.permute.xlu0 %2501 }
 0x274   : >> { %v2520_v36 = vsel %vm9726_vm15, %v2502_v4, %v2504_v63  ;;  %1309 = vrot.lane.b32.xlu1 %v8020_v49, %s7075_s6 }
 0x275   : >> { %1307 = vrot.lane.b32.xlu0 %v8025_v19, %s7075_s6  ;;  %2544 = vmatpush1.bf16.msra.mxu0 %v2520_v36 }
 0x276   : >> { %v2508_v32 = vpop.permute.xlu1 %2507 }
 0x277   : >> { %v2522_v34 = vsel %vm9726_vm15, %v2508_v32, %v2510_v16  ;;  %v2512_v38 = vpop.permute.xlu0 %2511 }
 0x278   : >> { %2820 = vrot.lane.b32.xlu1 %v8139_v24, %s7076_s13  ;;  %v2523_v40 = vsel %vm9726_vm15, %v2510_v16, %v2512_v38  ;;  %vm9730_vm15 = vcmask 97280  }
 0x279   : >> { %2818 = vrot.lane.b32.xlu0 %v7914_v50, %s7076_s13  ;;  %2545 = vmatprep.subr.bf16.mxu0 %v2523_v40 }
 0x27a   : >> { %2546 = vmatpush1.bf16.msra.mxu0 %v2522_v34  ;;  %v2597_v41 = vpop.permute.xlu1 %2596 }
 0x27b   : >> { %v2595_v27 = vpop.permute.xlu0 %2594 }
 0x27c   : >> { %2816 = vrot.lane.b32.xlu1 %v7925_v17, %s7076_s13  ;;  %v2624_v43 = vsel %vm9727_vm14, %v2595_v27, %v2597_v41  ;;  %v6773_v41 = vld [vmem:[#allocation8 + $0x98] sm:$0xff]  }
 0x27d   : >> { %1305 = vrot.lane.b32.xlu0 %v8039_v7, %s7075_s6  ;;  %2646 = vmatprep.subr.bf16.mxu0 %v2624_v43  ;;  %v6772_v43 = vld [vmem:[#allocation8 + $0x30] sm:$0xff]  }
 0x27e   : >> { %v2601_v45 = vpop.permute.xlu1 %2600  ;;  %6292 = vmatmul.mubr.msk.bf16.vlgmr.msra.gmra.mrb[0].mxu0 %vm488_vm6, %v6771_v42 }
 0x27f   : >> { %v2593_v28 = vpop.permute.xlu0 %2592  ;;  %2678 = vmatprep.mubr.bf16.mxu0 %v7059_v18 }
 0x280   : >> { %v2623_v13 = vsel %vm9727_vm14, %v2593_v28, %v2595_v27  ;;  %1315 = vrot.lane.b32.xlu1 %v8047_v59, %s7075_s6  ;;  %v8199_v27 = vld [vmem:[%s7352_s16 + $0x8c] ss:$16 sps:$4 sm:$0xff]  }
 0x281   : >> { %1313 = vrot.lane.b32.xlu0 %v8052_v60, %s7075_s6  ;;  %2647 = vmatpush1.bf16.msra.mxu0 %v2623_v13 }
 0x282   : >> { %v2599_v46 = vpop.permute.xlu1 %2598 }
 0x283   : >> { %v2625_v47 = vsel %vm9727_vm14, %v2599_v46, %v2601_v45  ;;  %v2603_v52 = vpop.permute.xlu0 %2602 }
 0x284   : >> { %2826 = vrot.lane.b32.xlu1 %v8160_v53, %s7076_s13  ;;  %v2626_v20 = vsel %vm9727_vm14, %v2601_v45, %v2603_v52 }
 0x285   : >> { %2824 = vrot.lane.b32.xlu0 %v7936_v56, %s7076_s13  ;;  %2648 = vmatprep.subr.bf16.mxu0 %v2626_v20 }
 0x286   : >> { %2649 = vmatpush1.bf16.msra.mxu0 %v2625_v47  ;;  %v2609_v54 = vpop.permute.xlu1 %2608 }
 0x287   : >> { %v2607_v55 = vpop.permute.xlu0 %2606 }
 0x288   : >> { %2822 = vrot.lane.b32.xlu1 %v7948_v9, %s7076_s13  ;;  %v2628_v8 = vsel %vm9727_vm14, %v2607_v55, %v2609_v54 }
 0x289   : >> { %1311 = vrot.lane.b32.xlu0 %v8066_v22, %s7075_s6  ;;  %2650 = vmatprep.subr.bf16.mxu0 %v2628_v8 }
 0x28a   : >> { %v2613_v48 = vpop.permute.xlu1 %2612 }
 0x28b   : >> { %v2605_v6 = vpop.permute.xlu0 %2604 }
 0x28c   : >> { %v2627_v57 = vsel %vm9727_vm14, %v2605_v6, %v2607_v55  ;;  %1321 = vrot.lane.b32.xlu1 %v8072_v23, %s7075_s6 }
 0x28d   : >> { %1319 = vrot.lane.b32.xlu0 %v8077_v25, %s7075_s6  ;;  %2651 = vmatpush1.bf16.msra.mxu0 %v2627_v57 }
 0x28e   : >> { %v2611_v33 = vpop.permute.xlu1 %2610 }
 0x28f   : >> { %v2629_v5 = vsel %vm9727_vm14, %v2611_v33, %v2613_v48  ;;  %v2615_v10 = vpop.permute.xlu0 %2614 }
 0x290   : >> { %2832 = vrot.lane.b32.xlu1 %v8179_v61, %s7076_s13  ;;  %v2630_v62 = vsel %vm9727_vm14, %v2613_v48, %v2615_v10 }
 0x291   : >> { %2830 = vrot.lane.b32.xlu0 %v7942_v58, %s7076_s13  ;;  %2652 = vmatprep.subr.bf16.mxu0 %v2630_v62 }
 0x292   : >> { %2653 = vmatpush1.bf16.msra.mxu0 %v2629_v5  ;;  %v1110_v63 = vpop.permute.xlu1 %1109 }
 0x293   : >> { %v1108_v15 = vpop.permute.xlu0 %1107 }
 0x294   : >> { %2828 = vrot.lane.b32.xlu1 %v7953_v11, %s7076_s13  ;;  %v1121_v16 = vsel %vm1111_vm11, %v1108_v15, %v1110_v63 }
 0x295   : >> { %1317 = vrot.lane.b32.xlu0 %v8091_v29, %s7075_s6  ;;  %1143 = vmatprep.subr.bf16.mxu1 %v1121_v16 }
 0x296   : >> { %v2621_v4 = vpop.permute.xlu1 %2620 }
 0x297   : >> { %v2619_v36 = vpop.permute.xlu0 %2618 }
 0x298   : >> { %1327 = vrot.lane.b32.xlu1 %v7962_v14, %s7075_s6  ;;  %v2632_v32 = vsel %vm9727_vm14, %v2619_v36, %v2621_v4 }
 0x299   : >> { %1325 = vrot.lane.b32.xlu0 %v7967_v21, %s7075_s6  ;;  %2654 = vmatprep.subr.bf16.mxu0 %v2632_v32 }
 0x29a   : >> { %v2617_v34 = vpop.permute.xlu1 %2616 }
 0x29b   : >> { %v2631_v38 = vsel %vm9727_vm14, %v2617_v34, %v2619_v36  ;;  %v1106_v40 = vpop.permute.xlu0 %1105  ;;  %vm9729_vm14 = vcmask 867328  }
 0x29c   : >> { %v1120_v42 = vsel %vm1111_vm11, %v1106_v40, %v1108_v15  ;;  %2838 = vrot.lane.b32.xlu1 %v8199_v27, %s7076_s13  ;;  %2655 = vmatpush1.bf16.msra.mxu0 %v2631_v38 }
 0x29d   : >> { %2836 = vrot.lane.b32.xlu0 %v7977_v31, %s7076_s13  ;;  %1144 = vmatpush1.bf16.msra.mxu1 %v1120_v42 }
 0x29e   : >> { %v1195_v45 = vpop.permute.xlu1 %1194 }
 0x29f   : >> { %v1193_v28 = vpop.permute.xlu0 %1192  ;;  %6294 = vmatmul.mubr.msk.bf16.vlgmr.msra.gmra.mrb[0].mxu0 %vm488_vm6, %v6773_v41 }
 0x2a0   : >> { %2834 = vrot.lane.b32.xlu1 %v7983_v35, %s7076_s13  ;;  %v1222_v13 = vsel %vm9730_vm15, %v1193_v28, %v1195_v45  ;;  %6243 = vmatmul.mubr.msk.bf16.vlgmr.msra.gmra.mrb[0].mxu1 %vm488_vm6, %v6772_v43 }
 0x2a1   : >> { %1323 = vrot.lane.b32.xlu0 %v7989_v37, %s7075_s6  ;;  %1244 = vmatprep.subr.bf16.mxu1 %v1222_v13 }
 0x2a2   : >> { %v2706_v46 = vpop.permute.xlu1 %2705  ;;  %1276 = vmatprep.mubr.bf16.mxu1 %v7059_v18  ;;  %2787 = vmatprep.mubr.bf16.mxu0 %v7059_v18 }
 0x2a3   : >> { %v2704_v47 = vpop.permute.xlu0 %2703 }
 0x2a4   : >> { %1412 = vrot.lane.b32.xlu1 %v7995_v26, %s7077_s26  ;;  %v2733_v52 = vsel %vm9729_vm14, %v2704_v47, %v2706_v46 }
 0x2a5   : >> { %1410 = vrot.lane.b32.xlu0 %v8000_v39, %s7077_s26  ;;  %2755 = vmatprep.subr.bf16.mxu0 %v2733_v52 }
 0x2a6   : >> { %v2702_v20 = vpop.permute.xlu1 %2701 }
 0x2a7   : >> { %v2732_v54 = vsel %vm9729_vm14, %v2702_v20, %v2704_v47  ;;  %v1191_v55 = vpop.permute.xlu0 %1190 }
 0x2a8   : >> { %v1221_v8 = vsel %vm9730_vm15, %v1191_v55, %v1193_v28  ;;  %2923 = vrot.lane.b32.xlu1 %v8120_v12, %s7078_s24  ;;  %2756 = vmatpush1.bf16.msra.mxu0 %v2732_v54 }
 0x2a9   : >> { %2921 = vrot.lane.b32.xlu0 %v7908_v30, %s7078_s24  ;;  %1245 = vmatpush1.bf16.msra.mxu1 %v1221_v8 }
 0x2aa   : >> { %v1201_v48 = vpop.permute.xlu1 %1200 }
 0x2ab   : >> { %v1199_v6 = vpop.permute.xlu0 %1198 }
 0x2ac   : >> { %2919 = vrot.lane.b32.xlu1 %v7920_v51, %s7078_s24  ;;  %v1224_v57 = vsel %vm9730_vm15, %v1199_v6, %v1201_v48 }
 0x2ad   : >> { %1408 = vrot.lane.b32.xlu0 %v8014_v44, %s7077_s26  ;;  %1246 = vmatprep.subr.bf16.mxu1 %v1224_v57 }
 0x2ae   : >> { %v2712_v33 = vpop.permute.xlu1 %2711 }
 0x2af   : >> { %v2710_v5 = vpop.permute.xlu0 %2709 }
 0x2b0   : >> { %1418 = vrot.lane.b32.xlu1 %v8020_v49, %s7077_s26  ;;  %v2735_v10 = vsel %vm9729_vm14, %v2710_v5, %v2712_v33 }
 0x2b1   : >> { %1416 = vrot.lane.b32.xlu0 %v8025_v19, %s7077_s26  ;;  %2757 = vmatprep.subr.bf16.mxu0 %v2735_v10 }
 0x2b2   : >> { %v2708_v62 = vpop.permute.xlu1 %2707 }
 0x2b3   : >> { %v2734_v63 = vsel %vm9729_vm14, %v2708_v62, %v2710_v5  ;;  %v1197_v15 = vpop.permute.xlu0 %1196 }
 0x2b4   : >> { %v1223_v16 = vsel %vm9730_vm15, %v1197_v15, %v1199_v6  ;;  %2929 = vrot.lane.b32.xlu1 %v8139_v24, %s7078_s24  ;;  %2758 = vmatpush1.bf16.msra.mxu0 %v2734_v63 }
 0x2b5   : >> { %2927 = vrot.lane.b32.xlu0 %v7914_v50, %s7078_s24  ;;  %1247 = vmatpush1.bf16.msra.mxu1 %v1223_v16 }
 0x2b6   : >> { %v1207_v4 = vpop.permute.xlu1 %1206 }
 0x2b7   : >> { %v1205_v36 = vpop.permute.xlu0 %1204 }
 0x2b8   : >> { %2925 = vrot.lane.b32.xlu1 %v7925_v17, %s7078_s24  ;;  %v1226_v32 = vsel %vm9730_vm15, %v1205_v36, %v1207_v4  ;;  %v6775_v4 = vld [vmem:[#allocation8 + $0xa0] sm:$0xff]  }
 0x2b9   : >> { %1414 = vrot.lane.b32.xlu0 %v8039_v7, %s7077_s26  ;;  %1248 = vmatprep.subr.bf16.mxu1 %v1226_v32  ;;  %v6774_v32 = vld [vmem:[#allocation8 + $0x38] sm:$0xff]  }
 0x2ba   : >> { %v2718_v34 = vpop.permute.xlu1 %2717 }
 0x2bb   : >> { %v2716_v38 = vpop.permute.xlu0 %2715 }
 0x2bc   : >> { %1424 = vrot.lane.b32.xlu1 %v8047_v59, %s7077_s26  ;;  %v2737_v40 = vsel %vm9729_vm14, %v2716_v38, %v2718_v34 }
 0x2bd   : >> { %1422 = vrot.lane.b32.xlu0 %v8052_v60, %s7077_s26  ;;  %2759 = vmatprep.subr.bf16.mxu0 %v2737_v40 }
 0x2be   : >> { %v2714_v41 = vpop.permute.xlu1 %2713 }
 0x2bf   : >> { %v2736_v42 = vsel %vm9729_vm14, %v2714_v41, %v2716_v38  ;;  %v1203_v43 = vpop.permute.xlu0 %1202 }
 0x2c0   : >> { %v1225_v45 = vsel %vm9730_vm15, %v1203_v43, %v1205_v36  ;;  %2935 = vrot.lane.b32.xlu1 %v8160_v53, %s7078_s24  ;;  %2760 = vmatpush1.bf16.msra.mxu0 %v2736_v42 }
 0x2c1   : >> { %2933 = vrot.lane.b32.xlu0 %v7936_v56, %s7078_s24  ;;  %1249 = vmatpush1.bf16.msra.mxu1 %v1225_v45 }
 0x2c2   : >> { %v1213_v28 = vpop.permute.xlu1 %1212 }
 0x2c3   : >> { %v1211_v13 = vpop.permute.xlu0 %1210 }
 0x2c4   : >> { %2931 = vrot.lane.b32.xlu1 %v7948_v9, %s7078_s24  ;;  %v1228_v46 = vsel %vm9730_vm15, %v1211_v13, %v1213_v28 }
 0x2c5   : >> { %1420 = vrot.lane.b32.xlu0 %v8066_v22, %s7077_s26  ;;  %1250 = vmatprep.subr.bf16.mxu1 %v1228_v46 }
 0x2c6   : >> { %v2724_v47 = vpop.permute.xlu1 %2723 }
 0x2c7   : >> { %v2722_v52 = vpop.permute.xlu0 %2721 }
 0x2c8   : >> { %1430 = vrot.lane.b32.xlu1 %v8072_v23, %s7077_s26  ;;  %v2739_v20 = vsel %vm9729_vm14, %v2722_v52, %v2724_v47 }
 0x2c9   : >> { %1428 = vrot.lane.b32.xlu0 %v8077_v25, %s7077_s26  ;;  %2761 = vmatprep.subr.bf16.mxu0 %v2739_v20 }
 0x2ca   : >> { %v2720_v54 = vpop.permute.xlu1 %2719 }
 0x2cb   : >> { %v2738_v55 = vsel %vm9729_vm14, %v2720_v54, %v2722_v52  ;;  %v1209_v8 = vpop.permute.xlu0 %1208 }
 0x2cc   : >> { %v1227_v48 = vsel %vm9730_vm15, %v1209_v8, %v1211_v13  ;;  %2941 = vrot.lane.b32.xlu1 %v8179_v61, %s7078_s24  ;;  %2762 = vmatpush1.bf16.msra.mxu0 %v2738_v55 }
 0x2cd   : >> { %2939 = vrot.lane.b32.xlu0 %v7942_v58, %s7078_s24  ;;  %1251 = vmatpush1.bf16.msra.mxu1 %v1227_v48 }
 0x2ce   : >> { %v1219_v6 = vpop.permute.xlu1 %1218 }
 0x2cf   : >> { %v1217_v57 = vpop.permute.xlu0 %1216 }
 0x2d0   : >> { %2937 = vrot.lane.b32.xlu1 %v7953_v11, %s7078_s24  ;;  %v1230_v33 = vsel %vm9730_vm15, %v1217_v57, %v1219_v6 }
 0x2d1   : >> { %1426 = vrot.lane.b32.xlu0 %v8091_v29, %s7077_s26  ;;  %1252 = vmatprep.subr.bf16.mxu1 %v1230_v33 }
 0x2d2   : >> { %v2730_v5 = vpop.permute.xlu1 %2729 }
 0x2d3   : >> { %v2728_v10 = vpop.permute.xlu0 %2727 }
 0x2d4   : >> { %1436 = vrot.lane.b32.xlu1 %v7962_v14, %s7077_s26  ;;  %v2741_v62 = vsel %vm9729_vm14, %v2728_v10, %v2730_v5 }
 0x2d5   : >> { %1434 = vrot.lane.b32.xlu0 %v7967_v21, %s7077_s26  ;;  %2763 = vmatprep.subr.bf16.mxu0 %v2741_v62 }
 0x2d6   : >> { %v2726_v63 = vpop.permute.xlu1 %2725 }
 0x2d7   : >> { %v2740_v15 = vsel %vm9729_vm14, %v2726_v63, %v2728_v10  ;;  %v1215_v16 = vpop.permute.xlu0 %1214  ;;  %vm9731_vm14 = vcmask 859136  }
 0x2d8   : >> { %v1229_v36 = vsel %vm9730_vm15, %v1215_v16, %v1217_v57  ;;  %2947 = vrot.lane.b32.xlu1 %v8199_v27, %s7078_s24  ;;  %2764 = vmatpush1.bf16.msra.mxu0 %v2740_v15  ;;  %vm9734_vm15 = vcmask 80896  }
 0x2d9   : >> { %2945 = vrot.lane.b32.xlu0 %v7977_v31, %s7078_s24  ;;  %1253 = vmatpush1.bf16.msra.mxu1 %v1229_v36 }
 0x2da   : >> { %v1304_v34 = vpop.permute.xlu1 %1303 }
 0x2db   : >> { %v1302_v38 = vpop.permute.xlu0 %1301  ;;  %6296 = vmatmul.mubr.msk.bf16.vlgmr.msra.gmra.mrb[0].mxu0 %vm488_vm6, %v6775_v4 }
 0x2dc   : >> { %2943 = vrot.lane.b32.xlu1 %v7983_v35, %s7078_s24  ;;  %v1331_v40 = vsel %vm9732_vm13, %v1302_v38, %v1304_v34  ;;  %6245 = vmatmul.mubr.msk.bf16.vlgmr.msra.gmra.mrb[0].mxu1 %vm488_vm6, %v6774_v32 }
 0x2dd   : >> { %1432 = vrot.lane.b32.xlu0 %v7989_v37, %s7077_s26  ;;  %1353 = vmatprep.subr.bf16.mxu1 %v1331_v40 }
 0x2de   : >> { %v2815_v41 = vpop.permute.xlu1 %2814  ;;  %1385 = vmatprep.mubr.bf16.mxu1 %v7059_v18  ;;  %2896 = vmatprep.mubr.bf16.mxu0 %v7059_v18 }
 0x2df   : >> { %v2813_v42 = vpop.permute.xlu0 %2812 }
 0x2e0   : >> { %1521 = vrot.lane.b32.xlu1 %v7995_v26, %s7079_s23  ;;  %v2842_v43 = vsel %vm9731_vm14, %v2813_v42, %v2815_v41 }
 0x2e1   : >> { %1519 = vrot.lane.b32.xlu0 %v8000_v39, %s7079_s23  ;;  %2864 = vmatprep.subr.bf16.mxu0 %v2842_v43 }
 0x2e2   : >> { %v2811_v45 = vpop.permute.xlu1 %2810 }
 0x2e3   : >> { %v2841_v28 = vsel %vm9731_vm14, %v2811_v45, %v2813_v42  ;;  %v1300_v13 = vpop.permute.xlu0 %1299 }
 0x2e4   : >> { %v1330_v46 = vsel %vm9732_vm13, %v1300_v13, %v1302_v38  ;;  %3032 = vrot.lane.b32.xlu1 %v8120_v12, %s7080_s27  ;;  %2865 = vmatpush1.bf16.msra.mxu0 %v2841_v28 }
 0x2e5   : >> { %3030 = vrot.lane.b32.xlu0 %v7908_v30, %s7080_s27  ;;  %1354 = vmatpush1.bf16.msra.mxu1 %v1330_v46 }
 0x2e6   : >> { %v1310_v47 = vpop.permute.xlu1 %1309 }
 0x2e7   : >> { %v1308_v52 = vpop.permute.xlu0 %1307 }
 0x2e8   : >> { %3028 = vrot.lane.b32.xlu1 %v7920_v51, %s7080_s27  ;;  %v1333_v20 = vsel %vm9732_vm13, %v1308_v52, %v1310_v47 }
 0x2e9   : >> { %1517 = vrot.lane.b32.xlu0 %v8014_v44, %s7079_s23  ;;  %1355 = vmatprep.subr.bf16.mxu1 %v1333_v20  ;;  %v6777_v20 = vld [vmem:[#allocation8 + $0xa8] sm:$0xff]  }
 0x2ea   : >> { %v2821_v54 = vpop.permute.xlu1 %2820 }
 0x2eb   : >> { %v2819_v55 = vpop.permute.xlu0 %2818 }
 0x2ec   : >> { %1527 = vrot.lane.b32.xlu1 %v8020_v49, %s7079_s23  ;;  %v2844_v8 = vsel %vm9731_vm14, %v2819_v55, %v2821_v54 }
 0x2ed   : >> { %1525 = vrot.lane.b32.xlu0 %v8025_v19, %s7079_s23  ;;  %2866 = vmatprep.subr.bf16.mxu0 %v2844_v8 }
 0x2ee   : >> { %v2817_v30 = vpop.permute.xlu1 %2816 }
 0x2ef   : >> { %v2843_v51 = vsel %vm9731_vm14, %v2817_v30, %v2819_v55  ;;  %v1306_v48 = vpop.permute.xlu0 %1305  ;;  %v6776_v55 = vld [vmem:[#allocation8 + $0x40] sm:$0xff]  }
 0x2f0   : >> { %v1332_v6 = vsel %vm9732_vm13, %v1306_v48, %v1308_v52  ;;  %3038 = vrot.lane.b32.xlu1 %v8139_v24, %s7080_s27  ;;  %2867 = vmatpush1.bf16.msra.mxu0 %v2843_v51 }
 0x2f1   : >> { %3036 = vrot.lane.b32.xlu0 %v7914_v50, %s7080_s27  ;;  %1356 = vmatpush1.bf16.msra.mxu1 %v1332_v6 }
 0x2f2   : >> { %v1316_v57 = vpop.permute.xlu1 %1315 }
 0x2f3   : >> { %v1314_v33 = vpop.permute.xlu0 %1313 }
 0x2f4   : >> { %3034 = vrot.lane.b32.xlu1 %v7925_v17, %s7080_s27  ;;  %v1335_v5 = vsel %vm9732_vm13, %v1314_v33, %v1316_v57  ;;  %v6814_v57 = vld [vmem:[%s7352_s16 + $0x8] ss:$16 sps:$4 sm:$0xff]  }
 0x2f5   : >> { %1523 = vrot.lane.b32.xlu0 %v8039_v7, %s7079_s23  ;;  %1357 = vmatprep.subr.bf16.mxu1 %v1335_v5  ;;  %v6815_v5 = vld [vmem:[%s7352_s16 + $0x4] ss:$16 sps:$4 sm:$0xff]  }
 0x2f6   : >> { %v2827_v10 = vpop.permute.xlu1 %2826 }
 0x2f7   : >> { %v2825_v62 = vpop.permute.xlu0 %2824 }
 0x2f8   : >> { %1533 = vrot.lane.b32.xlu1 %v8047_v59, %s7079_s23  ;;  %v2846_v63 = vsel %vm9731_vm14, %v2825_v62, %v2827_v10 }
 0x2f9   : >> { %1531 = vrot.lane.b32.xlu0 %v8052_v60, %s7079_s23  ;;  %2868 = vmatprep.subr.bf16.mxu0 %v2846_v63 }
 0x2fa   : >> { %v2823_v50 = vpop.permute.xlu1 %2822 }
 0x2fb   : >> { %v2845_v17 = vsel %vm9731_vm14, %v2823_v50, %v2825_v62  ;;  %v1312_v15 = vpop.permute.xlu0 %1311 }
 0x2fc   : >> { %v1334_v16 = vsel %vm9732_vm13, %v1312_v15, %v1314_v33  ;;  %3044 = vrot.lane.b32.xlu1 %v8160_v53, %s7080_s27  ;;  %2869 = vmatpush1.bf16.msra.mxu0 %v2845_v17 }
 0x2fd   : >> { %3042 = vrot.lane.b32.xlu0 %v7936_v56, %s7080_s27  ;;  %1358 = vmatpush1.bf16.msra.mxu1 %v1334_v16 }
 0x2fe   : >> { %v1322_v4 = vpop.permute.xlu1 %1321 }
 0x2ff   : >> { %v1320_v36 = vpop.permute.xlu0 %1319 }
 0x300   : >> { %3040 = vrot.lane.b32.xlu1 %v7948_v9, %s7080_s27  ;;  %v1337_v32 = vsel %vm9732_vm13, %v1320_v36, %v1322_v4  ;;  %v6817_v4 = vld [vmem:[%s7352_s16 + $0x24] ss:$16 sps:$4 sm:$0xff]  }
 0x301   : >> { %1529 = vrot.lane.b32.xlu0 %v8066_v22, %s7079_s23  ;;  %1359 = vmatprep.subr.bf16.mxu1 %v1337_v32 }
 0x302   : >> { %v2833_v34 = vpop.permute.xlu1 %2832 }
 0x303   : >> { %v2831_v38 = vpop.permute.xlu0 %2830 }
 0x304   : >> { %1539 = vrot.lane.b32.xlu1 %v8072_v23, %s7079_s23  ;;  %v2848_v40 = vsel %vm9731_vm14, %v2831_v38, %v2833_v34 }
 0x305   : >> { %1537 = vrot.lane.b32.xlu0 %v8077_v25, %s7079_s23  ;;  %2870 = vmatprep.subr.bf16.mxu0 %v2848_v40 }
 0x306   : >> { %v2829_v56 = vpop.permute.xlu1 %2828 }
 0x307   : >> { %v2847_v9 = vsel %vm9731_vm14, %v2829_v56, %v2831_v38  ;;  %v1318_v41 = vpop.permute.xlu0 %1317 }
 0x308   : >> { %v1336_v42 = vsel %vm9732_vm13, %v1318_v41, %v1320_v36  ;;  %3050 = vrot.lane.b32.xlu1 %v8179_v61, %s7080_s27  ;;  %2871 = vmatpush1.bf16.msra.mxu0 %v2847_v9  ;;  %v6819_v41 = vld [vmem:[%s7352_s16 + $0x44] ss:$16 sps:$4 sm:$0xff]  }
 0x309   : >> { %3048 = vrot.lane.b32.xlu0 %v7942_v58, %s7080_s27  ;;  %1360 = vmatpush1.bf16.msra.mxu1 %v1336_v42 }
 0x30a   : >> { %v1328_v43 = vpop.permute.xlu1 %1327 }
 0x30b   : >> { %v1326_v45 = vpop.permute.xlu0 %1325 }
 0x30c   : >> { %3046 = vrot.lane.b32.xlu1 %v7953_v11, %s7080_s27  ;;  %v1339_v28 = vsel %vm9732_vm13, %v1326_v45, %v1328_v43 }
 0x30d   : >> { %1535 = vrot.lane.b32.xlu0 %v8091_v29, %s7079_s23  ;;  %1361 = vmatprep.subr.bf16.mxu1 %v1339_v28 }
 0x30e   : >> { %v2839_v13 = vpop.permute.xlu1 %2838 }
 0x30f   : >> { %v2837_v46 = vpop.permute.xlu0 %2836 }
 0x310   : >> { %1545 = vrot.lane.b32.xlu1 %v7962_v14, %s7079_s23  ;;  %v2850_v47 = vsel %vm9731_vm14, %v2837_v46, %v2839_v13 }
 0x311   : >> { %1543 = vrot.lane.b32.xlu0 %v7967_v21, %s7079_s23  ;;  %2872 = vmatprep.subr.bf16.mxu0 %v2850_v47 }
 0x312   : >> { %v2835_v58 = vpop.permute.xlu1 %2834 }
 0x313   : >> { %v2849_v11 = vsel %vm9731_vm14, %v2835_v58, %v2837_v46  ;;  %v1324_v52 = vpop.permute.xlu0 %1323  ;;  %vm9733_vm14 = vcmask 850944   ;;  %v6820_v46 = vld [vmem:[%s7352_s16 + $0x68] ss:$16 sps:$4 sm:$0xff]  }
 0x314   : >> { %v1338_v54 = vsel %vm9732_vm13, %v1324_v52, %v1326_v45  ;;  %3056 = vrot.lane.b32.xlu1 %v8199_v27, %s7080_s27  ;;  %2873 = vmatpush1.bf16.msra.mxu0 %v2849_v11  ;;  %v6822_v52 = vld [vmem:[%s7352_s16 + $0x88] ss:$16 sps:$4 sm:$0xff]   ;;  %vm9738_vm13 = vcmask 15360  }
 0x315   : >> { %3054 = vrot.lane.b32.xlu0 %v7977_v31, %s7080_s27  ;;  %1362 = vmatpush1.bf16.msra.mxu1 %v1338_v54  ;;  %v6823_v54 = vld [vmem:[%s7352_s16 + $0x84] ss:$16 sps:$4 sm:$0xff]  }
 0x316   : >> { %v1413_v14 = vpop.permute.xlu1 %1412 }
 0x317   : >> { %v1411_v21 = vpop.permute.xlu0 %1410  ;;  %6298 = vmatmul.mubr.msk.bf16.vlgmr.msra.gmra.mrb[0].mxu0 %vm488_vm6, %v6777_v20 }
 0x318   : >> { %3052 = vrot.lane.b32.xlu1 %v7983_v35, %s7080_s27  ;;  %v1440_v8 = vsel %vm9734_vm15, %v1411_v21, %v1413_v14  ;;  %6247 = vmatmul.mubr.msk.bf16.vlgmr.msra.gmra.mrb[0].mxu1 %vm488_vm6, %v6776_v55  ;;  %s8531_s27 = sld [smem:[#allocation10 + $0x1]] (%p332_p9) }
 0x319   : >> { %1541 = vrot.lane.b32.xlu0 %v7989_v37, %s7079_s23  ;;  %1462 = vmatprep.subr.bf16.mxu1 %v1440_v8  ;;  %v6779_v8 = vld [vmem:[#allocation8 + $0xb0] sm:$0xff]  }
 0x31a   : >> { %v2924_v30 = vpop.permute.xlu1 %2923  ;;  %1494 = vmatprep.mubr.bf16.mxu1 %v7059_v18  ;;  %3005 = vmatprep.mubr.bf16.mxu0 %v7059_v18 }
 0x31b   : >> { %v2922_v31 = vpop.permute.xlu0 %2921 }
 0x31c   : >> { %1630 = vrot.lane.b32.xlu1 %v7995_v26, %s7081_s11  ;;  %v2951_v35 = vsel %vm9733_vm14, %v2922_v31, %v2924_v30  ;;  %v6778_v30 = vld [vmem:[#allocation8 + $0x48] sm:$0xff]  }
 0x31d   : >> { %1628 = vrot.lane.b32.xlu0 %v8000_v39, %s7081_s11  ;;  %2973 = vmatprep.subr.bf16.mxu0 %v2951_v35 }
 0x31e   : >> { %v2920_v37 = vpop.permute.xlu1 %2919 }
 0x31f   : >> { %v2950_v51 = vsel %vm9733_vm14, %v2920_v37, %v2922_v31  ;;  %v1409_v48 = vpop.permute.xlu0 %1408  ;;  %v6824_v31 = vld [vmem:[%s7352_s16 + $0x88] ss:$16 sps:$4 sm:$0xff]  }
 0x320   : >> { %v1439_v6 = vsel %vm9734_vm15, %v1409_v48, %v1411_v21  ;;  %3141 = vrot.lane.b32.xlu1 %v8120_v12, %s7082_s12  ;;  %2974 = vmatpush1.bf16.msra.mxu0 %v2950_v51  ;;  %v6825_v51 = vld [vmem:[%s7352_s16 + $0x84] ss:$16 sps:$4 sm:$0xff]  }
 0x321   : >> { %3139 = vrot.lane.b32.xlu0 %v6814_v57, %s7082_s12  ;;  %1463 = vmatpush1.bf16.msra.mxu1 %v1439_v6  ;;  %v6826_v6 = vld [vmem:[%s7352_s16 + $0x80] ss:$16 sps:$4 sm:$0xff]  }
 0x322   : >> { %v1419_v26 = vpop.permute.xlu1 %1418 }
 0x323   : >> { %v1417_v33 = vpop.permute.xlu0 %1416 }
 0x324   : >> { %3137 = vrot.lane.b32.xlu1 %v6815_v5, %s7082_s12  ;;  %v1442_v39 = vsel %vm9734_vm15, %v1417_v33, %v1419_v26  ;;  %v3238_v26 = vld [vmem:[%s9716_s2] sm:$0xff] }
 0x325   : >> { %1626 = vrot.lane.b32.xlu0 %v8014_v44, %s7081_s11  ;;  %1464 = vmatprep.subr.bf16.mxu1 %v1442_v39  ;;  %v6816_v44 = vld [vmem:[%s7352_s16 + $0x28] ss:$16 sps:$4 sm:$0xff]  }
 0x326   : >> { %v2930_v10 = vpop.permute.xlu1 %2929 }
 0x327   : >> { %v2928_v62 = vpop.permute.xlu0 %2927 }
 0x328   : >> { %1636 = vrot.lane.b32.xlu1 %v8020_v49, %s7081_s11  ;;  %v2953_v12 = vsel %vm9733_vm14, %v2928_v62, %v2930_v10 }
 0x329   : >> { %1634 = vrot.lane.b32.xlu0 %v8025_v19, %s7081_s11  ;;  %2975 = vmatprep.subr.bf16.mxu0 %v2953_v12 }
 0x32a   : >> { %v2926_v63 = vpop.permute.xlu1 %2925 }
 0x32b   : >> { %v2952_v50 = vsel %vm9733_vm14, %v2926_v63, %v2928_v62  ;;  %v1415_v17 = vpop.permute.xlu0 %1414 }
 0x32c   : >> { %v1441_v15 = vsel %vm9734_vm15, %v1415_v17, %v1417_v33  ;;  %3147 = vrot.lane.b32.xlu1 %v8139_v24, %s7082_s12  ;;  %2976 = vmatpush1.bf16.msra.mxu0 %v2952_v50 }
 0x32d   : >> { %3145 = vrot.lane.b32.xlu0 %v6816_v44, %s7082_s12  ;;  %1465 = vmatpush1.bf16.msra.mxu1 %v1441_v15 }
 0x32e   : >> { %v1425_v49 = vpop.permute.xlu1 %1424 }
 0x32f   : >> { %v1423_v16 = vpop.permute.xlu0 %1422 }
 0x330   : >> { %3143 = vrot.lane.b32.xlu1 %v6817_v4, %s7082_s12  ;;  %v1444_v19 = vsel %vm9734_vm15, %v1423_v16, %v1425_v49 }
 0x331   : >> { %1632 = vrot.lane.b32.xlu0 %v8039_v7, %s7081_s11  ;;  %1466 = vmatprep.subr.bf16.mxu1 %v1444_v19  ;;  %v6818_v7 = vld [vmem:[%s7352_s16 + $0x48] ss:$16 sps:$4 sm:$0xff]  }
 0x332   : >> { %v2936_v36 = vpop.permute.xlu1 %2935 }
 0x333   : >> { %v2934_v32 = vpop.permute.xlu0 %2933 }
 0x334   : >> { %1642 = vrot.lane.b32.xlu1 %v8047_v59, %s7081_s11  ;;  %v2955_v24 = vsel %vm9733_vm14, %v2934_v32, %v2936_v36 }
 0x335   : >> { %1640 = vrot.lane.b32.xlu0 %v8052_v60, %s7081_s11  ;;  %2977 = vmatprep.subr.bf16.mxu0 %v2955_v24 }
 0x336   : >> { %v2932_v34 = vpop.permute.xlu1 %2931 }
 0x337   : >> { %v2954_v38 = vsel %vm9733_vm14, %v2932_v34, %v2934_v32  ;;  %v1421_v40 = vpop.permute.xlu0 %1420 }
 0x338   : >> { %v1443_v56 = vsel %vm9734_vm15, %v1421_v40, %v1423_v16  ;;  %3153 = vrot.lane.b32.xlu1 %v8160_v53, %s7082_s12  ;;  %2978 = vmatpush1.bf16.msra.mxu0 %v2954_v38 }
 0x339   : >> { %3151 = vrot.lane.b32.xlu0 %v6818_v7, %s7082_s12  ;;  %1467 = vmatpush1.bf16.msra.mxu1 %v1443_v56 }
 0x33a   : >> { %v1431_v59 = vpop.permute.xlu1 %1430 }
 0x33b   : >> { %v1429_v9 = vpop.permute.xlu0 %1428 }
 0x33c   : >> { %3149 = vrot.lane.b32.xlu1 %v6819_v41, %s7082_s12  ;;  %v1446_v60 = vsel %vm9734_vm15, %v1429_v9, %v1431_v59 }
 0x33d   : >> { %1638 = vrot.lane.b32.xlu0 %v8066_v22, %s7081_s11  ;;  %1468 = vmatprep.subr.bf16.mxu1 %v1446_v60 }
 0x33e   : >> { %v2942_v42 = vpop.permute.xlu1 %2941 }
 0x33f   : >> { %v2940_v43 = vpop.permute.xlu0 %2939 }
 0x340   : >> { %1648 = vrot.lane.b32.xlu1 %v8072_v23, %s7081_s11  ;;  %v2957_v53 = vsel %vm9733_vm14, %v2940_v43, %v2942_v42 }
 0x341   : >> { %1646 = vrot.lane.b32.xlu0 %v8077_v25, %s7081_s11  ;;  %2979 = vmatprep.subr.bf16.mxu0 %v2957_v53  ;;  %v6821_v25 = vld [vmem:[%s7352_s16 + $0x64] ss:$16 sps:$4 sm:$0xff]   ;;  %s6375_s16 = sadd.s32 32, %s6212_s9 }
 0x342   : >> { %v2938_v45 = vpop.permute.xlu1 %2937  ;;  %s3275_s24 = sshra.s32 %s6375_s16, 4 }
 0x343   : >> { %v2956_v28 = vsel %vm9733_vm14, %v2938_v45, %v2940_v43  ;;  %v1427_v13 = vpop.permute.xlu0 %1426  ;;  %s6376_s23 = sshll.u32 %s3275_s24, 5 }
 0x344   : >> { %v1445_v22 = vsel %vm9734_vm15, %v1427_v13, %v1429_v9  ;;  %3159 = vrot.lane.b32.xlu1 %v8179_v61, %s7082_s12  ;;  %2980 = vmatpush1.bf16.msra.mxu0 %v2956_v28  ;;  %s3279_s9 = scalar_lea.vmem [#allocation2], %s6376_s23 }
 0x345   : >> { %3157 = vrot.lane.b32.xlu0 %v6820_v46, %s7082_s12  ;;  %1469 = vmatpush1.bf16.msra.mxu1 %v1445_v22 }
 0x346   : >> { %v1437_v23 = vpop.permute.xlu1 %1436 }
 0x347   : >> { %v1435_v47 = vpop.permute.xlu0 %1434 }
 0x348   : >> { %3155 = vrot.lane.b32.xlu1 %v6821_v25, %s7082_s12  ;;  %v1448_v58 = vsel %vm9734_vm15, %v1435_v47, %v1437_v23 }
 0x349   : >> { %1644 = vrot.lane.b32.xlu0 %v8091_v29, %s7081_s11  ;;  %1470 = vmatprep.subr.bf16.mxu1 %v1448_v58 }
 0x34a   : >> { %v2948_v11 = vpop.permute.xlu1 %2947 }
 0x34b   : >> { %v2946_v61 = vpop.permute.xlu0 %2945 }
 0x34c   : >> { %1654 = vrot.lane.b32.xlu1 %v6822_v52, %s7081_s11  ;;  %v2959_v20 = vsel %vm9733_vm14, %v2946_v61, %v2948_v11 }
 0x34d   : >> { %1652 = vrot.lane.b32.xlu0 %v6823_v54, %s7081_s11  ;;  %2981 = vmatprep.subr.bf16.mxu0 %v2959_v20 }
 0x34e   : >> { %v2944_v55 = vpop.permute.xlu1 %2943 }
 0x34f   : >> { %v2958_v14 = vsel %vm9733_vm14, %v2944_v55, %v2946_v61  ;;  %v1433_v21 = vpop.permute.xlu0 %1432  ;;  %vm9735_vm14 = vcmask 842752  }
 0x350   : >> { %v1447_v29 = vsel %vm9734_vm15, %v1433_v21, %v1435_v47  ;;  %3165 = vrot.lane.b32.xlu1 %v8199_v27, %s7082_s12  ;;  %2982 = vmatpush1.bf16.msra.mxu0 %v2958_v14  ;;  %v3239_v27 = vld [vmem:[%s9716_s2 + $0x8] sm:$0xff]  ;;  %v6781_v14 = vld [vmem:[#allocation8 + $0xb8] sm:$0xff]   ;;  %vm9737_vm15 = vcmask 7168  }
 0x351   : >> { %3163 = vrot.lane.b32.xlu0 %v6824_v31, %s7082_s12  ;;  %1471 = vmatpush1.bf16.msra.mxu1 %v1447_v29 }
 0x352   : >> { %v1522_v35 = vpop.permute.xlu1 %1521 }
 0x353   : >> { %v1520_v37 = vpop.permute.xlu0 %1519  ;;  %6300 = vmatmul.mubr.msk.bf16.vlgmr.msra.gmra.mrb[0].mxu0 %vm488_vm6, %v6779_v8  ;;  %v6780_v8 = vld [vmem:[#allocation8 + $0x50] sm:$0xff]  }
 0x354   : >> { %3161 = vrot.lane.b32.xlu1 %v6825_v51, %s7082_s12  ;;  %v1549_v48 = vsel %vm9738_vm13, %v1520_v37, %v1522_v35  ;;  %6249 = vmatmul.mubr.msk.bf16.vlgmr.msra.gmra.mrb[0].mxu1 %vm488_vm6, %v6778_v30 }
 0x355   : >> { %1650 = vrot.lane.b32.xlu0 %v6826_v6, %s7081_s11  ;;  %1571 = vmatprep.subr.bf16.mxu1 %v1549_v48  ;;  %s8533_s11 = smov (%p332_p9), 0  }
 0x356   : >> { %v3033_v57 = vpop.permute.xlu1 %3032  ;;  %1603 = vmatprep.mubr.bf16.mxu1 %v7059_v18  ;;  %3114 = vmatprep.mubr.bf16.mxu0 %v7059_v18 }
 0x357   : >> { %v3031_v33 = vpop.permute.xlu0 %3030 }
 0x358   : >> { %v3060_v5 = vsel %vm9735_vm14, %v3031_v33, %v3033_v57  ;;  %3247 = vperm.xlu1 %6718, %v3239_v27  }
 0x359   : >> { %3082 = vmatprep.subr.bf16.mxu0 %v3060_v5  ;;  %3242 = vperm.xlu0 %6717, %v3238_v26  }
 0x35a   : >> { %v3029_v39 = vpop.permute.xlu1 %3028 }
 0x35b   : >> { %v3059_v10 = vsel %vm9735_vm14, %v3029_v39, %v3031_v33  ;;  %v1518_v62 = vpop.permute.xlu0 %1517 }
 0x35c   : >> { %v1548_v12 = vsel %vm9738_vm13, %v1518_v62, %v1520_v37  ;;  %3083 = vmatpush1.bf16.msra.mxu0 %v3059_v10 }
 0x35d   : >> { %1572 = vmatpush1.bf16.msra.mxu1 %v1548_v12 }
 0x35e   : >> { %v1528_v63 = vpop.permute.xlu1 %1527 }
 0x35f   : >> { %v1526_v50 = vpop.permute.xlu0 %1525 }
 0x360   : >> { %v1551_v17 = vsel %vm9738_vm13, %v1526_v50, %v1528_v63 }
 0x361   : >> { %1573 = vmatprep.subr.bf16.mxu1 %v1551_v17 }
 0x362   : >> { %v3039_v15 = vpop.permute.xlu1 %3038 }
 0x363   : >> { %v3037_v44 = vpop.permute.xlu0 %3036 }
 0x364   : >> { %v3062_v49 = vsel %vm9735_vm14, %v3037_v44, %v3039_v15 }
 0x365   : >> { %3084 = vmatprep.subr.bf16.mxu0 %v3062_v49 }
 0x366   : >> { %v3035_v16 = vpop.permute.xlu1 %3034 }
 0x367   : >> { %v3061_v4 = vsel %vm9735_vm14, %v3035_v16, %v3037_v44  ;;  %v1524_v19 = vpop.permute.xlu0 %1523 }
 0x368   : >> { %v1550_v36 = vsel %vm9738_vm13, %v1524_v19, %v1526_v50  ;;  %3085 = vmatpush1.bf16.msra.mxu0 %v3061_v4 }
 0x369   : >> { %1574 = vmatpush1.bf16.msra.mxu1 %v1550_v36 }
 0x36a   : >> { %v1534_v32 = vpop.permute.xlu1 %1533 }
 0x36b   : >> { %v1532_v24 = vpop.permute.xlu0 %1531 }
 0x36c   : >> { %v1553_v34 = vsel %vm9738_vm13, %v1532_v24, %v1534_v32 }
 0x36d   : >> { %1575 = vmatprep.subr.bf16.mxu1 %v1553_v34 }
 0x36e   : >> { %v3045_v38 = vpop.permute.xlu1 %3044 }
 0x36f   : >> { %v3043_v40 = vpop.permute.xlu0 %3042 }
 0x370   : >> { %v3064_v56 = vsel %vm9735_vm14, %v3043_v40, %v3045_v38 }
 0x371   : >> { %3086 = vmatprep.subr.bf16.mxu0 %v3064_v56 }
 0x372   : >> { %v3041_v7 = vpop.permute.xlu1 %3040 }
 0x373   : >> { %v3063_v59 = vsel %vm9735_vm14, %v3041_v7, %v3043_v40  ;;  %v1530_v9 = vpop.permute.xlu0 %1529 }
 0x374   : >> { %v1552_v41 = vsel %vm9738_vm13, %v1530_v9, %v1532_v24  ;;  %3087 = vmatpush1.bf16.msra.mxu0 %v3063_v59 }
 0x375   : >> { %1576 = vmatpush1.bf16.msra.mxu1 %v1552_v41 }
 0x376   : >> { %v1540_v60 = vpop.permute.xlu1 %1539 }
 0x377   : >> { %v1538_v42 = vpop.permute.xlu0 %1537 }
 0x378   : >> { %v1555_v43 = vsel %vm9738_vm13, %v1538_v42, %v1540_v60 }
 0x379   : >> { %1577 = vmatprep.subr.bf16.mxu1 %v1555_v43 }
 0x37a   : >> { %v3051_v53 = vpop.permute.xlu1 %3050 }
 0x37b   : >> { %v3049_v45 = vpop.permute.xlu0 %3048 }
 0x37c   : >> { %v3066_v28 = vsel %vm9735_vm14, %v3049_v45, %v3051_v53 }
 0x37d   : >> { %3088 = vmatprep.subr.bf16.mxu0 %v3066_v28 }
 0x37e   : >> { %v3047_v13 = vpop.permute.xlu1 %3046 }
 0x37f   : >> { %v3065_v22 = vsel %vm9735_vm14, %v3047_v13, %v3049_v45  ;;  %v1536_v46 = vpop.permute.xlu0 %1535 }
 0x380   : >> { %v1554_v23 = vsel %vm9738_vm13, %v1536_v46, %v1538_v42  ;;  %3089 = vmatpush1.bf16.msra.mxu0 %v3065_v22 }
 0x381   : >> { %1578 = vmatpush1.bf16.msra.mxu1 %v1554_v23 }
 0x382   : >> { %v1546_v47 = vpop.permute.xlu1 %1545 }
 0x383   : >> { %v1544_v25 = vpop.permute.xlu0 %1543 }
 0x384   : >> { %v1557_v58 = vsel %vm9738_vm13, %v1544_v25, %v1546_v47 }
 0x385   : >> { %1579 = vmatprep.subr.bf16.mxu1 %v1557_v58 }
 0x386   : >> { %v3057_v11 = vpop.permute.xlu1 %3056 }
 0x387   : >> { %v3055_v61 = vpop.permute.xlu0 %3054 }
 0x388   : >> { %v3068_v52 = vsel %vm9735_vm14, %v3055_v61, %v3057_v11  ;;  %v6782_v11 = vld [vmem:[#allocation8 + $0x58] sm:$0xff]  }
 0x389   : >> { %3090 = vmatprep.subr.bf16.mxu0 %v3068_v52 }
 0x38a   : >> { %v3053_v20 = vpop.permute.xlu1 %3052 }
 0x38b   : >> { %v3067_v54 = vsel %vm9735_vm14, %v3053_v20, %v3055_v61  ;;  %v1542_v55 = vpop.permute.xlu0 %1541  ;;  %vm9736_vm14 = vcmask 834560  }
 0x38c   : >> { %v1556_v21 = vsel %vm9738_vm13, %v1542_v55, %v1544_v25  ;;  %3091 = vmatpush1.bf16.msra.mxu0 %v3067_v54  ;;  %v6783_v25 = vld [vmem:[#allocation8 + $0xc0] sm:$0xff]  }
 0x38d   : >> { %1580 = vmatpush1.bf16.msra.mxu1 %v1556_v21 }
 0x38e   : >> { %v1631_v29 = vpop.permute.xlu1 %1630 }
 0x38f   : >> { %v1629_v30 = vpop.permute.xlu0 %1628  ;;  %6302 = vmatmul.mubr.msk.bf16.vlgmr.msra.gmra.mrb[0].mxu0 %vm488_vm6, %v6781_v14 }
 0x390   : >> { %v1658_v31 = vsel %vm9737_vm15, %v1629_v30, %v1631_v29  ;;  %6251 = vmatmul.mubr.msk.bf16.vlgmr.msra.gmra.mrb[0].mxu1 %vm488_vm6, %v6780_v8  ;;  %3223 = vmatprep.mubr.bf16.mxu0 %v7059_v18 }
 0x391   : >> { %1680 = vmatprep.subr.bf16.mxu1 %v1658_v31  ;;  %1712 = vmatprep.mubr.bf16.mxu1 %v7059_v18  ;;  %v3258_v31 = vstv %s7337_s17 }
 0x392   : >> { %v3142_v35 = vpop.permute.xlu1 %3141 }
 0x393   : >> { %v3140_v37 = vpop.permute.xlu0 %3139 }
 0x394   : >> { %v3169_v51 = vsel %vm9736_vm14, %v3140_v37, %v3142_v35 }
 0x395   : >> { %3191 = vmatprep.subr.bf16.mxu0 %v3169_v51 }
 0x396   : >> { %v3138_v48 = vpop.permute.xlu1 %3137 }
 0x397   : >> { %v3168_v6 = vsel %vm9736_vm14, %v3138_v48, %v3140_v37  ;;  %v1627_v27 = vpop.permute.xlu0 %1626 }
 0x398   : >> { %v1657_v57 = vsel %vm9737_vm15, %v1627_v27, %v1629_v30  ;;  %3192 = vmatpush1.bf16.msra.mxu0 %v3168_v6 }
 0x399   : >> { %1681 = vmatpush1.bf16.msra.mxu1 %v1657_v57 }
 0x39a   : >> { %v1637_v26 = vpop.permute.xlu1 %1636 }
 0x39b   : >> { %v1635_v33 = vpop.permute.xlu0 %1634 }
 0x39c   : >> { %v1660_v5 = vsel %vm9737_vm15, %v1635_v33, %v1637_v26 }
 0x39d   : >> { %1682 = vmatprep.subr.bf16.mxu1 %v1660_v5 }
 0x39e   : >> { %v3148_v39 = vpop.permute.xlu1 %3147 }
 0x39f   : >> { %v3146_v18 = vpop.permute.xlu0 %3145 }
 0x3a0   : >> { %v3171_v10 = vsel %vm9736_vm14, %v3146_v18, %v3148_v39 }
 0x3a1   : >> { %3193 = vmatprep.subr.bf16.mxu0 %v3171_v10 }
 0x3a2   : >> { %v3144_v62 = vpop.permute.xlu1 %3143 }
 0x3a3   : >> { %v3170_v12 = vsel %vm9736_vm14, %v3144_v62, %v3146_v18  ;;  %v1633_v63 = vpop.permute.xlu0 %1632 }
 0x3a4   : >> { %v1659_v50 = vsel %vm9737_vm15, %v1633_v63, %v1635_v33  ;;  %3194 = vmatpush1.bf16.msra.mxu0 %v3170_v12 }
 0x3a5   : >> { %1683 = vmatpush1.bf16.msra.mxu1 %v1659_v50 }
 0x3a6   : >> { %v1643_v17 = vpop.permute.xlu1 %1642 }
 0x3a7   : >> { %v1641_v15 = vpop.permute.xlu0 %1640 }
 0x3a8   : >> { %v1662_v44 = vsel %vm9737_vm15, %v1641_v15, %v1643_v17 }
 0x3a9   : >> { %1684 = vmatprep.subr.bf16.mxu1 %v1662_v44 }
 0x3aa   : >> { %v3154_v49 = vpop.permute.xlu1 %3153 }
 0x3ab   : >> { %v3152_v16 = vpop.permute.xlu0 %3151 }
 0x3ac   : >> { %v3173_v4 = vsel %vm9736_vm14, %v3152_v16, %v3154_v49 }
 0x3ad   : >> { %3195 = vmatprep.subr.bf16.mxu0 %v3173_v4 }
 0x3ae   : >> { %v3150_v19 = vpop.permute.xlu1 %3149 }
 0x3af   : >> { %v3172_v36 = vsel %vm9736_vm14, %v3150_v19, %v3152_v16  ;;  %v1639_v32 = vpop.permute.xlu0 %1638 }
 0x3b0   : >> { %v1661_v24 = vsel %vm9737_vm15, %v1639_v32, %v1641_v15  ;;  %3196 = vmatpush1.bf16.msra.mxu0 %v3172_v36 }
 0x3b1   : >> { %1685 = vmatpush1.bf16.msra.mxu1 %v1661_v24 }
 0x3b2   : >> { %v1649_v34 = vpop.permute.xlu1 %1648 }
 0x3b3   : >> { %v1647_v38 = vpop.permute.xlu0 %1646 }
 0x3b4   : >> { %v1664_v40 = vsel %vm9737_vm15, %v1647_v38, %v1649_v34 }
 0x3b5   : >> { %1686 = vmatprep.subr.bf16.mxu1 %v1664_v40 }
 0x3b6   : >> { %v3160_v56 = vpop.permute.xlu1 %3159 }
 0x3b7   : >> { %v3158_v7 = vpop.permute.xlu0 %3157 }
 0x3b8   : >> { %v3175_v59 = vsel %vm9736_vm14, %v3158_v7, %v3160_v56 }
 0x3b9   : >> { %3197 = vmatprep.subr.bf16.mxu0 %v3175_v59 }
 0x3ba   : >> { %v3156_v9 = vpop.permute.xlu1 %3155 }
 0x3bb   : >> { %v3174_v41 = vsel %vm9736_vm14, %v3156_v9, %v3158_v7  ;;  %v1645_v60 = vpop.permute.xlu0 %1644 }
 0x3bc   : >> { %v1663_v42 = vsel %vm9737_vm15, %v1645_v60, %v1647_v38  ;;  %3198 = vmatpush1.bf16.msra.mxu0 %v3174_v41 }
 0x3bd   : >> { %1687 = vmatpush1.bf16.msra.mxu1 %v1663_v42 }
 0x3be   : >> { %v1655_v43 = vpop.permute.xlu1 %1654 }
 0x3bf   : >> { %v1653_v53 = vpop.permute.xlu0 %1652 }
 0x3c0   : >> { %v1666_v45 = vsel %vm9737_vm15, %v1653_v53, %v1655_v43 }
 0x3c1   : >> { %1688 = vmatprep.subr.bf16.mxu1 %v1666_v45 }
 0x3c2   : >> { %v3166_v28 = vpop.permute.xlu1 %3165 }
 0x3c3   : >> { %v3164_v13 = vpop.permute.xlu0 %3163 }
 0x3c4   : >> { %v3177_v22 = vsel %vm9736_vm14, %v3164_v13, %v3166_v28 }
 0x3c5   : >> { %3199 = vmatprep.subr.bf16.mxu0 %v3177_v22 }
 0x3c6   : >> { %v3162_v46 = vpop.permute.xlu1 %3161 }
 0x3c7   : >> { %v3176_v23 = vsel %vm9736_vm14, %v3162_v46, %v3164_v13  ;;  %v1651_v47 = vpop.permute.xlu0 %1650 }
 0x3c8   : >> { %v1665_v58 = vsel %vm9737_vm15, %v1651_v47, %v1653_v53  ;;  %3200 = vmatpush1.bf16.msra.mxu0 %v3176_v23 }
 0x3c9   : >> { %1689 = vmatpush1.bf16.msra.mxu1 %v1665_v58 }
 0x3cb   : >> { %6304 = vmatmul.mubr.msk.bf16.vlgmr.msra.gmra.mrb[0].mxu0 %vm488_vm6, %v6783_v25 }
 0x3cc   : >> { %6253 = vmatmul.mubr.msk.bf16.vlgmr.msra.gmra.mrb[0].mxu1 %vm488_vm6, %v6782_v11 }
 0x3d7   : >> { %v3248_v20 = vpop.permute.xlu1 %3247 }
 0x3d8   : >> { %v3243_v61 = vpop.permute.xlu0 %3242 }
 0x49e   : >> { %v3225_v52 = vpop.f32.mrb[0].mxu0 }
 0x49f   : >> { %v1714_v54 = vpop.f32.mrb[0].mxu1  ;;  %v3227_v55 = vpop.f32.mrb[1].mxu0 }
 0x4a0   : >> { %v6382_v14 = vadd.f32 %v3225_v52, %v1714_v54  ;;  %v1716_v21 = vpop.f32.mrb[1].mxu1  ;;  %v3229_v8 = vpop.f32.mrb[2].mxu0 }
 0x4a1   : >> { %v6383_v29 = vadd.f32 %v3227_v55, %v1716_v21  ;;  %v1718_v30 = vpop.f32.mrb[2].mxu1  ;;  %v3231_v35 = vpop.f32.mrb[3].mxu0 }
 0x4a2   : >> { %v6384_v37 = vadd.f32 %v3229_v8, %v1718_v30  ;;  %v3250_v51 = vadd.f32 %v6382_v14, %v3243_v61  ;;  %v1720_v48 = vpop.f32.mrb[3].mxu1 }
 0x4a3   : >> { %v3251_v6 = vadd.f32 %v6383_v29, %v3243_v61  ;;  %v6385_v27 = vadd.f32 %v3231_v35, %v1720_v48 }
 0x4a4   : >> { %vm3254_vm14 = vcmp.gt.f32.partialorder %v3250_v51, 0.0  ;;  %v3259_v57 = vmul.f32 %v3258_v31, %v3250_v51  ;;  %v3252_v26 = vadd.f32 %v6384_v37, %v3248_v20 }
 0x4a5   : >> { %vm3255_vm15 = vcmp.gt.f32.partialorder %v3251_v6, 0.0  ;;  %v3260_v33 = vmul.f32 %v3258_v31, %v3251_v6  ;;  %v3253_v5 = vadd.f32 %v6385_v27, %v3248_v20 }
 0x4a6   : >> { %v3263_v39 = vsel %vm3254_vm14, %v3250_v51, %v3259_v57  ;;  %vm3256_vm13 = vcmp.gt.f32.partialorder %v3252_v26, 0.0  ;;  %v3261_v18 = vmul.f32 %v3258_v31, %v3252_v26 }
 0x4a7   : >> { %v3264_v10 = vsel %vm3255_vm15, %v3251_v6, %v3260_v33  ;;  %vm3257_vm12 = vcmp.gt.f32.partialorder %v3253_v5, 0.0  ;;  %v3262_v62 = vmul.f32 %v3258_v31, %v3253_v5  ;;  %v3267_v63 = vsel %vm277_vm0, %v3263_v39, 0.0  ;;  %334 = sbr.rel (!%p332_p9) target bundleno = 131 (0x83), region = 162 }
 0x4a8   : >> { %v3265_v12 = vsel %vm3256_vm13, %v3252_v26, %v3261_v18  ;;  %v3268_v15 = vsel %vm278_vm1, %v3264_v10, 0.0 }
 0x4a9   : >> { %v3266_v50 = vsel %vm3257_vm12, %v3253_v5, %v3262_v62  ;;  %v3269_v17 = vsel %vm279_vm2, %v3265_v12, 0.0 }
 0x4aa   : >> { %v3270_v44 = vsel %vm280_vm3, %v3266_v50, 0.0  ;;  %v3273_v49 = vpack.c.bf16 %v3269_v17, %v3267_v63 }
 0x4ab   : >> { %v3274_v16 = vpack.c.bf16 %v3270_v44, %v3268_v15 }
 0x4ac   : >> { %3280 = vst [vmem:[%s3279_s9 + $0x8] sm:$0xff] %v3273_v49 }
 0x4ad   : >> { %3281 = vst [vmem:[%s3279_s9 + $0x10] sm:$0xff] %v3274_v16 }
 0x4ae LB: >> { %s6309_s12 = sshll.u32 %s7048_s11, 4  ;;  %s7083_s14 = smov 25   ;;  %v7084_v42 = vmov 0   ;;  %vm9755_vm4 = vcmask 203776   ;;  %v6829_v6 = vld [vmem:[#allocation8 + $0xd0] sm:$0xff]   ;;  %vm9756_vm5 = vcmask 211968   ;;  %s7048_s11 = sphi %s8533_s11, %s3288_s11  }
 0x4af   : >> { %s3290_s15 = sshra.s32 %s6309_s12, 4  ;;  %3423 = vmatprep.mubr.bf16.mxu1 %v7084_v42  ;;  %4669 = vmatprep.mubr.bf16.mxu0 %v7084_v42  ;;  %s7085_s17 = smov 26   ;;  %vm9757_vm12 = vcmask 1039360  }
 0x4b0   : >> { %s6377_s6 = sshll.u32 %s3290_s15, 5  ;;  %6827 = vset.pattern.permute.xlu0 %v7084_v42  ;;  %6828 = vset.pattern.permute.xlu1 %v7084_v42  ;;  %s7086_s30 = smov 24   ;;  %vm9758_vm13 = vmmov %vm9757_vm12 }
 0x4b1   : >> { %s8541_s13 = scalar_lea.vmem [#allocation2], %s6377_s6  ;;  %s7087_s26 = smov 23   ;;  %vm9759_vm14 = vmmov %vm9757_vm12 }
 0x4b2   : >> { %s7088_s16 = smov 22   ;;  %s7089_s24 = smov 14   ;;  %vm9760_vm15 = vmmov %vm9757_vm12 }
 0x4b3   : >> { %s7090_s23 = smov 13   ;;  %s7091_s9 = smov 127  }
 0x4b4   : >> { %v8544_v4 = vld [vmem:[%s8541_s13 + $0x10] sm:$0xff]  ;;  %v8547_v19 = vld [vmem:[%s8541_s13] sm:$0xff]  ;;  %v8557_v32 = vld [vmem:[%s8541_s13 + $0x8] sm:$0xff]  ;;  %s7092_s15 = smov 126   ;;  %s7093_s6 = smov 118  }
 0x4b5   : >> { %3340 = vrot.lane.b32.xlu1 %v8544_v4, %s7083_s14  ;;  %3336 = vrot.lane.b32.xlu0 %v8547_v19, %s7083_s14  ;;  %v8554_v36 = vld [vmem:[%s8541_s13 + $0x20] sm:$0xff]  ;;  %v8561_v24 = vld [vmem:[%s8541_s13 + $0x30] sm:$0xff]  ;;  %s3288_s11 = sadd.s32 1, %s7048_s11  }
 0x4b6   : >> { %4637 = vmatprep.subr.bf16.mxu0 %v8544_v4  ;;  %v8565_v34 = vld [vmem:[%s8541_s13 + $0x28] sm:$0xff]  ;;  %v8573_v38 = vld [vmem:[%s8541_s13 + $0x50] sm:$0xff]  ;;  %v8580_v56 = vld [vmem:[%s8541_s13 + $0x40] sm:$0xff]  ;;  %p3285_p12 = scmp.ge.s32.totalorder %s3288_s11, 8  }
 0x4b7   : >> { %4638 = vmatpush1.bf16.msra.mxu0 %v8557_v32  ;;  %v8577_v40 = vld [vmem:[%s8541_s13 + $0x48] sm:$0xff]  ;;  %v8588_v7 = vld [vmem:[%s8541_s13 + $0x70] sm:$0xff]  ;;  %v8592_v59 = vld [vmem:[%s8541_s13 + $0x60] sm:$0xff] }
 0x4b8   : >> { %4639 = vmatprep.subr.bf16.mxu0 %v8561_v24  ;;  %v8595_v9 = vld [vmem:[%s8541_s13 + $0x68] sm:$0xff]  ;;  %v8603_v41 = vld [vmem:[%s8541_s13 + $0x90] sm:$0xff]  ;;  %v8622_v43 = vld [vmem:[%s8541_s13 + $0x80] sm:$0xff] }
 0x4b9   : >> { %3342 = vrot.lane.b32.xlu1 %v8554_v36, %s7083_s14  ;;  %3338 = vrot.lane.b32.xlu0 %v8557_v32, %s7083_s14  ;;  %v8612_v60 = vld [vmem:[%s8541_s13 + $0x88] sm:$0xff] }
 0x4bb   : >> { %4640 = vmatpush1.bf16.msra.mxu0 %v8565_v34 }
 0x4bc   : >> { %4641 = vmatprep.subr.bf16.mxu0 %v8573_v38 }
 0x4bd   : >> { %3346 = vrot.lane.b32.xlu1 %v8561_v24, %s7083_s14  ;;  %3344 = vrot.lane.b32.xlu0 %v8565_v34, %s7083_s14 }
 0x4bf   : >> { %4642 = vmatpush1.bf16.msra.mxu0 %v8577_v40 }
 0x4c0   : >> { %4643 = vmatprep.subr.bf16.mxu0 %v8588_v7 }
 0x4c1   : >> { %3350 = vrot.lane.b32.xlu1 %v8577_v40, %s7083_s14  ;;  %3348 = vrot.lane.b32.xlu0 %v8580_v56, %s7083_s14 }
 0x4c3   : >> { %4644 = vmatpush1.bf16.msra.mxu0 %v8595_v9 }
 0x4c4   : >> { %4645 = vmatprep.subr.bf16.mxu0 %v8603_v41 }
 0x4c5   : >> { %3354 = vrot.lane.b32.xlu1 %v8592_v59, %s7083_s14  ;;  %3352 = vrot.lane.b32.xlu0 %v8573_v38, %s7083_s14 }
 0x4c7   : >> { %4646 = vmatpush1.bf16.msra.mxu0 %v8612_v60 }
 0x4c9   : >> { %3358 = vrot.lane.b32.xlu1 %v8588_v7, %s7083_s14  ;;  %3356 = vrot.lane.b32.xlu0 %v8595_v9, %s7083_s14 }
 0x4cd   : >> { %3362 = vrot.lane.b32.xlu1 %v8612_v60, %s7083_s14  ;;  %3360 = vrot.lane.b32.xlu0 %v8622_v43, %s7083_s14 }
 0x4d1   : >> { %3439 = vrot.lane.b32.xlu1 %v8547_v19, %s7085_s17  ;;  %3364 = vrot.lane.b32.xlu0 %v8603_v41, %s7083_s14  ;;  %s7094_s14 = smov 117  }
 0x4d5   : >> { %3443 = vrot.lane.b32.xlu1 %v8544_v4, %s7085_s17  ;;  %3441 = vrot.lane.b32.xlu0 %v8557_v32, %s7085_s17 }
 0x4d9   : >> { %3447 = vrot.lane.b32.xlu1 %v8565_v34, %s7085_s17  ;;  %3445 = vrot.lane.b32.xlu0 %v8554_v36, %s7085_s17 }
 0x4dd   : >> { %3451 = vrot.lane.b32.xlu1 %v8580_v56, %s7085_s17  ;;  %3449 = vrot.lane.b32.xlu0 %v8561_v24, %s7085_s17 }
 0x4e1   : >> { %3455 = vrot.lane.b32.xlu1 %v8573_v38, %s7085_s17  ;;  %3453 = vrot.lane.b32.xlu0 %v8577_v40, %s7085_s17 }
 0x4e5   : >> { %3459 = vrot.lane.b32.xlu1 %v8595_v9, %s7085_s17  ;;  %3457 = vrot.lane.b32.xlu0 %v8592_v59, %s7085_s17 }
 0x4e9   : >> { %3463 = vrot.lane.b32.xlu1 %v8622_v43, %s7085_s17  ;;  %3461 = vrot.lane.b32.xlu0 %v8588_v7, %s7085_s17 }
 0x4ed   : >> { %3467 = vrot.lane.b32.xlu1 %v8603_v41, %s7085_s17  ;;  %3465 = vrot.lane.b32.xlu0 %v8612_v60, %s7085_s17  ;;  %s7095_s17 = smov 116  }
 0x4f1   : >> { %3546 = vrot.lane.b32.xlu1 %v8557_v32, %s7086_s30  ;;  %3544 = vrot.lane.b32.xlu0 %v8547_v19, %s7086_s30 }
 0x4f5   : >> { %3550 = vrot.lane.b32.xlu1 %v8554_v36, %s7086_s30  ;;  %3548 = vrot.lane.b32.xlu0 %v8544_v4, %s7086_s30 }
 0x4f9   : >> { %3554 = vrot.lane.b32.xlu1 %v8561_v24, %s7086_s30  ;;  %3552 = vrot.lane.b32.xlu0 %v8565_v34, %s7086_s30 }
 0x4fd   : >> { %3558 = vrot.lane.b32.xlu1 %v8577_v40, %s7086_s30  ;;  %3556 = vrot.lane.b32.xlu0 %v8580_v56, %s7086_s30 }
 0x501   : >> { %3562 = vrot.lane.b32.xlu1 %v8592_v59, %s7086_s30  ;;  %3560 = vrot.lane.b32.xlu0 %v8573_v38, %s7086_s30 }
 0x505   : >> { %3566 = vrot.lane.b32.xlu1 %v8588_v7, %s7086_s30  ;;  %3564 = vrot.lane.b32.xlu0 %v8595_v9, %s7086_s30 }
 0x509   : >> { %3570 = vrot.lane.b32.xlu1 %v8612_v60, %s7086_s30  ;;  %3568 = vrot.lane.b32.xlu0 %v8622_v43, %s7086_s30 }
 0x50d   : >> { %3653 = vrot.lane.b32.xlu1 %v8547_v19, %s7087_s26  ;;  %3572 = vrot.lane.b32.xlu0 %v8603_v41, %s7086_s30  ;;  %s7096_s30 = smov 115  }
 0x511   : >> { %3657 = vrot.lane.b32.xlu1 %v8544_v4, %s7087_s26  ;;  %3655 = vrot.lane.b32.xlu0 %v8557_v32, %s7087_s26 }
 0x515   : >> { %3661 = vrot.lane.b32.xlu1 %v8565_v34, %s7087_s26  ;;  %3659 = vrot.lane.b32.xlu0 %v8554_v36, %s7087_s26 }
 0x519   : >> { %3665 = vrot.lane.b32.xlu1 %v8580_v56, %s7087_s26  ;;  %3663 = vrot.lane.b32.xlu0 %v8561_v24, %s7087_s26 }
 0x51d   : >> { %3669 = vrot.lane.b32.xlu1 %v8573_v38, %s7087_s26  ;;  %3667 = vrot.lane.b32.xlu0 %v8577_v40, %s7087_s26 }
 0x521   : >> { %3673 = vrot.lane.b32.xlu1 %v8595_v9, %s7087_s26  ;;  %3671 = vrot.lane.b32.xlu0 %v8592_v59, %s7087_s26 }
 0x525   : >> { %3677 = vrot.lane.b32.xlu1 %v8622_v43, %s7087_s26  ;;  %3675 = vrot.lane.b32.xlu0 %v8588_v7, %s7087_s26 }
 0x527   : >> { %v3341_v53 = vpop.permute.xlu1 %3340  ;;  %v3337_v45 = vpop.permute.xlu0 %3336 }
 0x529   : >> { %3681 = vrot.lane.b32.xlu1 %v8603_v41, %s7087_s26  ;;  %3679 = vrot.lane.b32.xlu0 %v8612_v60, %s7087_s26  ;;  %s7097_s26 = smov 114  }
 0x52b   : >> { %v3343_v28 = vpop.permute.xlu1 %3342  ;;  %v3339_v13 = vpop.permute.xlu0 %3338 }
 0x52c   : >> { %v3368_v22 = vsel %vm9755_vm4, %v3339_v13, %v3341_v53  ;;  %v3367_v46 = vsel %vm9755_vm4, %v3337_v45, %v3339_v13 }
 0x52d   : >> { %3764 = vrot.lane.b32.xlu1 %v8557_v32, %s7088_s16  ;;  %3762 = vrot.lane.b32.xlu0 %v8547_v19, %s7088_s16 }
 0x52e   : >> { %3391 = vmatprep.subr.bf16.mxu1 %v3368_v22 }
 0x52f   : >> { %3392 = vmatpush1.bf16.msra.mxu1 %v3367_v46  ;;  %v3347_v23 = vpop.permute.xlu1 %3346  ;;  %v3345_v47 = vpop.permute.xlu0 %3344 }
 0x530   : >> { %v3370_v25 = vsel %vm9755_vm4, %v3345_v47, %v3347_v23  ;;  %v3369_v58 = vsel %vm9755_vm4, %v3343_v28, %v3345_v47  ;;  %v6830_v47 = vld [vmem:[#allocation8 + $0xc8] sm:$0xff]  }
 0x531   : >> { %3768 = vrot.lane.b32.xlu1 %v8554_v36, %s7088_s16  ;;  %3766 = vrot.lane.b32.xlu0 %v8544_v4, %s7088_s16 }
 0x532   : >> { %3393 = vmatprep.subr.bf16.mxu1 %v3370_v25 }
 0x533   : >> { %3394 = vmatpush1.bf16.msra.mxu1 %v3369_v58  ;;  %v3351_v11 = vpop.permute.xlu1 %3350  ;;  %v3349_v61 = vpop.permute.xlu0 %3348 }
 0x534   : >> { %v3371_v55 = vsel %vm9755_vm4, %v3349_v61, %v3351_v11 }
 0x535   : >> { %3772 = vrot.lane.b32.xlu1 %v8561_v24, %s7088_s16  ;;  %3770 = vrot.lane.b32.xlu0 %v8565_v34, %s7088_s16 }
 0x537   : >> { %v3355_v52 = vpop.permute.xlu1 %3354  ;;  %v3353_v20 = vpop.permute.xlu0 %3352 }
 0x538   : >> { %v3372_v54 = vsel %vm9755_vm4, %v3351_v11, %v3353_v20 }
 0x539   : >> { %3776 = vrot.lane.b32.xlu1 %v8577_v40, %s7088_s16  ;;  %3774 = vrot.lane.b32.xlu0 %v8580_v56, %s7088_s16 }
 0x53a   : >> { %3395 = vmatprep.subr.bf16.mxu1 %v3372_v54 }
 0x53b   : >> { %3396 = vmatpush1.bf16.msra.mxu1 %v3371_v55  ;;  %v3359_v14 = vpop.permute.xlu1 %3358  ;;  %v3357_v21 = vpop.permute.xlu0 %3356 }
 0x53c   : >> { %v3374_v8 = vsel %vm9755_vm4, %v3357_v21, %v3359_v14  ;;  %v3373_v29 = vsel %vm9755_vm4, %v3355_v52, %v3357_v21 }
 0x53d   : >> { %3780 = vrot.lane.b32.xlu1 %v8592_v59, %s7088_s16  ;;  %3778 = vrot.lane.b32.xlu0 %v8573_v38, %s7088_s16 }
 0x53e   : >> { %3397 = vmatprep.subr.bf16.mxu1 %v3374_v8 }
 0x53f   : >> { %3398 = vmatpush1.bf16.msra.mxu1 %v3373_v29  ;;  %v3363_v30 = vpop.permute.xlu1 %3362  ;;  %v3361_v31 = vpop.permute.xlu0 %3360 }
 0x540   : >> { %v3375_v48 = vsel %vm9755_vm4, %v3361_v31, %v3363_v30 }
 0x541   : >> { %3784 = vrot.lane.b32.xlu1 %v8588_v7, %s7088_s16  ;;  %3782 = vrot.lane.b32.xlu0 %v8595_v9, %s7088_s16 }
 0x543   : >> { %v3440_v35 = vpop.permute.xlu1 %3439  ;;  %v3365_v37 = vpop.permute.xlu0 %3364 }
 0x544   : >> { %v3376_v51 = vsel %vm9755_vm4, %v3363_v30, %v3365_v37 }
 0x545   : >> { %3788 = vrot.lane.b32.xlu1 %v8612_v60, %s7088_s16  ;;  %3786 = vrot.lane.b32.xlu0 %v8622_v43, %s7088_s16 }
 0x546   : >> { %3399 = vmatprep.subr.bf16.mxu1 %v3376_v51 }
 0x547   : >> { %3400 = vmatpush1.bf16.msra.mxu1 %v3375_v48  ;;  %v3444_v27 = vpop.permute.xlu1 %3443  ;;  %v3442_v57 = vpop.permute.xlu0 %3441  ;;  %v6835_v48 = vld [vmem:[#allocation8 + $0x128] sm:$0xff]  }
 0x548   : >> { %v3471_v26 = vsel %vm9756_vm5, %v3442_v57, %v3444_v27  ;;  %v3470_v33 = vsel %vm9756_vm5, %v3440_v35, %v3442_v57  ;;  %6337 = vmatmul.mubr.msk.bf16.vlgmr.msra.gmra.mrb[0].mxu0 %vm488_vm6, %v6835_v48  ;;  %v8796_v27 = vld [vmem:[%s8541_s13 + $0x18] sm:$0xff] }
 0x549   : >> { %3871 = vrot.lane.b32.xlu1 %v8547_v19, %s7089_s24  ;;  %3790 = vrot.lane.b32.xlu0 %v8603_v41, %s7088_s16  ;;  %s7098_s16 = smov 12  }
 0x54a   : >> { %3493 = vmatprep.subr.bf16.mxu1 %v3471_v26  ;;  %6313 = vmatmul.mubr.msk.bf16.vlgmr.msra.gmra.mrb[0].mxu1 %vm488_vm6, %v6829_v6 }
 0x54b   : >> { %3494 = vmatpush1.bf16.msra.mxu1 %v3470_v33  ;;  %v3448_v5 = vpop.permute.xlu1 %3447  ;;  %v3446_v39 = vpop.permute.xlu0 %3445  ;;  %3525 = vmatprep.mubr.bf16.mxu1 %v7084_v42 }
 0x54c   : >> { %v3472_v12 = vsel %vm9756_vm5, %v3446_v39, %v3448_v5  ;;  %4808 = vmatprep.mubr.bf16.mxu0 %v7084_v42 }
 0x54d   : >> { %3875 = vrot.lane.b32.xlu1 %v8544_v4, %s7089_s24  ;;  %3873 = vrot.lane.b32.xlu0 %v8557_v32, %s7089_s24 }
 0x54f   : >> { %v3452_v18 = vpop.permute.xlu1 %3451  ;;  %v3450_v10 = vpop.permute.xlu0 %3449 }
 0x550   : >> { %v3473_v62 = vsel %vm9756_vm5, %v3448_v5, %v3450_v10  ;;  %v6831_v5 = vld [vmem:[#allocation8 + $0xd8] sm:$0xff]  }
 0x551   : >> { %3879 = vrot.lane.b32.xlu1 %v8565_v34, %s7089_s24  ;;  %3877 = vrot.lane.b32.xlu0 %v8554_v36, %s7089_s24 }
 0x552   : >> { %3495 = vmatprep.subr.bf16.mxu1 %v3473_v62 }
 0x553   : >> { %3496 = vmatpush1.bf16.msra.mxu1 %v3472_v12  ;;  %v3456_v63 = vpop.permute.xlu1 %3455  ;;  %v3454_v50 = vpop.permute.xlu0 %3453  ;;  %v8812_v12 = vld [vmem:[%s8541_s13 + $0x38] sm:$0xff] }
 0x554   : >> { %v3475_v17 = vsel %vm9756_vm5, %v3454_v50, %v3456_v63  ;;  %v3474_v15 = vsel %vm9756_vm5, %v3452_v18, %v3454_v50 }
 0x555   : >> { %3883 = vrot.lane.b32.xlu1 %v8580_v56, %s7089_s24  ;;  %3881 = vrot.lane.b32.xlu0 %v8561_v24, %s7089_s24 }
 0x556   : >> { %3497 = vmatprep.subr.bf16.mxu1 %v3475_v17  ;;  %v8820_v17 = vld [vmem:[%s8541_s13 + $0x58] sm:$0xff] }
 0x557   : >> { %3498 = vmatpush1.bf16.msra.mxu1 %v3474_v15  ;;  %v3460_v44 = vpop.permute.xlu1 %3459  ;;  %v3458_v49 = vpop.permute.xlu0 %3457 }
 0x558   : >> { %v3476_v28 = vsel %vm9756_vm5, %v3458_v49, %v3460_v44 }
 0x559   : >> { %3887 = vrot.lane.b32.xlu1 %v8573_v38, %s7089_s24  ;;  %3885 = vrot.lane.b32.xlu0 %v8577_v40, %s7089_s24 }
 0x55b   : >> { %v3464_v16 = vpop.permute.xlu1 %3463  ;;  %v3462_v53 = vpop.permute.xlu0 %3461 }
 0x55c   : >> { %v3477_v45 = vsel %vm9756_vm5, %v3460_v44, %v3462_v53 }
 0x55d   : >> { %3891 = vrot.lane.b32.xlu1 %v8595_v9, %s7089_s24  ;;  %3889 = vrot.lane.b32.xlu0 %v8592_v59, %s7089_s24 }
 0x55e   : >> { %3499 = vmatprep.subr.bf16.mxu1 %v3477_v45 }
 0x55f   : >> { %3500 = vmatpush1.bf16.msra.mxu1 %v3476_v28  ;;  %v3468_v13 = vpop.permute.xlu1 %3467  ;;  %v3466_v22 = vpop.permute.xlu0 %3465 }
 0x560   : >> { %v3479_v46 = vsel %vm9756_vm5, %v3466_v22, %v3468_v13  ;;  %v3478_v23 = vsel %vm9756_vm5, %v3464_v16, %v3466_v22  ;;  %v8835_v22 = vld [vmem:[%s8541_s13 + $0x78] sm:$0xff] }
 0x561   : >> { %3895 = vrot.lane.b32.xlu1 %v8622_v43, %s7089_s24  ;;  %3893 = vrot.lane.b32.xlu0 %v8588_v7, %s7089_s24 }
 0x562   : >> { %3501 = vmatprep.subr.bf16.mxu1 %v3479_v46 }
 0x563   : >> { %3502 = vmatpush1.bf16.msra.mxu1 %v3478_v23  ;;  %v3547_v25 = vpop.permute.xlu1 %3546  ;;  %v3545_v58 = vpop.permute.xlu0 %3544 }
 0x564   : >> { %v3575_v52 = vsel %vm675_vm7, %v3545_v58, %v3547_v25 }
 0x565   : >> { %3899 = vrot.lane.b32.xlu1 %v8603_v41, %s7089_s24  ;;  %3897 = vrot.lane.b32.xlu0 %v8612_v60, %s7089_s24  ;;  %s7099_s24 = smov 106  }
 0x566   : >> { %6315 = vmatmul.mubr.msk.bf16.vlgmr.msra.gmra.mrb[0].mxu1 %vm488_vm6, %v6830_v47  ;;  %v8842_v47 = vld [vmem:[%s8541_s13 + $0x98] sm:$0xff] }
 0x567   : >> { %v3551_v11 = vpop.permute.xlu1 %3550  ;;  %v3549_v61 = vpop.permute.xlu0 %3548  ;;  %3630 = vmatprep.mubr.bf16.mxu1 %v7084_v42 }
 0x568   : >> { %v3576_v43 = vsel %vm675_vm7, %v3547_v25, %v3549_v61 }
 0x569   : >> { %3982 = vrot.lane.b32.xlu1 %v8557_v32, %s7090_s23  ;;  %3980 = vrot.lane.b32.xlu0 %v8547_v19, %s7090_s23 }
 0x56a   : >> { %3598 = vmatprep.subr.bf16.mxu1 %v3576_v43 }
 0x56b   : >> { %3599 = vmatpush1.bf16.msra.mxu1 %v3575_v52  ;;  %v3555_v20 = vpop.permute.xlu1 %3554  ;;  %v3553_v54 = vpop.permute.xlu0 %3552 }
 0x56c   : >> { %v3578_v55 = vsel %vm675_vm7, %v3553_v54, %v3555_v20  ;;  %v3577_v14 = vsel %vm675_vm7, %v3551_v11, %v3553_v54 }
 0x56d   : >> { %3986 = vrot.lane.b32.xlu1 %v8554_v36, %s7090_s23  ;;  %3984 = vrot.lane.b32.xlu0 %v8544_v4, %s7090_s23 }
 0x56e   : >> { %3600 = vmatprep.subr.bf16.mxu1 %v3578_v55  ;;  %v6832_v55 = vld [vmem:[#allocation8 + $0xe0] sm:$0xff]  }
 0x56f   : >> { %3601 = vmatpush1.bf16.msra.mxu1 %v3577_v14  ;;  %v3559_v21 = vpop.permute.xlu1 %3558  ;;  %v3557_v19 = vpop.permute.xlu0 %3556 }
 0x570   : >> { %v3579_v36 = vsel %vm675_vm7, %v3557_v19, %v3559_v21 }
 0x571   : >> { %3990 = vrot.lane.b32.xlu1 %v8561_v24, %s7090_s23  ;;  %3988 = vrot.lane.b32.xlu0 %v8565_v34, %s7090_s23 }
 0x573   : >> { %v3563_v8 = vpop.permute.xlu1 %3562  ;;  %v3561_v29 = vpop.permute.xlu0 %3560 }
 0x574   : >> { %v3580_v30 = vsel %vm675_vm7, %v3559_v21, %v3561_v29 }
 0x575   : >> { %3994 = vrot.lane.b32.xlu1 %v8577_v40, %s7090_s23  ;;  %3992 = vrot.lane.b32.xlu0 %v8580_v56, %s7090_s23 }
 0x576   : >> { %3602 = vmatprep.subr.bf16.mxu1 %v3580_v30 }
 0x577   : >> { %3603 = vmatpush1.bf16.msra.mxu1 %v3579_v36  ;;  %v3567_v31 = vpop.permute.xlu1 %3566  ;;  %v3565_v35 = vpop.permute.xlu0 %3564 }
 0x578   : >> { %v3582_v37 = vsel %vm675_vm7, %v3565_v35, %v3567_v31  ;;  %v3581_v51 = vsel %vm675_vm7, %v3563_v8, %v3565_v35 }
 0x579   : >> { %3998 = vrot.lane.b32.xlu1 %v8592_v59, %s7090_s23  ;;  %3996 = vrot.lane.b32.xlu0 %v8573_v38, %s7090_s23 }
 0x57a   : >> { %3604 = vmatprep.subr.bf16.mxu1 %v3582_v37 }
 0x57b   : >> { %3605 = vmatpush1.bf16.msra.mxu1 %v3581_v51  ;;  %v3571_v56 = vpop.permute.xlu1 %3570  ;;  %v3569_v6 = vpop.permute.xlu0 %3568 }
 0x57c   : >> { %v3583_v33 = vsel %vm675_vm7, %v3569_v6, %v3571_v56 }
 0x57d   : >> { %4002 = vrot.lane.b32.xlu1 %v8588_v7, %s7090_s23  ;;  %4000 = vrot.lane.b32.xlu0 %v8595_v9, %s7090_s23 }
 0x57f   : >> { %v3654_v59 = vpop.permute.xlu1 %3653  ;;  %v3573_v57 = vpop.permute.xlu0 %3572 }
 0x580   : >> { %v3584_v26 = vsel %vm675_vm7, %v3571_v56, %v3573_v57 }
 0x581   : >> { %4726 = vrot.lane.b32.xlu1 %v8796_v27, %s7091_s9  ;;  %4724 = vrot.lane.b32.xlu0 %v8544_v4, %s7091_s9 }
 0x582   : >> { %3606 = vmatprep.subr.bf16.mxu1 %v3584_v26 }
 0x583   : >> { %3607 = vmatpush1.bf16.msra.mxu1 %v3583_v33  ;;  %v3658_v39 = vpop.permute.xlu1 %3657  ;;  %v3656_v18 = vpop.permute.xlu0 %3655 }
 0x584   : >> { %v3685_v10 = vsel %vm784_vm8, %v3656_v18, %v3658_v39  ;;  %v3684_v62 = vsel %vm784_vm8, %v3654_v59, %v3656_v18 }
 0x585   : >> { %4730 = vrot.lane.b32.xlu1 %v8561_v24, %s7091_s9  ;;  %4722 = vrot.lane.b32.xlu0 %v8557_v32, %s7091_s9 }
 0x586   : >> { %3707 = vmatprep.subr.bf16.mxu1 %v3685_v10  ;;  %6317 = vmatmul.mubr.msk.bf16.vlgmr.msra.gmra.mrb[0].mxu1 %vm488_vm6, %v6831_v5 }
 0x587   : >> { %3708 = vmatpush1.bf16.msra.mxu1 %v3684_v62  ;;  %v3662_v63 = vpop.permute.xlu1 %3661  ;;  %v3660_v50 = vpop.permute.xlu0 %3659  ;;  %3739 = vmatprep.mubr.bf16.mxu1 %v7084_v42 }
 0x588   : >> { %v3686_v16 = vsel %vm784_vm8, %v3660_v50, %v3662_v63 }
 0x589   : >> { %4728 = vrot.lane.b32.xlu1 %v8565_v34, %s7091_s9  ;;  %4732 = vrot.lane.b32.xlu0 %v8812_v12, %s7091_s9 }
 0x58b   : >> { %v3666_v15 = vpop.permute.xlu1 %3665  ;;  %v3664_v44 = vpop.permute.xlu0 %3663 }
 0x58c   : >> { %v3687_v49 = vsel %vm784_vm8, %v3662_v63, %v3664_v44  ;;  %v6833_v44 = vld [vmem:[#allocation8 + $0xe8] sm:$0xff]  }
 0x58d   : >> { %4738 = vrot.lane.b32.xlu1 %v8820_v17, %s7091_s9  ;;  %4736 = vrot.lane.b32.xlu0 %v8573_v38, %s7091_s9 }
 0x58e   : >> { %3709 = vmatprep.subr.bf16.mxu1 %v3687_v49 }
 0x58f   : >> { %3710 = vmatpush1.bf16.msra.mxu1 %v3686_v16  ;;  %v3670_v53 = vpop.permute.xlu1 %3669  ;;  %v3668_v45 = vpop.permute.xlu0 %3667 }
 0x590   : >> { %v3689_v28 = vsel %vm784_vm8, %v3668_v45, %v3670_v53  ;;  %v3688_v13 = vsel %vm784_vm8, %v3666_v15, %v3668_v45 }
 0x591   : >> { %4742 = vrot.lane.b32.xlu1 %v8588_v7, %s7091_s9  ;;  %4734 = vrot.lane.b32.xlu0 %v8577_v40, %s7091_s9 }
 0x592   : >> { %3711 = vmatprep.subr.bf16.mxu1 %v3689_v28 }
 0x593   : >> { %3712 = vmatpush1.bf16.msra.mxu1 %v3688_v13  ;;  %v3674_v46 = vpop.permute.xlu1 %3673  ;;  %v3672_v23 = vpop.permute.xlu0 %3671 }
 0x594   : >> { %v3690_v61 = vsel %vm784_vm8, %v3672_v23, %v3674_v46 }
 0x595   : >> { %4740 = vrot.lane.b32.xlu1 %v8595_v9, %s7091_s9  ;;  %4744 = vrot.lane.b32.xlu0 %v8835_v22, %s7091_s9 }
 0x597   : >> { %v3678_v25 = vpop.permute.xlu1 %3677  ;;  %v3676_v58 = vpop.permute.xlu0 %3675 }
 0x598   : >> { %v3691_v11 = vsel %vm784_vm8, %v3674_v46, %v3676_v58 }
 0x599   : >> { %4750 = vrot.lane.b32.xlu1 %v8842_v47, %s7091_s9  ;;  %4748 = vrot.lane.b32.xlu0 %v8603_v41, %s7091_s9 }
 0x59a   : >> { %3713 = vmatprep.subr.bf16.mxu1 %v3691_v11 }
 0x59b   : >> { %3714 = vmatpush1.bf16.msra.mxu1 %v3690_v61  ;;  %v3682_v43 = vpop.permute.xlu1 %3681  ;;  %v3680_v52 = vpop.permute.xlu0 %3679 }
 0x59c   : >> { %v3693_v20 = vsel %vm784_vm8, %v3680_v52, %v3682_v43  ;;  %v3692_v54 = vsel %vm784_vm8, %v3678_v25, %v3680_v52 }
 0x59d   : >> { %4833 = vrot.lane.b32.xlu1 %v8544_v4, %s7092_s15  ;;  %4746 = vrot.lane.b32.xlu0 %v8612_v60, %s7091_s9  ;;  %s7101_s9 = smov 105  }
 0x59e   : >> { %3715 = vmatprep.subr.bf16.mxu1 %v3693_v20 }
 0x59f   : >> { %3716 = vmatpush1.bf16.msra.mxu1 %v3692_v54  ;;  %v3765_v14 = vpop.permute.xlu1 %3764  ;;  %v3763_v21 = vpop.permute.xlu0 %3762 }
 0x5a0   : >> { %v3793_v30 = vsel %vm893_vm9, %v3763_v21, %v3765_v14 }
 0x5a1   : >> { %4831 = vrot.lane.b32.xlu1 %v8557_v32, %s7092_s15  ;;  %4835 = vrot.lane.b32.xlu0 %v8796_v27, %s7092_s15 }
 0x5a2   : >> { %6319 = vmatmul.mubr.msk.bf16.vlgmr.msra.gmra.mrb[0].mxu1 %vm488_vm6, %v6832_v55 }
 0x5a3   : >> { %v3769_v19 = vpop.permute.xlu1 %3768  ;;  %v3767_v8 = vpop.permute.xlu0 %3766  ;;  %3848 = vmatprep.mubr.bf16.mxu1 %v7084_v42 }
 0x5a4   : >> { %v3794_v29 = vsel %vm893_vm9, %v3765_v14, %v3767_v8 }
 0x5a5   : >> { %4841 = vrot.lane.b32.xlu1 %v8812_v12, %s7092_s15  ;;  %4839 = vrot.lane.b32.xlu0 %v8561_v24, %s7092_s15 }
 0x5a6   : >> { %3816 = vmatprep.subr.bf16.mxu1 %v3794_v29 }
 0x5a7   : >> { %3817 = vmatpush1.bf16.msra.mxu1 %v3793_v30  ;;  %v3773_v36 = vpop.permute.xlu1 %3772  ;;  %v3771_v31 = vpop.permute.xlu0 %3770 }
 0x5a8   : >> { %v3796_v35 = vsel %vm893_vm9, %v3771_v31, %v3773_v36  ;;  %v3795_v37 = vsel %vm893_vm9, %v3769_v19, %v3771_v31  ;;  %v6834_v31 = vld [vmem:[#allocation8 + $0xf0] sm:$0xff]  }
 0x5a9   : >> { %4845 = vrot.lane.b32.xlu1 %v8573_v38, %s7092_s15  ;;  %4837 = vrot.lane.b32.xlu0 %v8565_v34, %s7092_s15 }
 0x5aa   : >> { %3818 = vmatprep.subr.bf16.mxu1 %v3796_v35 }
 0x5ab   : >> { %3819 = vmatpush1.bf16.msra.mxu1 %v3795_v37  ;;  %v3777_v51 = vpop.permute.xlu1 %3776  ;;  %v3775_v48 = vpop.permute.xlu0 %3774 }
 0x5ac   : >> { %v3797_v57 = vsel %vm893_vm9, %v3775_v48, %v3777_v51 }
 0x5ad   : >> { %4843 = vrot.lane.b32.xlu1 %v8577_v40, %s7092_s15  ;;  %4847 = vrot.lane.b32.xlu0 %v8820_v17, %s7092_s15 }
 0x5af   : >> { %v3781_v56 = vpop.permute.xlu1 %3780  ;;  %v3779_v6 = vpop.permute.xlu0 %3778 }
 0x5b0   : >> { %v3798_v59 = vsel %vm893_vm9, %v3777_v51, %v3779_v6 }
 0x5b1   : >> { %4853 = vrot.lane.b32.xlu1 %v8835_v22, %s7092_s15  ;;  %4851 = vrot.lane.b32.xlu0 %v8588_v7, %s7092_s15 }
 0x5b2   : >> { %3820 = vmatprep.subr.bf16.mxu1 %v3798_v59 }
 0x5b3   : >> { %3821 = vmatpush1.bf16.msra.mxu1 %v3797_v57  ;;  %v3785_v26 = vpop.permute.xlu1 %3784  ;;  %v3783_v33 = vpop.permute.xlu0 %3782 }
 0x5b4   : >> { %v3800_v5 = vsel %vm893_vm9, %v3783_v33, %v3785_v26  ;;  %v3799_v39 = vsel %vm893_vm9, %v3781_v56, %v3783_v33 }
 0x5b5   : >> { %4857 = vrot.lane.b32.xlu1 %v8603_v41, %s7092_s15  ;;  %4849 = vrot.lane.b32.xlu0 %v8595_v9, %s7092_s15 }
 0x5b6   : >> { %3822 = vmatprep.subr.bf16.mxu1 %v3800_v5 }
 0x5b7   : >> { %3823 = vmatpush1.bf16.msra.mxu1 %v3799_v39  ;;  %v3789_v18 = vpop.permute.xlu1 %3788  ;;  %v3787_v10 = vpop.permute.xlu0 %3786 }
 0x5b8   : >> { %v3801_v15 = vsel %vm893_vm9, %v3787_v10, %v3789_v18 }
 0x5b9   : >> { %4855 = vrot.lane.b32.xlu1 %v8612_v60, %s7092_s15  ;;  %4859 = vrot.lane.b32.xlu0 %v8842_v47, %s7092_s15  ;;  %s7102_s15 = smov 10  }
 0x5bb   : >> { %v3872_v62 = vpop.permute.xlu1 %3871  ;;  %v3791_v63 = vpop.permute.xlu0 %3790 }
 0x5bc   : >> { %v3802_v50 = vsel %vm893_vm9, %v3789_v18, %v3791_v63 }
 0x5bd   : >> { %4944 = vrot.lane.b32.xlu1 %v8796_v27, %s7093_s6  ;;  %4942 = vrot.lane.b32.xlu0 %v8544_v4, %s7093_s6 }
 0x5be   : >> { %3824 = vmatprep.subr.bf16.mxu1 %v3802_v50 }
 0x5bf   : >> { %3825 = vmatpush1.bf16.msra.mxu1 %v3801_v15  ;;  %v3876_v49 = vpop.permute.xlu1 %3875  ;;  %v3874_v16 = vpop.permute.xlu0 %3873 }
 0x5c0   : >> { %v3903_v53 = vsel %vm1002_vm10, %v3874_v16, %v3876_v49  ;;  %v3902_v45 = vsel %vm1002_vm10, %v3872_v62, %v3874_v16 }
 0x5c1   : >> { %4948 = vrot.lane.b32.xlu1 %v8561_v24, %s7093_s6  ;;  %4940 = vrot.lane.b32.xlu0 %v8557_v32, %s7093_s6 }
 0x5c2   : >> { %3925 = vmatprep.subr.bf16.mxu1 %v3903_v53  ;;  %6321 = vmatmul.mubr.msk.bf16.vlgmr.msra.gmra.mrb[0].mxu1 %vm488_vm6, %v6833_v44  ;;  %v8983_v53 = vld [vmem:[%s8541_s13 + $0x10] sm:$0xff] }
 0x5c3   : >> { %3926 = vmatpush1.bf16.msra.mxu1 %v3902_v45  ;;  %v3880_v28 = vpop.permute.xlu1 %3879  ;;  %v3878_v13 = vpop.permute.xlu0 %3877  ;;  %3957 = vmatprep.mubr.bf16.mxu1 %v7084_v42 }
 0x5c4   : >> { %v3904_v58 = vsel %vm1002_vm10, %v3878_v13, %v3880_v28 }
 0x5c5   : >> { %4946 = vrot.lane.b32.xlu1 %v8565_v34, %s7093_s6  ;;  %4950 = vrot.lane.b32.xlu0 %v8812_v12, %s7093_s6 }
 0x5c7   : >> { %v3884_v46 = vpop.permute.xlu1 %3883  ;;  %v3882_v23 = vpop.permute.xlu0 %3881 }
 0x5c8   : >> { %v3905_v25 = vsel %vm1002_vm10, %v3880_v28, %v3882_v23  ;;  %v8992_v23 = vld [vmem:[%s8541_s13 + $0x8] sm:$0xff] }
 0x5c9   : >> { %4956 = vrot.lane.b32.xlu1 %v8820_v17, %s7093_s6  ;;  %4954 = vrot.lane.b32.xlu0 %v8573_v38, %s7093_s6 }
 0x5ca   : >> { %3927 = vmatprep.subr.bf16.mxu1 %v3905_v25 }
 0x5cb   : >> { %3928 = vmatpush1.bf16.msra.mxu1 %v3904_v58  ;;  %v3888_v11 = vpop.permute.xlu1 %3887  ;;  %v3886_v61 = vpop.permute.xlu0 %3885 }
 0x5cc   : >> { %v3907_v43 = vsel %vm1002_vm10, %v3886_v61, %v3888_v11  ;;  %v3906_v52 = vsel %vm1002_vm10, %v3884_v46, %v3886_v61  ;;  %v8998_v61 = vld [vmem:[%s8541_s13 + $0x28] sm:$0xff] }
 0x5cd   : >> { %4960 = vrot.lane.b32.xlu1 %v8588_v7, %s7093_s6  ;;  %4952 = vrot.lane.b32.xlu0 %v8577_v40, %s7093_s6 }
 0x5ce   : >> { %3929 = vmatprep.subr.bf16.mxu1 %v3907_v43 }
 0x5cf   : >> { %3930 = vmatpush1.bf16.msra.mxu1 %v3906_v52  ;;  %v3892_v20 = vpop.permute.xlu1 %3891  ;;  %v3890_v54 = vpop.permute.xlu0 %3889 }
 0x5d0   : >> { %v3908_v19 = vsel %vm1002_vm10, %v3890_v54, %v3892_v20 }
 0x5d1   : >> { %4958 = vrot.lane.b32.xlu1 %v8595_v9, %s7093_s6  ;;  %4962 = vrot.lane.b32.xlu0 %v8835_v22, %s7093_s6 }
 0x5d3   : >> { %v3896_v55 = vpop.permute.xlu1 %3895  ;;  %v3894_v14 = vpop.permute.xlu0 %3893 }
 0x5d4   : >> { %v3909_v21 = vsel %vm1002_vm10, %v3892_v20, %v3894_v14  ;;  %v9008_v20 = vld [vmem:[%s8541_s13 + $0x50] sm:$0xff] }
 0x5d5   : >> { %4968 = vrot.lane.b32.xlu1 %v8842_v47, %s7093_s6  ;;  %4966 = vrot.lane.b32.xlu0 %v8603_v41, %s7093_s6 }
 0x5d6   : >> { %3931 = vmatprep.subr.bf16.mxu1 %v3909_v21 }
 0x5d7   : >> { %3932 = vmatpush1.bf16.msra.mxu1 %v3908_v19  ;;  %v3900_v8 = vpop.permute.xlu1 %3899  ;;  %v3898_v29 = vpop.permute.xlu0 %3897  ;;  %v9017_v19 = vld [vmem:[%s8541_s13 + $0x48] sm:$0xff] }
 0x5d8   : >> { %v3911_v30 = vsel %vm1002_vm10, %v3898_v29, %v3900_v8  ;;  %v3910_v36 = vsel %vm1002_vm10, %v3896_v55, %v3898_v29 }
 0x5d9   : >> { %5051 = vrot.lane.b32.xlu1 %v8544_v4, %s7094_s14  ;;  %4964 = vrot.lane.b32.xlu0 %v8612_v60, %s7093_s6  ;;  %s7103_s6 = smov 104  }
 0x5da   : >> { %3933 = vmatprep.subr.bf16.mxu1 %v3911_v30 }
 0x5db   : >> { %3934 = vmatpush1.bf16.msra.mxu1 %v3910_v36  ;;  %v3983_v35 = vpop.permute.xlu1 %3982  ;;  %v3981_v37 = vpop.permute.xlu0 %3980 }
 0x5dc   : >> { %v4011_v56 = vsel %vm1111_vm11, %v3981_v37, %v3983_v35 }
 0x5dd   : >> { %5049 = vrot.lane.b32.xlu1 %v8557_v32, %s7094_s14  ;;  %5053 = vrot.lane.b32.xlu0 %v8796_v27, %s7094_s14 }
 0x5de   : >> { %6323 = vmatmul.mubr.msk.bf16.vlgmr.msra.gmra.mrb[0].mxu1 %vm488_vm6, %v6834_v31 }
 0x5df   : >> { %v3987_v51 = vpop.permute.xlu1 %3986  ;;  %v3985_v48 = vpop.permute.xlu0 %3984  ;;  %4066 = vmatprep.mubr.bf16.mxu1 %v7084_v42 }
 0x5e0   : >> { %v4012_v4 = vsel %vm1111_vm11, %v3983_v35, %v3985_v48  ;;  %v6836_v35 = vld [vmem:[#allocation8 + $0x130] sm:$0xff]  }
 0x5e1   : >> { %5059 = vrot.lane.b32.xlu1 %v8812_v12, %s7094_s14  ;;  %5057 = vrot.lane.b32.xlu0 %v8561_v24, %s7094_s14 }
 0x5e2   : >> { %4034 = vmatprep.subr.bf16.mxu1 %v4012_v4 }
 0x5e3   : >> { %4035 = vmatpush1.bf16.msra.mxu1 %v4011_v56  ;;  %v3991_v32 = vpop.permute.xlu1 %3990  ;;  %v3989_v6 = vpop.permute.xlu0 %3988 }
 0x5e4   : >> { %v4014_v59 = vsel %vm1111_vm11, %v3989_v6, %v3991_v32  ;;  %v4013_v57 = vsel %vm1111_vm11, %v3987_v51, %v3989_v6 }
 0x5e5   : >> { %5063 = vrot.lane.b32.xlu1 %v8573_v38, %s7094_s14  ;;  %5055 = vrot.lane.b32.xlu0 %v8565_v34, %s7094_s14 }
 0x5e6   : >> { %4036 = vmatprep.subr.bf16.mxu1 %v4014_v59  ;;  %v9048_v59 = vld [vmem:[%s8541_s13 + $0x30] sm:$0xff] }
 0x5e7   : >> { %4037 = vmatpush1.bf16.msra.mxu1 %v4013_v57  ;;  %v3995_v26 = vpop.permute.xlu1 %3994  ;;  %v3993_v33 = vpop.permute.xlu0 %3992 }
 0x5e8   : >> { %v4015_v34 = vsel %vm1111_vm11, %v3993_v33, %v3995_v26 }
 0x5e9   : >> { %5061 = vrot.lane.b32.xlu1 %v8577_v40, %s7094_s14  ;;  %5065 = vrot.lane.b32.xlu0 %v8820_v17, %s7094_s14 }
 0x5eb   : >> { %v3999_v5 = vpop.permute.xlu1 %3998  ;;  %v3997_v39 = vpop.permute.xlu0 %3996 }
 0x5ec   : >> { %v4016_v18 = vsel %vm1111_vm11, %v3995_v26, %v3997_v39 }
 0x5ed   : >> { %5071 = vrot.lane.b32.xlu1 %v8835_v22, %s7094_s14  ;;  %5069 = vrot.lane.b32.xlu0 %v8588_v7, %s7094_s14 }
 0x5ee   : >> { %4038 = vmatprep.subr.bf16.mxu1 %v4016_v18 }
 0x5ef   : >> { %4039 = vmatpush1.bf16.msra.mxu1 %v4015_v34  ;;  %v4003_v38 = vpop.permute.xlu1 %4002  ;;  %v4001_v10 = vpop.permute.xlu0 %4000 }
 0x5f0   : >> { %v4018_v40 = vsel %vm1111_vm11, %v4001_v10, %v4003_v38  ;;  %v4017_v62 = vsel %vm1111_vm11, %v3999_v5, %v4001_v10 }
 0x5f1   : >> { %5075 = vrot.lane.b32.xlu1 %v8603_v41, %s7094_s14  ;;  %5067 = vrot.lane.b32.xlu0 %v8595_v9, %s7094_s14 }
 0x5f2   : >> { %4040 = vmatprep.subr.bf16.mxu1 %v4018_v40 }
 0x5f3   : >> { %4041 = vmatpush1.bf16.msra.mxu1 %v4017_v62  ;;  %v4727_v63 = vpop.permute.xlu1 %4726  ;;  %v4725_v50 = vpop.permute.xlu0 %4724  ;;  %v9067_v62 = vld [vmem:[%s8541_s13 + $0x70] sm:$0xff] }
 0x5f4   : >> { %v4754_v15 = vsel %vm9757_vm12, %v4725_v50, %v4727_v63 }
 0x5f5   : >> { %5073 = vrot.lane.b32.xlu1 %v8612_v60, %s7094_s14  ;;  %5077 = vrot.lane.b32.xlu0 %v8842_v47, %s7094_s14  ;;  %s7104_s14 = smov 2  }
 0x5f6   : >> { %4776 = vmatprep.subr.bf16.mxu0 %v4754_v15 }
 0x5f7   : >> { %v4731_v44 = vpop.permute.xlu1 %4730  ;;  %v4723_v49 = vpop.permute.xlu0 %4722 }
 0x5f8   : >> { %v4753_v16 = vsel %vm9758_vm13, %v4723_v49, %v4725_v50  ;;  %vm9761_vm13 = vmmov %vm9757_vm12  ;;  %v9074_v49 = vld [vmem:[%s8541_s13 + $0x90] sm:$0xff] }
 0x5f9   : >> { %5162 = vrot.lane.b32.xlu1 %v8796_v27, %s7095_s17  ;;  %5160 = vrot.lane.b32.xlu0 %v8983_v53, %s7095_s17 }
 0x5fa   : >> { %4777 = vmatpush1.bf16.msra.mxu0 %v4753_v16  ;;  %v9079_v16 = vld [vmem:[%s8541_s13 + $0x68] sm:$0xff] }
 0x5fb   : >> { %v4729_v45 = vpop.permute.xlu1 %4728  ;;  %v4733_v28 = vpop.permute.xlu0 %4732 }
 0x5fc   : >> { %v4755_v13 = vsel %vm9759_vm14, %v4729_v45, %v4731_v44  ;;  %v4756_v46 = vsel %vm9760_vm15, %v4731_v44, %v4733_v28  ;;  %vm9762_vm14 = vmmov %vm9757_vm12  ;;  %v6837_v45 = vld [vmem:[#allocation8 + $0x138] sm:$0xff]  }
 0x5fd   : >> { %5166 = vrot.lane.b32.xlu1 %v8561_v24, %s7095_s17  ;;  %5158 = vrot.lane.b32.xlu0 %v8992_v23, %s7095_s17  ;;  %vm9763_vm15 = vmmov %vm9757_vm12 }
 0x5fe   : >> { %4778 = vmatprep.subr.bf16.mxu0 %v4756_v46 }
 0x5ff   : >> { %4779 = vmatpush1.bf16.msra.mxu0 %v4755_v13  ;;  %v4739_v25 = vpop.permute.xlu1 %4738  ;;  %v4737_v58 = vpop.permute.xlu0 %4736 }
 0x600   : >> { %v4758_v11 = vsel %vm9757_vm12, %v4737_v58, %v4739_v25  ;;  %v9085_v25 = vld [vmem:[%s8541_s13 + $0x88] sm:$0xff] }
 0x601   : >> { %5164 = vrot.lane.b32.xlu1 %v8998_v61, %s7095_s17  ;;  %5168 = vrot.lane.b32.xlu0 %v8812_v12, %s7095_s17 }
 0x602   : >> { %4780 = vmatprep.subr.bf16.mxu0 %v4758_v11 }
 0x603   : >> { %v4743_v24 = vpop.permute.xlu1 %4742  ;;  %v4735_v43 = vpop.permute.xlu0 %4734 }
 0x604   : >> { %v4757_v52 = vsel %vm9761_vm13, %v4735_v43, %v4737_v58  ;;  %vm9764_vm13 = vmmov %vm9757_vm12 }
 0x605   : >> { %5174 = vrot.lane.b32.xlu1 %v8820_v17, %s7095_s17  ;;  %5172 = vrot.lane.b32.xlu0 %v9008_v20, %s7095_s17 }
 0x606   : >> { %4781 = vmatpush1.bf16.msra.mxu0 %v4757_v52 }
 0x607   : >> { %v4741_v54 = vpop.permute.xlu1 %4740  ;;  %v4745_v55 = vpop.permute.xlu0 %4744 }
 0x608   : >> { %v4759_v14 = vsel %vm9762_vm14, %v4741_v54, %v4743_v24  ;;  %v4760_v21 = vsel %vm9763_vm15, %v4743_v24, %v4745_v55  ;;  %vm9765_vm14 = vcmask 1031168  }
 0x609   : >> { %5178 = vrot.lane.b32.xlu1 %v8588_v7, %s7095_s17  ;;  %5170 = vrot.lane.b32.xlu0 %v9017_v19, %s7095_s17  ;;  %vm9766_vm15 = vmmov %vm9765_vm14 }
 0x60a   : >> { %4782 = vmatprep.subr.bf16.mxu0 %v4760_v21 }
 0x60b   : >> { %4783 = vmatpush1.bf16.msra.mxu0 %v4759_v14  ;;  %v4751_v8 = vpop.permute.xlu1 %4750  ;;  %v4749_v29 = vpop.permute.xlu0 %4748 }
 0x60c   : >> { %v4762_v30 = vsel %vm9757_vm12, %v4749_v29, %v4751_v8  ;;  %vm9767_vm12 = vmmov %vm9765_vm14 }
 0x60d   : >> { %5176 = vrot.lane.b32.xlu1 %v8595_v9, %s7095_s17  ;;  %5180 = vrot.lane.b32.xlu0 %v8835_v22, %s7095_s17 }
 0x60e   : >> { %4784 = vmatprep.subr.bf16.mxu0 %v4762_v30 }
 0x60f   : >> { %v4834_v36 = vpop.permute.xlu1 %4833  ;;  %v4747_v7 = vpop.permute.xlu0 %4746 }
 0x610   : >> { %v4761_v31 = vsel %vm9764_vm13, %v4747_v7, %v4749_v29  ;;  %vm9768_vm13 = vmmov %vm9767_vm12 }
 0x611   : >> { %5186 = vrot.lane.b32.xlu1 %v8842_v47, %s7095_s17  ;;  %5184 = vrot.lane.b32.xlu0 %v8603_v41, %s7095_s17 }
 0x612   : >> { %4785 = vmatpush1.bf16.msra.mxu0 %v4761_v31 }
 0x613   : >> { %v4832_v37 = vpop.permute.xlu1 %4831  ;;  %v4836_v51 = vpop.permute.xlu0 %4835 }
 0x614   : >> { %v4862_v9 = vsel %vm9765_vm14, %v4832_v37, %v4834_v36  ;;  %v4863_v48 = vsel %vm9766_vm15, %v4834_v36, %v4836_v51  ;;  %vm9769_vm14 = vmmov %vm9767_vm12 }
 0x615   : >> { %5269 = vrot.lane.b32.xlu1 %v8983_v53, %s7096_s30  ;;  %5182 = vrot.lane.b32.xlu0 %v8612_v60, %s7095_s17  ;;  %vm9770_vm15 = vmmov %vm9767_vm12  ;;  %s7105_s17 = smov 103  }
 0x616   : >> { %4885 = vmatprep.subr.bf16.mxu0 %v4863_v48  ;;  %6339 = vmatmul.mubr.msk.bf16.vlgmr.msra.gmra.mrb[0].mxu0 %vm488_vm6, %v6836_v35 }
 0x617   : >> { %4886 = vmatpush1.bf16.msra.mxu0 %v4862_v9  ;;  %v4842_v41 = vpop.permute.xlu1 %4841  ;;  %v4840_v4 = vpop.permute.xlu0 %4839  ;;  %4917 = vmatprep.mubr.bf16.mxu0 %v7084_v42 }
 0x618   : >> { %v4865_v56 = vsel %vm9767_vm12, %v4840_v4, %v4842_v41 }
 0x619   : >> { %5267 = vrot.lane.b32.xlu1 %v8992_v23, %s7096_s30  ;;  %5271 = vrot.lane.b32.xlu0 %v8796_v27, %s7096_s30 }
 0x61a   : >> { %4887 = vmatprep.subr.bf16.mxu0 %v4865_v56 }
 0x61b   : >> { %v4846_v32 = vpop.permute.xlu1 %4845  ;;  %v4838_v6 = vpop.permute.xlu0 %4837 }
 0x61c   : >> { %v4864_v60 = vsel %vm9768_vm13, %v4838_v6, %v4840_v4  ;;  %vm9771_vm13 = vmmov %vm9767_vm12 }
 0x61d   : >> { %5277 = vrot.lane.b32.xlu1 %v8812_v12, %s7096_s30  ;;  %5275 = vrot.lane.b32.xlu0 %v9048_v59, %s7096_s30 }
 0x61e   : >> { %4888 = vmatpush1.bf16.msra.mxu0 %v4864_v60 }
 0x61f   : >> { %v4844_v57 = vpop.permute.xlu1 %4843  ;;  %v4848_v26 = vpop.permute.xlu0 %4847 }
 0x620   : >> { %v4866_v33 = vsel %vm9769_vm14, %v4844_v57, %v4846_v32  ;;  %v4867_v5 = vsel %vm9770_vm15, %v4846_v32, %v4848_v26  ;;  %vm9772_vm14 = vmmov %vm9767_vm12  ;;  %v6838_v32 = vld [vmem:[#allocation8 + $0x140] sm:$0xff]  }
 0x621   : >> { %5281 = vrot.lane.b32.xlu1 %v9008_v20, %s7096_s30  ;;  %5273 = vrot.lane.b32.xlu0 %v8998_v61, %s7096_s30  ;;  %vm9773_vm15 = vmmov %vm9767_vm12 }
 0x622   : >> { %4889 = vmatprep.subr.bf16.mxu0 %v4867_v5 }
 0x623   : >> { %4890 = vmatpush1.bf16.msra.mxu0 %v4866_v33  ;;  %v4854_v39 = vpop.permute.xlu1 %4853  ;;  %v4852_v18 = vpop.permute.xlu0 %4851 }
 0x624   : >> { %v4869_v34 = vsel %vm9767_vm12, %v4852_v18, %v4854_v39  ;;  %vm9774_vm12 = vcmask 965632  }
 0x625   : >> { %5279 = vrot.lane.b32.xlu1 %v9017_v19, %s7096_s30  ;;  %5283 = vrot.lane.b32.xlu0 %v8820_v17, %s7096_s30 }
 0x626   : >> { %4891 = vmatprep.subr.bf16.mxu0 %v4869_v34 }
 0x627   : >> { %v4858_v38 = vpop.permute.xlu1 %4857  ;;  %v4850_v10 = vpop.permute.xlu0 %4849 }
 0x628   : >> { %v4868_v40 = vsel %vm9771_vm13, %v4850_v10, %v4852_v18  ;;  %vm9775_vm13 = vmmov %vm9774_vm12  ;;  %v9142_v18 = vld [vmem:[%s8541_s13 + $0x80] sm:$0xff] }
 0x629   : >> { %5289 = vrot.lane.b32.xlu1 %v8835_v22, %s7096_s30  ;;  %5287 = vrot.lane.b32.xlu0 %v9067_v62, %s7096_s30 }
 0x62a   : >> { %4892 = vmatpush1.bf16.msra.mxu0 %v4868_v40 }
 0x62b   : >> { %v4856_v63 = vpop.permute.xlu1 %4855  ;;  %v4860_v50 = vpop.permute.xlu0 %4859 }
 0x62c   : >> { %v4870_v15 = vsel %vm9772_vm14, %v4856_v63, %v4858_v38  ;;  %v4871_v44 = vsel %vm9773_vm15, %v4858_v38, %v4860_v50  ;;  %vm9776_vm14 = vmmov %vm9774_vm12 }
 0x62d   : >> { %5293 = vrot.lane.b32.xlu1 %v9074_v49, %s7096_s30  ;;  %5285 = vrot.lane.b32.xlu0 %v9079_v16, %s7096_s30  ;;  %vm9777_vm15 = vmmov %vm9774_vm12 }
 0x62e   : >> { %4893 = vmatprep.subr.bf16.mxu0 %v4871_v44 }
 0x62f   : >> { %4894 = vmatpush1.bf16.msra.mxu0 %v4870_v15  ;;  %v4945_v28 = vpop.permute.xlu1 %4944  ;;  %v4943_v13 = vpop.permute.xlu0 %4942 }
 0x630   : >> { %v4972_v46 = vsel %vm9774_vm12, %v4943_v13, %v4945_v28 }
 0x631   : >> { %5291 = vrot.lane.b32.xlu1 %v9085_v25, %s7096_s30  ;;  %5295 = vrot.lane.b32.xlu0 %v8842_v47, %s7096_s30  ;;  %s7106_s30 = smov 1  }
 0x632   : >> { %4994 = vmatprep.subr.bf16.mxu0 %v4972_v46  ;;  %6341 = vmatmul.mubr.msk.bf16.vlgmr.msra.gmra.mrb[0].mxu0 %vm488_vm6, %v6837_v45 }
 0x633   : >> { %v4949_v58 = vpop.permute.xlu1 %4948  ;;  %v4941_v11 = vpop.permute.xlu0 %4940  ;;  %5026 = vmatprep.mubr.bf16.mxu0 %v7084_v42 }
 0x634   : >> { %v4971_v24 = vsel %vm9775_vm13, %v4941_v11, %v4943_v13  ;;  %vm9778_vm13 = vmmov %vm9774_vm12  ;;  %v9161_v13 = vld [vmem:[%s8541_s13] sm:$0xff] }
 0x635   : >> { %5380 = vrot.lane.b32.xlu1 %v8796_v27, %s7097_s26  ;;  %5378 = vrot.lane.b32.xlu0 %v8983_v53, %s7097_s26 }
 0x636   : >> { %4995 = vmatpush1.bf16.msra.mxu0 %v4971_v24 }
 0x637   : >> { %v4947_v43 = vpop.permute.xlu1 %4946  ;;  %v4951_v52 = vpop.permute.xlu0 %4950 }
 0x638   : >> { %v4973_v54 = vsel %vm9776_vm14, %v4947_v43, %v4949_v58  ;;  %v4974_v55 = vsel %vm9777_vm15, %v4949_v58, %v4951_v52  ;;  %vm9779_vm14 = vmmov %vm9774_vm12 }
 0x639   : >> { %5384 = vrot.lane.b32.xlu1 %v9048_v59, %s7097_s26  ;;  %5376 = vrot.lane.b32.xlu0 %v8992_v23, %s7097_s26  ;;  %vm9780_vm15 = vmmov %vm9774_vm12 }
 0x63a   : >> { %4996 = vmatprep.subr.bf16.mxu0 %v4974_v55 }
 0x63b   : >> { %4997 = vmatpush1.bf16.msra.mxu0 %v4973_v54  ;;  %v4957_v14 = vpop.permute.xlu1 %4956  ;;  %v4955_v21 = vpop.permute.xlu0 %4954  ;;  %v6839_v54 = vld [vmem:[#allocation8 + $0x148] sm:$0xff]  }
 0x63c   : >> { %v4976_v8 = vsel %vm9774_vm12, %v4955_v21, %v4957_v14 }
 0x63d   : >> { %5382 = vrot.lane.b32.xlu1 %v8998_v61, %s7097_s26  ;;  %5386 = vrot.lane.b32.xlu0 %v8812_v12, %s7097_s26 }
 0x63e   : >> { %4998 = vmatprep.subr.bf16.mxu0 %v4976_v8  ;;  %v9180_v8 = vld [vmem:[%s8541_s13 + $0x20] sm:$0xff] }
 0x63f   : >> { %v4961_v29 = vpop.permute.xlu1 %4960  ;;  %v4953_v30 = vpop.permute.xlu0 %4952 }
 0x640   : >> { %v4975_v36 = vsel %vm9778_vm13, %v4953_v30, %v4955_v21  ;;  %vm9781_vm13 = vmmov %vm9774_vm12 }
 0x641   : >> { %5392 = vrot.lane.b32.xlu1 %v8820_v17, %s7097_s26  ;;  %5390 = vrot.lane.b32.xlu0 %v9008_v20, %s7097_s26 }
 0x642   : >> { %4999 = vmatpush1.bf16.msra.mxu0 %v4975_v36 }
 0x643   : >> { %v4959_v7 = vpop.permute.xlu1 %4958  ;;  %v4963_v31 = vpop.permute.xlu0 %4962 }
 0x644   : >> { %v4977_v35 = vsel %vm9779_vm14, %v4959_v7, %v4961_v29  ;;  %v4978_v37 = vsel %vm9780_vm15, %v4961_v29, %v4963_v31  ;;  %vm9782_vm14 = vcmask 957440  }
 0x645   : >> { %5396 = vrot.lane.b32.xlu1 %v9067_v62, %s7097_s26  ;;  %5388 = vrot.lane.b32.xlu0 %v9017_v19, %s7097_s26  ;;  %vm9783_vm15 = vmmov %vm9782_vm14 }
 0x646   : >> { %5000 = vmatprep.subr.bf16.mxu0 %v4978_v37 }
 0x647   : >> { %5001 = vmatpush1.bf16.msra.mxu0 %v4977_v35  ;;  %v4969_v51 = vpop.permute.xlu1 %4968  ;;  %v4967_v9 = vpop.permute.xlu0 %4966 }
 0x648   : >> { %v4980_v48 = vsel %vm9774_vm12, %v4967_v9, %v4969_v51  ;;  %vm9784_vm12 = vmmov %vm9782_vm14 }
 0x649   : >> { %5394 = vrot.lane.b32.xlu1 %v9079_v16, %s7097_s26  ;;  %5398 = vrot.lane.b32.xlu0 %v8835_v22, %s7097_s26 }
 0x64a   : >> { %5002 = vmatprep.subr.bf16.mxu0 %v4980_v48  ;;  %v9201_v48 = vld [vmem:[%s8541_s13 + $0x40] sm:$0xff] }
 0x64b   : >> { %v5052_v41 = vpop.permute.xlu1 %5051  ;;  %v4965_v4 = vpop.permute.xlu0 %4964 }
 0x64c   : >> { %v4979_v56 = vsel %vm9781_vm13, %v4965_v4, %v4967_v9  ;;  %vm9785_vm13 = vmmov %vm9784_vm12 }
 0x64d   : >> { %4008 = vrot.lane.b32.xlu1 %v9074_v49, %s7090_s23  ;;  %4006 = vrot.lane.b32.xlu0 %v9085_v25, %s7090_s23 }
 0x64e   : >> { %5003 = vmatpush1.bf16.msra.mxu0 %v4979_v56 }
 0x64f   : >> { %v5050_v6 = vpop.permute.xlu1 %5049  ;;  %v5054_v60 = vpop.permute.xlu0 %5053 }
 0x650   : >> { %v5080_v57 = vsel %vm9782_vm14, %v5050_v6, %v5052_v41  ;;  %v5081_v26 = vsel %vm9783_vm15, %v5052_v41, %v5054_v60  ;;  %vm9786_vm14 = vmmov %vm9784_vm12 }
 0x651   : >> { %5404 = vrot.lane.b32.xlu1 %v8842_v47, %s7097_s26  ;;  %5402 = vrot.lane.b32.xlu0 %v9074_v49, %s7097_s26  ;;  %vm9787_vm15 = vmmov %vm9784_vm12 }
 0x652   : >> { %5103 = vmatprep.subr.bf16.mxu0 %v5081_v26  ;;  %6343 = vmatmul.mubr.msk.bf16.vlgmr.msra.gmra.mrb[0].mxu0 %vm488_vm6, %v6838_v32 }
 0x653   : >> { %5104 = vmatpush1.bf16.msra.mxu0 %v5080_v57  ;;  %v5060_v33 = vpop.permute.xlu1 %5059  ;;  %v5058_v5 = vpop.permute.xlu0 %5057  ;;  %5135 = vmatprep.mubr.bf16.mxu0 %v7084_v42 }
 0x654   : >> { %v5083_v39 = vsel %vm9784_vm12, %v5058_v5, %v5060_v33 }
 0x655   : >> { %5400 = vrot.lane.b32.xlu1 %v9085_v25, %s7097_s26  ;;  %4004 = vrot.lane.b32.xlu0 %v9142_v18, %s7090_s23  ;;  %s7100_s23 = smov 11   ;;  %s7107_s26 = smov 102  }
 0x656   : >> { %5105 = vmatprep.subr.bf16.mxu0 %v5083_v39 }
 0x657   : >> { %v5064_v34 = vpop.permute.xlu1 %5063  ;;  %v5056_v38 = vpop.permute.xlu0 %5055 }
 0x658   : >> { %v5082_v10 = vsel %vm9785_vm13, %v5056_v38, %v5058_v5  ;;  %vm9788_vm13 = vmmov %vm9784_vm12  ;;  %v9220_v5 = vld [vmem:[%s8541_s13 + $0x60] sm:$0xff]  ;;  %v6840_v38 = vld [vmem:[#allocation8 + $0x150] sm:$0xff]  }
 0x659   : >> { %4093 = vrot.lane.b32.xlu1 %v8983_v53, %s7098_s16  ;;  %4091 = vrot.lane.b32.xlu0 %v8992_v23, %s7098_s16 }
 0x65a   : >> { %5106 = vmatpush1.bf16.msra.mxu0 %v5082_v10 }
 0x65b   : >> { %v5062_v40 = vpop.permute.xlu1 %5061  ;;  %v5066_v63 = vpop.permute.xlu0 %5065 }
 0x65c   : >> { %v5084_v50 = vsel %vm9786_vm14, %v5062_v40, %v5064_v34  ;;  %v5085_v15 = vsel %vm9787_vm15, %v5064_v34, %v5066_v63  ;;  %vm9789_vm14 = vmmov %vm9784_vm12 }
 0x65d   : >> { %5489 = vrot.lane.b32.xlu1 %v8796_v27, %s7099_s24  ;;  %5487 = vrot.lane.b32.xlu0 %v8983_v53, %s7099_s24  ;;  %vm9790_vm15 = vmmov %vm9784_vm12 }
 0x65e   : >> { %5107 = vmatprep.subr.bf16.mxu0 %v5085_v15 }
 0x65f   : >> { %5108 = vmatpush1.bf16.msra.mxu0 %v5084_v50  ;;  %v5072_v44 = vpop.permute.xlu1 %5071  ;;  %v5070_v45 = vpop.permute.xlu0 %5069 }
 0x660   : >> { %v5087_v28 = vsel %vm9784_vm12, %v5070_v45, %v5072_v44  ;;  %vm9791_vm12 = vcmask 949248  }
 0x661   : >> { %5485 = vrot.lane.b32.xlu1 %v8992_v23, %s7099_s24  ;;  %4089 = vrot.lane.b32.xlu0 %v9161_v13, %s7098_s16 }
 0x662   : >> { %5109 = vmatprep.subr.bf16.mxu0 %v5087_v28 }
 0x663   : >> { %v5076_v46 = vpop.permute.xlu1 %5075  ;;  %v5068_v27 = vpop.permute.xlu0 %5067 }
 0x664   : >> { %v5086_v58 = vsel %vm9788_vm13, %v5068_v27, %v5070_v45  ;;  %vm9792_vm13 = vmmov %vm9791_vm12 }
 0x665   : >> { %4099 = vrot.lane.b32.xlu1 %v9048_v59, %s7098_s16  ;;  %4097 = vrot.lane.b32.xlu0 %v8998_v61, %s7098_s16 }
 0x666   : >> { %5110 = vmatpush1.bf16.msra.mxu0 %v5086_v58 }
 0x667   : >> { %v5074_v11 = vpop.permute.xlu1 %5073  ;;  %v5078_v24 = vpop.permute.xlu0 %5077 }
 0x668   : >> { %v5088_v43 = vsel %vm9789_vm14, %v5074_v11, %v5076_v46  ;;  %v5089_v52 = vsel %vm9790_vm15, %v5076_v46, %v5078_v24  ;;  %vm9793_vm14 = vmmov %vm9791_vm12 }
 0x669   : >> { %5495 = vrot.lane.b32.xlu1 %v8812_v12, %s7099_s24  ;;  %5493 = vrot.lane.b32.xlu0 %v9048_v59, %s7099_s24  ;;  %vm9794_vm15 = vmmov %vm9791_vm12 }
 0x66a   : >> { %5111 = vmatprep.subr.bf16.mxu0 %v5089_v52 }
 0x66b   : >> { %5112 = vmatpush1.bf16.msra.mxu0 %v5088_v43  ;;  %v5163_v55 = vpop.permute.xlu1 %5162  ;;  %v5161_v14 = vpop.permute.xlu0 %5160  ;;  %v9250_v43 = vld [vmem:[%s8541_s13 + $0x18] sm:$0xff] }
 0x66c   : >> { %v5190_v21 = vsel %vm9791_vm12, %v5161_v14, %v5163_v55 }
 0x66d   : >> { %5491 = vrot.lane.b32.xlu1 %v8998_v61, %s7099_s24  ;;  %4095 = vrot.lane.b32.xlu0 %v9180_v8, %s7098_s16 }
 0x66e   : >> { %5212 = vmatprep.subr.bf16.mxu0 %v5190_v21  ;;  %6345 = vmatmul.mubr.msk.bf16.vlgmr.msra.gmra.mrb[0].mxu0 %vm488_vm6, %v6839_v54 }
 0x66f   : >> { %v5167_v12 = vpop.permute.xlu1 %5166  ;;  %v5159_v29 = vpop.permute.xlu0 %5158  ;;  %5244 = vmatprep.mubr.bf16.mxu0 %v7084_v42 }
 0x670   : >> { %v5189_v30 = vsel %vm9792_vm13, %v5159_v29, %v5161_v14  ;;  %vm9795_vm13 = vmmov %vm9791_vm12 }
 0x671   : >> { %4105 = vrot.lane.b32.xlu1 %v9008_v20, %s7098_s16  ;;  %4103 = vrot.lane.b32.xlu0 %v9017_v19, %s7098_s16 }
 0x672   : >> { %5213 = vmatpush1.bf16.msra.mxu0 %v5189_v30 }
 0x673   : >> { %v5165_v36 = vpop.permute.xlu1 %5164  ;;  %v5169_v7 = vpop.permute.xlu0 %5168 }
 0x674   : >> { %v5191_v31 = vsel %vm9793_vm14, %v5165_v36, %v5167_v12  ;;  %v5192_v35 = vsel %vm9794_vm15, %v5167_v12, %v5169_v7  ;;  %vm9796_vm14 = vmmov %vm9791_vm12 }
 0x675   : >> { %5501 = vrot.lane.b32.xlu1 %v8820_v17, %s7099_s24  ;;  %5499 = vrot.lane.b32.xlu0 %v9008_v20, %s7099_s24  ;;  %vm9797_vm15 = vmmov %vm9791_vm12 }
 0x676   : >> { %5214 = vmatprep.subr.bf16.mxu0 %v5192_v35  ;;  %v6841_v35 = vld [vmem:[#allocation8 + $0x158] sm:$0xff]  }
 0x677   : >> { %5215 = vmatpush1.bf16.msra.mxu0 %v5191_v31  ;;  %v5175_v37 = vpop.permute.xlu1 %5174  ;;  %v5173_v51 = vpop.permute.xlu0 %5172  ;;  %v9269_v31 = vld [vmem:[%s8541_s13 + $0x38] sm:$0xff] }
 0x678   : >> { %v5194_v9 = vsel %vm9791_vm12, %v5173_v51, %v5175_v37 }
 0x679   : >> { %5497 = vrot.lane.b32.xlu1 %v9017_v19, %s7099_s24  ;;  %4101 = vrot.lane.b32.xlu0 %v9201_v48, %s7098_s16 }
 0x67a   : >> { %5216 = vmatprep.subr.bf16.mxu0 %v5194_v9 }
 0x67b   : >> { %v5179_v41 = vpop.permute.xlu1 %5178  ;;  %v5171_v17 = vpop.permute.xlu0 %5170 }
 0x67c   : >> { %v5193_v4 = vsel %vm9795_vm13, %v5171_v17, %v5173_v51  ;;  %vm9798_vm13 = vmmov %vm9791_vm12 }
 0x67d   : >> { %4111 = vrot.lane.b32.xlu1 %v9067_v62, %s7098_s16  ;;  %4109 = vrot.lane.b32.xlu0 %v9079_v16, %s7098_s16 }
 0x67e   : >> { %5217 = vmatpush1.bf16.msra.mxu0 %v5193_v4 }
 0x67f   : >> { %v5177_v56 = vpop.permute.xlu1 %5176  ;;  %v5181_v32 = vpop.permute.xlu0 %5180 }
 0x680   : >> { %v5195_v6 = vsel %vm9796_vm14, %v5177_v56, %v5179_v41  ;;  %v5196_v60 = vsel %vm9797_vm15, %v5179_v41, %v5181_v32  ;;  %vm9799_vm14 = vcmask 941056  }
 0x681   : >> { %5507 = vrot.lane.b32.xlu1 %v8835_v22, %s7099_s24  ;;  %5505 = vrot.lane.b32.xlu0 %v9067_v62, %s7099_s24  ;;  %vm9800_vm15 = vmmov %vm9799_vm14 }
 0x682   : >> { %5218 = vmatprep.subr.bf16.mxu0 %v5196_v60 }
 0x683   : >> { %5219 = vmatpush1.bf16.msra.mxu0 %v5195_v6  ;;  %v5187_v57 = vpop.permute.xlu1 %5186  ;;  %v5185_v26 = vpop.permute.xlu0 %5184 }
 0x684   : >> { %v5198_v33 = vsel %vm9791_vm12, %v5185_v26, %v5187_v57  ;;  %vm9801_vm12 = vmmov %vm9799_vm14  ;;  %v9290_v57 = vld [vmem:[%s8541_s13 + $0x58] sm:$0xff] }
 0x685   : >> { %5503 = vrot.lane.b32.xlu1 %v9079_v16, %s7099_s24  ;;  %4107 = vrot.lane.b32.xlu0 %v9220_v5, %s7098_s16 }
 0x686   : >> { %5220 = vmatprep.subr.bf16.mxu0 %v5198_v33 }
 0x687   : >> { %v5270_v39 = vpop.permute.xlu1 %5269  ;;  %v5183_v22 = vpop.permute.xlu0 %5182 }
 0x688   : >> { %v5197_v34 = vsel %vm9798_vm13, %v5183_v22, %v5185_v26  ;;  %vm9802_vm13 = vmmov %vm9801_vm12 }
 0x689   : >> { %4117 = vrot.lane.b32.xlu1 %v9074_v49, %s7098_s16  ;;  %4115 = vrot.lane.b32.xlu0 %v9085_v25, %s7098_s16 }
 0x68a   : >> { %5221 = vmatpush1.bf16.msra.mxu0 %v5197_v34 }
 0x68b   : >> { %v5268_v10 = vpop.permute.xlu1 %5267  ;;  %v5272_v40 = vpop.permute.xlu0 %5271 }
 0x68c   : >> { %v5298_v63 = vsel %vm9799_vm14, %v5268_v10, %v5270_v39  ;;  %v5299_v50 = vsel %vm9800_vm15, %v5270_v39, %v5272_v40  ;;  %vm9803_vm14 = vmmov %vm9801_vm12 }
 0x68d   : >> { %5513 = vrot.lane.b32.xlu1 %v8842_v47, %s7099_s24  ;;  %5511 = vrot.lane.b32.xlu0 %v9074_v49, %s7099_s24  ;;  %vm9804_vm15 = vmmov %vm9801_vm12 }
 0x68e   : >> { %5321 = vmatprep.subr.bf16.mxu0 %v5299_v50  ;;  %6347 = vmatmul.mubr.msk.bf16.vlgmr.msra.gmra.mrb[0].mxu0 %vm488_vm6, %v6840_v38 }
 0x68f   : >> { %5322 = vmatpush1.bf16.msra.mxu0 %v5298_v63  ;;  %v5278_v15 = vpop.permute.xlu1 %5277  ;;  %v5276_v44 = vpop.permute.xlu0 %5275  ;;  %5353 = vmatprep.mubr.bf16.mxu0 %v7084_v42 }
 0x690   : >> { %v5301_v45 = vsel %vm9801_vm12, %v5276_v44, %v5278_v15  ;;  %v9309_v15 = vld [vmem:[%s8541_s13 + $0x78] sm:$0xff] }
 0x691   : >> { %5509 = vrot.lane.b32.xlu1 %v9085_v25, %s7099_s24  ;;  %4113 = vrot.lane.b32.xlu0 %v9142_v18, %s7098_s16 }
 0x692   : >> { %5323 = vmatprep.subr.bf16.mxu0 %v5301_v45 }
 0x693   : >> { %v5282_v47 = vpop.permute.xlu1 %5281  ;;  %v5274_v28 = vpop.permute.xlu0 %5273 }
 0x694   : >> { %v5300_v46 = vsel %vm9802_vm13, %v5274_v28, %v5276_v44  ;;  %vm9805_vm13 = vmmov %vm9801_vm12 }
 0x695   : >> { %4202 = vrot.lane.b32.xlu1 %v8983_v53, %s7100_s23  ;;  %4200 = vrot.lane.b32.xlu0 %v8992_v23, %s7100_s23 }
 0x696   : >> { %5324 = vmatpush1.bf16.msra.mxu0 %v5300_v46 }
 0x697   : >> { %v5280_v27 = vpop.permute.xlu1 %5279  ;;  %v5284_v58 = vpop.permute.xlu0 %5283 }
 0x698   : >> { %v5302_v11 = vsel %vm9803_vm14, %v5280_v27, %v5282_v47  ;;  %v5303_v24 = vsel %vm9804_vm15, %v5282_v47, %v5284_v58  ;;  %vm9806_vm14 = vmmov %vm9801_vm12 }
 0x699   : >> { %5598 = vrot.lane.b32.xlu1 %v9250_v43, %s7101_s9  ;;  %5596 = vrot.lane.b32.xlu0 %v8983_v53, %s7101_s9  ;;  %vm9807_vm15 = vmmov %vm9801_vm12 }
 0x69a   : >> { %5325 = vmatprep.subr.bf16.mxu0 %v5303_v24 }
 0x69b   : >> { %5326 = vmatpush1.bf16.msra.mxu0 %v5302_v11  ;;  %v5290_v52 = vpop.permute.xlu1 %5289  ;;  %v5288_v54 = vpop.permute.xlu0 %5287 }
 0x69c   : >> { %v5305_v55 = vsel %vm9801_vm12, %v5288_v54, %v5290_v52  ;;  %vm9808_vm12 = vcmask 932864  }
 0x69d   : >> { %5594 = vrot.lane.b32.xlu1 %v8992_v23, %s7101_s9  ;;  %4198 = vrot.lane.b32.xlu0 %v9161_v13, %s7100_s23 }
 0x69e   : >> { %5327 = vmatprep.subr.bf16.mxu0 %v5305_v55  ;;  %v6842_v55 = vld [vmem:[#allocation8 + $0xf8] sm:$0xff]  }
 0x69f   : >> { %v5294_v14 = vpop.permute.xlu1 %5293  ;;  %v5286_v21 = vpop.permute.xlu0 %5285 }
 0x6a0   : >> { %v5304_v12 = vsel %vm9805_vm13, %v5286_v21, %v5288_v54  ;;  %vm9809_vm13 = vmmov %vm9808_vm12  ;;  %v9328_v54 = vld [vmem:[%s8541_s13 + $0x98] sm:$0xff] }
 0x6a1   : >> { %4208 = vrot.lane.b32.xlu1 %v9048_v59, %s7100_s23  ;;  %4206 = vrot.lane.b32.xlu0 %v8998_v61, %s7100_s23 }
 0x6a2   : >> { %5328 = vmatpush1.bf16.msra.mxu0 %v5304_v12  ;;  %v6843_v12 = vld [vmem:[#allocation8 + $0x160] sm:$0xff]  }
 0x6a3   : >> { %v5292_v29 = vpop.permute.xlu1 %5291  ;;  %v5296_v30 = vpop.permute.xlu0 %5295 }
 0x6a4   : >> { %v5306_v36 = vsel %vm9806_vm14, %v5292_v29, %v5294_v14  ;;  %v5307_v7 = vsel %vm9807_vm15, %v5294_v14, %v5296_v30  ;;  %vm9810_vm14 = vmmov %vm9808_vm12 }
 0x6a5   : >> { %5604 = vrot.lane.b32.xlu1 %v9269_v31, %s7101_s9  ;;  %5602 = vrot.lane.b32.xlu0 %v9048_v59, %s7101_s9  ;;  %vm9811_vm15 = vmmov %vm9808_vm12 }
 0x6a6   : >> { %5329 = vmatprep.subr.bf16.mxu0 %v5307_v7 }
 0x6a7   : >> { %5330 = vmatpush1.bf16.msra.mxu0 %v5306_v36  ;;  %v5381_v37 = vpop.permute.xlu1 %5380  ;;  %v5379_v51 = vpop.permute.xlu0 %5378 }
 0x6a8   : >> { %v5408_v9 = vsel %vm9808_vm12, %v5379_v51, %v5381_v37 }
 0x6a9   : >> { %5600 = vrot.lane.b32.xlu1 %v8998_v61, %s7101_s9  ;;  %4204 = vrot.lane.b32.xlu0 %v9180_v8, %s7100_s23 }
 0x6aa   : >> { %5430 = vmatprep.subr.bf16.mxu0 %v5408_v9  ;;  %6349 = vmatmul.mubr.msk.bf16.vlgmr.msra.gmra.mrb[0].mxu0 %vm488_vm6, %v6841_v35 }
 0x6ab   : >> { %v5385_v41 = vpop.permute.xlu1 %5384  ;;  %v5377_v17 = vpop.permute.xlu0 %5376  ;;  %5462 = vmatprep.mubr.bf16.mxu0 %v7084_v42 }
 0x6ac   : >> { %v5407_v4 = vsel %vm9809_vm13, %v5377_v17, %v5379_v51  ;;  %vm9812_vm13 = vmmov %vm9808_vm12 }
 0x6ad   : >> { %4214 = vrot.lane.b32.xlu1 %v9008_v20, %s7100_s23  ;;  %4212 = vrot.lane.b32.xlu0 %v9017_v19, %s7100_s23 }
 0x6ae   : >> { %5431 = vmatpush1.bf16.msra.mxu0 %v5407_v4 }
 0x6af   : >> { %v5383_v56 = vpop.permute.xlu1 %5382  ;;  %v5387_v32 = vpop.permute.xlu0 %5386 }
 0x6b0   : >> { %v5409_v6 = vsel %vm9810_vm14, %v5383_v56, %v5385_v41  ;;  %v5410_v60 = vsel %vm9811_vm15, %v5385_v41, %v5387_v32  ;;  %vm9813_vm14 = vmmov %vm9808_vm12 }
 0x6b1   : >> { %5610 = vrot.lane.b32.xlu1 %v9290_v57, %s7101_s9  ;;  %5608 = vrot.lane.b32.xlu0 %v9008_v20, %s7101_s9  ;;  %vm9814_vm15 = vmmov %vm9808_vm12 }
 0x6b2   : >> { %5432 = vmatprep.subr.bf16.mxu0 %v5410_v60 }
 0x6b3   : >> { %5433 = vmatpush1.bf16.msra.mxu0 %v5409_v6  ;;  %v5393_v26 = vpop.permute.xlu1 %5392  ;;  %v5391_v33 = vpop.permute.xlu0 %5390 }
 0x6b4   : >> { %v5412_v39 = vsel %vm9808_vm12, %v5391_v33, %v5393_v26 }
 0x6b5   : >> { %5606 = vrot.lane.b32.xlu1 %v9017_v19, %s7101_s9  ;;  %4210 = vrot.lane.b32.xlu0 %v9201_v48, %s7100_s23 }
 0x6b6   : >> { %5434 = vmatprep.subr.bf16.mxu0 %v5412_v39 }
 0x6b7   : >> { %v5397_v22 = vpop.permute.xlu1 %5396  ;;  %v5389_v34 = vpop.permute.xlu0 %5388 }
 0x6b8   : >> { %v5411_v38 = vsel %vm9812_vm13, %v5389_v34, %v5391_v33  ;;  %vm9815_vm13 = vmmov %vm9808_vm12 }
 0x6b9   : >> { %4220 = vrot.lane.b32.xlu1 %v9067_v62, %s7100_s23  ;;  %4218 = vrot.lane.b32.xlu0 %v9079_v16, %s7100_s23 }
 0x6ba   : >> { %5435 = vmatpush1.bf16.msra.mxu0 %v5411_v38 }
 0x6bb   : >> { %v5395_v10 = vpop.permute.xlu1 %5394  ;;  %v5399_v40 = vpop.permute.xlu0 %5398 }
 0x6bc   : >> { %v5413_v63 = vsel %vm9813_vm14, %v5395_v10, %v5397_v22  ;;  %v5414_v50 = vsel %vm9814_vm15, %v5397_v22, %v5399_v40  ;;  %vm9816_vm14 = vcmask 97280   ;;  %vm9817_vm15 = vcmask 867328  }
 0x6bd   : >> { %5616 = vrot.lane.b32.xlu1 %v9309_v15, %s7101_s9  ;;  %5614 = vrot.lane.b32.xlu0 %v9067_v62, %s7101_s9 }
 0x6be   : >> { %5436 = vmatprep.subr.bf16.mxu0 %v5414_v50 }
 0x6bf   : >> { %5437 = vmatpush1.bf16.msra.mxu0 %v5413_v63  ;;  %v4009_v44 = vpop.permute.xlu1 %4008  ;;  %v4007_v45 = vpop.permute.xlu0 %4006 }
 0x6c0   : >> { %v4020_v47 = vsel %vm1111_vm11, %v4007_v45, %v4009_v44 }
 0x6c1   : >> { %5612 = vrot.lane.b32.xlu1 %v9079_v16, %s7101_s9  ;;  %4216 = vrot.lane.b32.xlu0 %v9220_v5, %s7100_s23 }
 0x6c2   : >> { %4042 = vmatprep.subr.bf16.mxu1 %v4020_v47 }
 0x6c3   : >> { %v5405_v28 = vpop.permute.xlu1 %5404  ;;  %v5403_v46 = vpop.permute.xlu0 %5402 }
 0x6c4   : >> { %v5416_v27 = vsel %vm9808_vm12, %v5403_v46, %v5405_v28  ;;  %vm9818_vm12 = vmmov %vm9817_vm15 }
 0x6c5   : >> { %4226 = vrot.lane.b32.xlu1 %v9074_v49, %s7100_s23  ;;  %4224 = vrot.lane.b32.xlu0 %v9085_v25, %s7100_s23 }
 0x6c6   : >> { %5438 = vmatprep.subr.bf16.mxu0 %v5416_v27 }
 0x6c7   : >> { %v5401_v58 = vpop.permute.xlu1 %5400  ;;  %v4005_v11 = vpop.permute.xlu0 %4004 }
 0x6c8   : >> { %v5415_v24 = vsel %vm9815_vm13, %v5401_v58, %v5403_v46  ;;  %v4019_v52 = vsel %vm1111_vm11, %v4005_v11, %v4007_v45  ;;  %vm9819_vm13 = vmmov %vm9816_vm14 }
 0x6c9   : >> { %5622 = vrot.lane.b32.xlu1 %v9328_v54, %s7101_s9  ;;  %5620 = vrot.lane.b32.xlu0 %v9074_v49, %s7101_s9 }
 0x6ca   : >> { %4043 = vmatpush1.bf16.msra.mxu1 %v4019_v52  ;;  %5439 = vmatpush1.bf16.msra.mxu0 %v5415_v24 }
 0x6cb   : >> { %v4094_v14 = vpop.permute.xlu1 %4093  ;;  %v4092_v21 = vpop.permute.xlu0 %4091 }
 0x6cc   : >> { %v4121_v29 = vsel %vm9816_vm14, %v4092_v21, %v4094_v14  ;;  %vm9820_vm14 = vmmov %vm9819_vm13 }
 0x6cd   : >> { %5618 = vrot.lane.b32.xlu1 %v9085_v25, %s7101_s9  ;;  %4222 = vrot.lane.b32.xlu0 %v9142_v18, %s7100_s23 }
 0x6ce   : >> { %4143 = vmatprep.subr.bf16.mxu1 %v4121_v29  ;;  %6325 = vmatmul.mubr.msk.bf16.vlgmr.msra.gmra.mrb[0].mxu1 %vm488_vm6, %v6842_v55 }
 0x6cf   : >> { %v5490_v30 = vpop.permute.xlu1 %5489  ;;  %v5488_v36 = vpop.permute.xlu0 %5487  ;;  %6351 = vmatmul.mubr.msk.bf16.vlgmr.msra.gmra.mrb[0].mxu0 %vm488_vm6, %v6843_v12  ;;  %4175 = vmatprep.mubr.bf16.mxu1 %v7084_v42 }
 0x6d0   : >> { %v5517_v7 = vsel %vm9817_vm15, %v5488_v36, %v5490_v30  ;;  %5571 = vmatprep.mubr.bf16.mxu0 %v7084_v42  ;;  %vm9821_vm15 = vmmov %vm9818_vm12 }
 0x6d1   : >> { %4311 = vrot.lane.b32.xlu1 %v8983_v53, %s7102_s15  ;;  %4309 = vrot.lane.b32.xlu0 %v8992_v23, %s7102_s15 }
 0x6d2   : >> { %5539 = vmatprep.subr.bf16.mxu0 %v5517_v7 }
 0x6d3   : >> { %v5486_v35 = vpop.permute.xlu1 %5485  ;;  %v4090_v37 = vpop.permute.xlu0 %4089 }
 0x6d4   : >> { %v5516_v51 = vsel %vm9818_vm12, %v5486_v35, %v5488_v36  ;;  %v4120_v9 = vsel %vm9819_vm13, %v4090_v37, %v4092_v21 }
 0x6d5   : >> { %5707 = vrot.lane.b32.xlu1 %v9250_v43, %s7103_s6  ;;  %5705 = vrot.lane.b32.xlu0 %v8983_v53, %s7103_s6 }
 0x6d6   : >> { %4144 = vmatpush1.bf16.msra.mxu1 %v4120_v9  ;;  %5540 = vmatpush1.bf16.msra.mxu0 %v5516_v51  ;;  %v6844_v9 = vld [vmem:[#allocation8 + $0x100] sm:$0xff]  }
 0x6d7   : >> { %v4100_v41 = vpop.permute.xlu1 %4099  ;;  %v4098_v17 = vpop.permute.xlu0 %4097 }
 0x6d8   : >> { %v4123_v4 = vsel %vm9820_vm14, %v4098_v17, %v4100_v41  ;;  %vm9822_vm14 = vmmov %vm9819_vm13 }
 0x6d9   : >> { %5703 = vrot.lane.b32.xlu1 %v8992_v23, %s7103_s6  ;;  %4307 = vrot.lane.b32.xlu0 %v9161_v13, %s7102_s15 }
 0x6da   : >> { %4145 = vmatprep.subr.bf16.mxu1 %v4123_v4  ;;  %v6845_v4 = vld [vmem:[#allocation8 + $0x168] sm:$0xff]  }
 0x6db   : >> { %v5496_v56 = vpop.permute.xlu1 %5495  ;;  %v5494_v32 = vpop.permute.xlu0 %5493 }
 0x6dc   : >> { %v5519_v6 = vsel %vm9821_vm15, %v5494_v32, %v5496_v56  ;;  %vm9823_vm15 = vmmov %vm9818_vm12 }
 0x6dd   : >> { %4317 = vrot.lane.b32.xlu1 %v9048_v59, %s7102_s15  ;;  %4315 = vrot.lane.b32.xlu0 %v8998_v61, %s7102_s15 }
 0x6de   : >> { %5541 = vmatprep.subr.bf16.mxu0 %v5519_v6 }
 0x6df   : >> { %v5492_v60 = vpop.permute.xlu1 %5491  ;;  %v4096_v26 = vpop.permute.xlu0 %4095 }
 0x6e0   : >> { %v5518_v33 = vsel %vm9818_vm12, %v5492_v60, %v5494_v32  ;;  %v4122_v39 = vsel %vm9819_vm13, %v4096_v26, %v4098_v17 }
 0x6e1   : >> { %5713 = vrot.lane.b32.xlu1 %v9269_v31, %s7103_s6  ;;  %5711 = vrot.lane.b32.xlu0 %v9048_v59, %s7103_s6 }
 0x6e2   : >> { %4146 = vmatpush1.bf16.msra.mxu1 %v4122_v39  ;;  %5542 = vmatpush1.bf16.msra.mxu0 %v5518_v33 }
 0x6e3   : >> { %v4106_v22 = vpop.permute.xlu1 %4105  ;;  %v4104_v34 = vpop.permute.xlu0 %4103 }
 0x6e4   : >> { %v4125_v38 = vsel %vm9822_vm14, %v4104_v34, %v4106_v22  ;;  %vm9824_vm14 = vmmov %vm9819_vm13 }
 0x6e5   : >> { %5709 = vrot.lane.b32.xlu1 %v8998_v61, %s7103_s6  ;;  %4313 = vrot.lane.b32.xlu0 %v9180_v8, %s7102_s15 }
 0x6e6   : >> { %4147 = vmatprep.subr.bf16.mxu1 %v4125_v38 }
 0x6e7   : >> { %v5502_v10 = vpop.permute.xlu1 %5501  ;;  %v5500_v40 = vpop.permute.xlu0 %5499 }
 0x6e8   : >> { %v5521_v63 = vsel %vm9823_vm15, %v5500_v40, %v5502_v10  ;;  %vm9825_vm15 = vmmov %vm9818_vm12 }
 0x6e9   : >> { %4323 = vrot.lane.b32.xlu1 %v9008_v20, %s7102_s15  ;;  %4321 = vrot.lane.b32.xlu0 %v9017_v19, %s7102_s15 }
 0x6ea   : >> { %5543 = vmatprep.subr.bf16.mxu0 %v5521_v63 }
 0x6eb   : >> { %v5498_v50 = vpop.permute.xlu1 %5497  ;;  %v4102_v44 = vpop.permute.xlu0 %4101 }
 0x6ec   : >> { %v5520_v45 = vsel %vm9818_vm12, %v5498_v50, %v5500_v40  ;;  %v4124_v47 = vsel %vm9819_vm13, %v4102_v44, %v4104_v34 }
 0x6ed   : >> { %5719 = vrot.lane.b32.xlu1 %v9290_v57, %s7103_s6  ;;  %5717 = vrot.lane.b32.xlu0 %v9008_v20, %s7103_s6 }
 0x6ee   : >> { %4148 = vmatpush1.bf16.msra.mxu1 %v4124_v47  ;;  %5544 = vmatpush1.bf16.msra.mxu0 %v5520_v45 }
 0x6ef   : >> { %v4112_v28 = vpop.permute.xlu1 %4111  ;;  %v4110_v46 = vpop.permute.xlu0 %4109 }
 0x6f0   : >> { %v4127_v27 = vsel %vm9824_vm14, %v4110_v46, %v4112_v28  ;;  %vm9826_vm14 = vmmov %vm9819_vm13 }
 0x6f1   : >> { %5715 = vrot.lane.b32.xlu1 %v9017_v19, %s7103_s6  ;;  %4319 = vrot.lane.b32.xlu0 %v9201_v48, %s7102_s15 }
 0x6f2   : >> { %4149 = vmatprep.subr.bf16.mxu1 %v4127_v27 }
 0x6f3   : >> { %v5508_v58 = vpop.permute.xlu1 %5507  ;;  %v5506_v11 = vpop.permute.xlu0 %5505 }
 0x6f4   : >> { %v5523_v24 = vsel %vm9825_vm15, %v5506_v11, %v5508_v58  ;;  %vm9827_vm15 = vmmov %vm9818_vm12 }
 0x6f5   : >> { %4329 = vrot.lane.b32.xlu1 %v9067_v62, %s7102_s15  ;;  %4327 = vrot.lane.b32.xlu0 %v9079_v16, %s7102_s15 }
 0x6f6   : >> { %5545 = vmatprep.subr.bf16.mxu0 %v5523_v24  ;;  %v9469_v24 = vld [vmem:[%s8541_s13 + $0x48] sm:$0xff] }
 0x6f7   : >> { %v5504_v20 = vpop.permute.xlu1 %5503  ;;  %v4108_v52 = vpop.permute.xlu0 %4107 }
 0x6f8   : >> { %v5522_v55 = vsel %vm9818_vm12, %v5504_v20, %v5506_v11  ;;  %v4126_v19 = vsel %vm9819_vm13, %v4108_v52, %v4110_v46  ;;  %v9456_v46 = vld [vmem:[%s8541_s13 + $0x28] sm:$0xff] }
 0x6f9   : >> { %5725 = vrot.lane.b32.xlu1 %v9309_v15, %s7103_s6  ;;  %5723 = vrot.lane.b32.xlu0 %v9067_v62, %s7103_s6 }
 0x6fa   : >> { %4150 = vmatpush1.bf16.msra.mxu1 %v4126_v19  ;;  %5546 = vmatpush1.bf16.msra.mxu0 %v5522_v55 }
 0x6fb   : >> { %v4118_v14 = vpop.permute.xlu1 %4117  ;;  %v4116_v21 = vpop.permute.xlu0 %4115 }
 0x6fc   : >> { %v4129_v12 = vsel %vm9826_vm14, %v4116_v21, %v4118_v14  ;;  %vm9828_vm14 = vcmask 89088  }
 0x6fd   : >> { %5721 = vrot.lane.b32.xlu1 %v9079_v16, %s7103_s6  ;;  %4325 = vrot.lane.b32.xlu0 %v9220_v5, %s7102_s15 }
 0x6fe   : >> { %4151 = vmatprep.subr.bf16.mxu1 %v4129_v12 }
 0x6ff   : >> { %v5514_v29 = vpop.permute.xlu1 %5513  ;;  %v5512_v30 = vpop.permute.xlu0 %5511 }
 0x700   : >> { %v5525_v36 = vsel %vm9827_vm15, %v5512_v30, %v5514_v29  ;;  %vm9829_vm15 = vcmask 859136  }
 0x701   : >> { %4335 = vrot.lane.b32.xlu1 %v9074_v49, %s7102_s15  ;;  %4333 = vrot.lane.b32.xlu0 %v9085_v25, %s7102_s15 }
 0x702   : >> { %5547 = vmatprep.subr.bf16.mxu0 %v5525_v36 }
 0x703   : >> { %v5510_v7 = vpop.permute.xlu1 %5509  ;;  %v4114_v35 = vpop.permute.xlu0 %4113 }
 0x704   : >> { %v5524_v37 = vsel %vm9818_vm12, %v5510_v7, %v5512_v30  ;;  %v4128_v51 = vsel %vm9819_vm13, %v4114_v35, %v4116_v21  ;;  %vm9830_vm12 = vmmov %vm9829_vm15 }
 0x705   : >> { %5731 = vrot.lane.b32.xlu1 %v9328_v54, %s7103_s6  ;;  %5729 = vrot.lane.b32.xlu0 %v9074_v49, %s7103_s6  ;;  %vm9831_vm13 = vmmov %vm9828_vm14 }
 0x706   : >> { %4152 = vmatpush1.bf16.msra.mxu1 %v4128_v51  ;;  %5548 = vmatpush1.bf16.msra.mxu0 %v5524_v37 }
 0x707   : >> { %v4203_v41 = vpop.permute.xlu1 %4202  ;;  %v4201_v17 = vpop.permute.xlu0 %4200 }
 0x708   : >> { %v4230_v56 = vsel %vm9828_vm14, %v4201_v17, %v4203_v41  ;;  %vm9832_vm14 = vmmov %vm9831_vm13 }
 0x709   : >> { %5727 = vrot.lane.b32.xlu1 %v9085_v25, %s7103_s6  ;;  %4331 = vrot.lane.b32.xlu0 %v9142_v18, %s7102_s15 }
 0x70a   : >> { %4252 = vmatprep.subr.bf16.mxu1 %v4230_v56  ;;  %6327 = vmatmul.mubr.msk.bf16.vlgmr.msra.gmra.mrb[0].mxu1 %vm488_vm6, %v6844_v9 }
 0x70b   : >> { %v5599_v32 = vpop.permute.xlu1 %5598  ;;  %v5597_v6 = vpop.permute.xlu0 %5596  ;;  %6353 = vmatmul.mubr.msk.bf16.vlgmr.msra.gmra.mrb[0].mxu0 %vm488_vm6, %v6845_v4  ;;  %4284 = vmatprep.mubr.bf16.mxu1 %v7084_v42 }
 0x70c   : >> { %v5626_v60 = vsel %vm9829_vm15, %v5597_v6, %v5599_v32  ;;  %5680 = vmatprep.mubr.bf16.mxu0 %v7084_v42  ;;  %vm9833_vm15 = vmmov %vm9830_vm12 }
 0x70d   : >> { %4420 = vrot.lane.b32.xlu1 %v8983_v53, %s7104_s14  ;;  %4418 = vrot.lane.b32.xlu0 %v8992_v23, %s7104_s14 }
 0x70e   : >> { %5648 = vmatprep.subr.bf16.mxu0 %v5626_v60 }
 0x70f   : >> { %v5595_v26 = vpop.permute.xlu1 %5594  ;;  %v4199_v33 = vpop.permute.xlu0 %4198 }
 0x710   : >> { %v5625_v39 = vsel %vm9830_vm12, %v5595_v26, %v5597_v6  ;;  %v4229_v22 = vsel %vm9831_vm13, %v4199_v33, %v4201_v17  ;;  %v6846_v26 = vld [vmem:[#allocation8 + $0x108] sm:$0xff]  }
 0x711   : >> { %5816 = vrot.lane.b32.xlu1 %v9250_v43, %s7105_s17  ;;  %5814 = vrot.lane.b32.xlu0 %v8983_v53, %s7105_s17 }
 0x712   : >> { %4253 = vmatpush1.bf16.msra.mxu1 %v4229_v22  ;;  %5649 = vmatpush1.bf16.msra.mxu0 %v5625_v39  ;;  %v6847_v22 = vld [vmem:[#allocation8 + $0x170] sm:$0xff]  }
 0x713   : >> { %v4209_v34 = vpop.permute.xlu1 %4208  ;;  %v4207_v38 = vpop.permute.xlu0 %4206 }
 0x714   : >> { %v4232_v10 = vsel %vm9832_vm14, %v4207_v38, %v4209_v34  ;;  %vm9834_vm14 = vmmov %vm9831_vm13 }
 0x715   : >> { %5812 = vrot.lane.b32.xlu1 %v8992_v23, %s7105_s17  ;;  %4416 = vrot.lane.b32.xlu0 %v9161_v13, %s7104_s14 }
 0x716   : >> { %4254 = vmatprep.subr.bf16.mxu1 %v4232_v10 }
 0x717   : >> { %v5605_v40 = vpop.permute.xlu1 %5604  ;;  %v5603_v63 = vpop.permute.xlu0 %5602 }
 0x718   : >> { %v5628_v50 = vsel %vm9833_vm15, %v5603_v63, %v5605_v40  ;;  %vm9835_vm15 = vmmov %vm9830_vm12  ;;  %v6877_v40 = vld [vmem:[%s8541_s13 + $0x10] sm:$0xff] }
 0x719   : >> { %4426 = vrot.lane.b32.xlu1 %v9048_v59, %s7104_s14  ;;  %4424 = vrot.lane.b32.xlu0 %v8998_v61, %s7104_s14 }
 0x71a   : >> { %5650 = vmatprep.subr.bf16.mxu0 %v5628_v50 }
 0x71b   : >> { %v5601_v53 = vpop.permute.xlu1 %5600  ;;  %v4205_v44 = vpop.permute.xlu0 %4204 }
 0x71c   : >> { %v5627_v23 = vsel %vm9830_vm12, %v5601_v53, %v5603_v63  ;;  %v4231_v45 = vsel %vm9831_vm13, %v4205_v44, %v4207_v38 }
 0x71d   : >> { %5822 = vrot.lane.b32.xlu1 %v9269_v31, %s7105_s17  ;;  %5820 = vrot.lane.b32.xlu0 %v9048_v59, %s7105_s17  ;;  %v9464_v59 = vld [vmem:[%s8541_s13 + $0x50] sm:$0xff] }
 0x71e   : >> { %4255 = vmatpush1.bf16.msra.mxu1 %v4231_v45  ;;  %5651 = vmatpush1.bf16.msra.mxu0 %v5627_v23 }
 0x71f   : >> { %v4215_v47 = vpop.permute.xlu1 %4214  ;;  %v4213_v28 = vpop.permute.xlu0 %4212 }
 0x720   : >> { %v4234_v61 = vsel %vm9834_vm14, %v4213_v28, %v4215_v47  ;;  %vm9836_vm14 = vmmov %vm9831_vm13 }
 0x721   : >> { %5818 = vrot.lane.b32.xlu1 %v9456_v46, %s7105_s17  ;;  %4422 = vrot.lane.b32.xlu0 %v9180_v8, %s7104_s14 }
 0x722   : >> { %4256 = vmatprep.subr.bf16.mxu1 %v4234_v61 }
 0x723   : >> { %v5611_v27 = vpop.permute.xlu1 %5610  ;;  %v5609_v58 = vpop.permute.xlu0 %5608 }
 0x724   : >> { %v5630_v11 = vsel %vm9835_vm15, %v5609_v58, %v5611_v27  ;;  %vm9837_vm15 = vmmov %vm9830_vm12  ;;  %v6879_v27 = vld [vmem:[%s8541_s13 + $0x30] sm:$0xff] }
 0x725   : >> { %4432 = vrot.lane.b32.xlu1 %v9464_v59, %s7104_s14  ;;  %4430 = vrot.lane.b32.xlu0 %v9469_v24, %s7104_s14 }
 0x726   : >> { %5652 = vmatprep.subr.bf16.mxu0 %v5630_v11 }
 0x727   : >> { %v5607_v20 = vpop.permute.xlu1 %5606  ;;  %v4211_v52 = vpop.permute.xlu0 %4210 }
 0x728   : >> { %v5629_v55 = vsel %vm9830_vm12, %v5607_v20, %v5609_v58  ;;  %v4233_v19 = vsel %vm9831_vm13, %v4211_v52, %v4213_v28 }
 0x729   : >> { %5828 = vrot.lane.b32.xlu1 %v9290_v57, %s7105_s17  ;;  %5826 = vrot.lane.b32.xlu0 %v9464_v59, %s7105_s17 }
 0x72a   : >> { %4257 = vmatpush1.bf16.msra.mxu1 %v4233_v19  ;;  %5653 = vmatpush1.bf16.msra.mxu0 %v5629_v55 }
 0x72b   : >> { %v4221_v14 = vpop.permute.xlu1 %4220  ;;  %v4219_v21 = vpop.permute.xlu0 %4218 }
 0x72c   : >> { %v4236_v12 = vsel %vm9836_vm14, %v4219_v21, %v4221_v14  ;;  %vm9838_vm14 = vmmov %vm9831_vm13 }
 0x72d   : >> { %5824 = vrot.lane.b32.xlu1 %v9469_v24, %s7105_s17  ;;  %4428 = vrot.lane.b32.xlu0 %v9201_v48, %s7104_s14 }
 0x72e   : >> { %4258 = vmatprep.subr.bf16.mxu1 %v4236_v12 }
 0x72f   : >> { %v5617_v29 = vpop.permute.xlu1 %5616  ;;  %v5615_v30 = vpop.permute.xlu0 %5614 }
 0x730   : >> { %v5632_v36 = vsel %vm9837_vm15, %v5615_v30, %v5617_v29  ;;  %vm9839_vm15 = vmmov %vm9830_vm12 }
 0x731   : >> { %4438 = vrot.lane.b32.xlu1 %v9067_v62, %s7104_s14  ;;  %4436 = vrot.lane.b32.xlu0 %v9079_v16, %s7104_s14 }
 0x732   : >> { %5654 = vmatprep.subr.bf16.mxu0 %v5632_v36 }
 0x733   : >> { %v5613_v7 = vpop.permute.xlu1 %5612  ;;  %v4217_v35 = vpop.permute.xlu0 %4216 }
 0x734   : >> { %v5631_v37 = vsel %vm9830_vm12, %v5613_v7, %v5615_v30  ;;  %v4235_v51 = vsel %vm9831_vm13, %v4217_v35, %v4219_v21 }
 0x735   : >> { %5834 = vrot.lane.b32.xlu1 %v9309_v15, %s7105_s17  ;;  %5832 = vrot.lane.b32.xlu0 %v9067_v62, %s7105_s17 }
 0x736   : >> { %4259 = vmatpush1.bf16.msra.mxu1 %v4235_v51  ;;  %5655 = vmatpush1.bf16.msra.mxu0 %v5631_v37  ;;  %v6880_v37 = vld [vmem:[%s8541_s13 + $0x70] sm:$0xff] }
 0x737   : >> { %v4227_v9 = vpop.permute.xlu1 %4226  ;;  %v4225_v41 = vpop.permute.xlu0 %4224 }
 0x738   : >> { %v4238_v17 = vsel %vm9838_vm14, %v4225_v41, %v4227_v9  ;;  %vm9840_vm14 = vcmask 80896  }
 0x739   : >> { %5830 = vrot.lane.b32.xlu1 %v9079_v16, %s7105_s17  ;;  %4434 = vrot.lane.b32.xlu0 %v9220_v5, %s7104_s14 }
 0x73a   : >> { %4260 = vmatprep.subr.bf16.mxu1 %v4238_v17 }
 0x73b   : >> { %v5623_v4 = vpop.permute.xlu1 %5622  ;;  %v5621_v56 = vpop.permute.xlu0 %5620 }
 0x73c   : >> { %v5634_v32 = vsel %vm9839_vm15, %v5621_v56, %v5623_v4  ;;  %vm9841_vm15 = vcmask 850944  }
 0x73d   : >> { %4444 = vrot.lane.b32.xlu1 %v9074_v49, %s7104_s14  ;;  %4442 = vrot.lane.b32.xlu0 %v9085_v25, %s7104_s14 }
 0x73e   : >> { %5656 = vmatprep.subr.bf16.mxu0 %v5634_v32 }
 0x73f   : >> { %v5619_v62 = vpop.permute.xlu1 %5618  ;;  %v4223_v6 = vpop.permute.xlu0 %4222 }
 0x740   : >> { %v5633_v60 = vsel %vm9830_vm12, %v5619_v62, %v5621_v56  ;;  %v4237_v16 = vsel %vm9831_vm13, %v4223_v6, %v4225_v41  ;;  %vm9842_vm12 = vmmov %vm9841_vm15  ;;  %v6882_v6 = vld [vmem:[%s8541_s13 + $0x90] sm:$0xff] }
 0x741   : >> { %5840 = vrot.lane.b32.xlu1 %v9328_v54, %s7105_s17  ;;  %5838 = vrot.lane.b32.xlu0 %v9074_v49, %s7105_s17  ;;  %vm9843_vm13 = vmmov %vm9840_vm14 }
 0x742   : >> { %4261 = vmatpush1.bf16.msra.mxu1 %v4237_v16  ;;  %5657 = vmatpush1.bf16.msra.mxu0 %v5633_v60 }
 0x743   : >> { %v4312_v33 = vpop.permute.xlu1 %4311  ;;  %v4310_v39 = vpop.permute.xlu0 %4309 }
 0x744   : >> { %v4339_v34 = vsel %vm9840_vm14, %v4310_v39, %v4312_v33  ;;  %vm9844_vm14 = vmmov %vm9843_vm13 }
 0x745   : >> { %5836 = vrot.lane.b32.xlu1 %v9085_v25, %s7105_s17  ;;  %4440 = vrot.lane.b32.xlu0 %v9142_v18, %s7104_s14  ;;  %v6878_v25 = vld [vmem:[%s8541_s13 + $0x8] sm:$0xff]  ;;  %s6089_s17 = sshll.u32 (%p3285_p12), %s7341_s29, 4  ;;  %s9670_s17 = int_to_ptr.vmem [resolvable:$true] %s6089_s17 }
 0x746   : >> { %4361 = vmatprep.subr.bf16.mxu1 %v4339_v34  ;;  %6329 = vmatmul.mubr.msk.bf16.vlgmr.msra.gmra.mrb[0].mxu1 %vm488_vm6, %v6846_v26  ;;  %v6849_v34 = vld [vmem:[#allocation8 + $0x178] sm:$0xff]  }
 0x747   : >> { %v5708_v49 = vpop.permute.xlu1 %5707  ;;  %v5706_v38 = vpop.permute.xlu0 %5705  ;;  %6355 = vmatmul.mubr.msk.bf16.vlgmr.msra.gmra.mrb[0].mxu0 %vm488_vm6, %v6847_v22  ;;  %4393 = vmatprep.mubr.bf16.mxu1 %v7084_v42 }
 0x748   : >> { %v5735_v10 = vsel %vm9841_vm15, %v5706_v38, %v5708_v49  ;;  %5789 = vmatprep.mubr.bf16.mxu0 %v7084_v42  ;;  %vm9845_vm15 = vmmov %vm9842_vm12 }
 0x749   : >> { %4529 = vrot.lane.b32.xlu1 %v6877_v40, %s7106_s30  ;;  %4527 = vrot.lane.b32.xlu0 %v6878_v25, %s7106_s30 }
 0x74a   : >> { %5757 = vmatprep.subr.bf16.mxu0 %v5735_v10 }
 0x74b   : >> { %v5704_v18 = vpop.permute.xlu1 %5703  ;;  %v4308_v63 = vpop.permute.xlu0 %4307 }
 0x74c   : >> { %v5734_v50 = vsel %vm9842_vm12, %v5704_v18, %v5706_v38  ;;  %v4338_v53 = vsel %vm9843_vm13, %v4308_v63, %v4310_v39  ;;  %v6884_v38 = vld [vmem:[%s8541_s13 + $0x80] sm:$0xff] }
 0x74d   : >> { %5925 = vrot.lane.b32.xlu1 %v9250_v43, %s7107_s26  ;;  %5923 = vrot.lane.b32.xlu0 %v6877_v40, %s7107_s26 }
 0x74e   : >> { %4362 = vmatpush1.bf16.msra.mxu1 %v4338_v53  ;;  %5758 = vmatpush1.bf16.msra.mxu0 %v5734_v50 }
 0x74f   : >> { %v4318_v44 = vpop.permute.xlu1 %4317  ;;  %v4316_v23 = vpop.permute.xlu0 %4315 }
 0x750   : >> { %v4341_v45 = vsel %vm9844_vm14, %v4316_v23, %v4318_v44  ;;  %vm9846_vm14 = vmmov %vm9843_vm13 }
 0x751   : >> { %5921 = vrot.lane.b32.xlu1 %v6878_v25, %s7107_s26  ;;  %4525 = vrot.lane.b32.xlu0 %v9161_v13, %s7106_s30  ;;  %v6363_v25 = vld [vmem:[%s9716_s2 + $0x18] sm:$0xff] }
 0x752   : >> { %4363 = vmatprep.subr.bf16.mxu1 %v4341_v45 }
 0x753   : >> { %v5714_v47 = vpop.permute.xlu1 %5713  ;;  %v5712_v28 = vpop.permute.xlu0 %5711 }
 0x754   : >> { %v5737_v61 = vsel %vm9845_vm15, %v5712_v28, %v5714_v47  ;;  %vm9847_vm15 = vmmov %vm9842_vm12 }
 0x755   : >> { %4535 = vrot.lane.b32.xlu1 %v6879_v27, %s7106_s30  ;;  %4533 = vrot.lane.b32.xlu0 %v9456_v46, %s7106_s30 }
 0x756   : >> { %5759 = vmatprep.subr.bf16.mxu0 %v5737_v61 }
 0x757   : >> { %v5710_v43 = vpop.permute.xlu1 %5709  ;;  %v4314_v58 = vpop.permute.xlu0 %4313 }
 0x758   : >> { %v5736_v11 = vsel %vm9842_vm12, %v5710_v43, %v5712_v28  ;;  %v4340_v20 = vsel %vm9843_vm13, %v4314_v58, %v4316_v23 }
 0x759   : >> { %5931 = vrot.lane.b32.xlu1 %v9269_v31, %s7107_s26  ;;  %5929 = vrot.lane.b32.xlu0 %v6879_v27, %s7107_s26 }
 0x75a   : >> { %4364 = vmatpush1.bf16.msra.mxu1 %v4340_v20  ;;  %5760 = vmatpush1.bf16.msra.mxu0 %v5736_v11 }
 0x75b   : >> { %v4324_v13 = vpop.permute.xlu1 %4323  ;;  %v4322_v52 = vpop.permute.xlu0 %4321 }
 0x75c   : >> { %v4343_v55 = vsel %vm9846_vm14, %v4322_v52, %v4324_v13  ;;  %vm9848_vm14 = vmmov %vm9843_vm13 }
 0x75d   : >> { %5927 = vrot.lane.b32.xlu1 %v9456_v46, %s7107_s26  ;;  %4531 = vrot.lane.b32.xlu0 %v9180_v8, %s7106_s30 }
 0x75e   : >> { %4365 = vmatprep.subr.bf16.mxu1 %v4343_v55 }
 0x75f   : >> { %v5720_v19 = vpop.permute.xlu1 %5719  ;;  %v5718_v14 = vpop.permute.xlu0 %5717 }
 0x760   : >> { %v5739_v21 = vsel %vm9847_vm15, %v5718_v14, %v5720_v19  ;;  %vm9849_vm15 = vmmov %vm9842_vm12 }
 0x761   : >> { %4541 = vrot.lane.b32.xlu1 %v9464_v59, %s7106_s30  ;;  %4539 = vrot.lane.b32.xlu0 %v9469_v24, %s7106_s30 }
 0x762   : >> { %5761 = vmatprep.subr.bf16.mxu0 %v5739_v21 }
 0x763   : >> { %v5716_v31 = vpop.permute.xlu1 %5715  ;;  %v4320_v12 = vpop.permute.xlu0 %4319 }
 0x764   : >> { %v5738_v46 = vsel %vm9842_vm12, %v5716_v31, %v5718_v14  ;;  %v4342_v29 = vsel %vm9843_vm13, %v4320_v12, %v4322_v52 }
 0x765   : >> { %5937 = vrot.lane.b32.xlu1 %v9290_v57, %s7107_s26  ;;  %5935 = vrot.lane.b32.xlu0 %v9464_v59, %s7107_s26  ;;  %v6881_v59 = vld [vmem:[%s8541_s13 + $0x68] sm:$0xff] }
 0x766   : >> { %4366 = vmatpush1.bf16.msra.mxu1 %v4342_v29  ;;  %5762 = vmatpush1.bf16.msra.mxu0 %v5738_v46 }
 0x767   : >> { %v4330_v8 = vpop.permute.xlu1 %4329  ;;  %v4328_v30 = vpop.permute.xlu0 %4327 }
 0x768   : >> { %v4345_v36 = vsel %vm9848_vm14, %v4328_v30, %v4330_v8  ;;  %vm9850_vm14 = vmmov %vm9843_vm13 }
 0x769   : >> { %5933 = vrot.lane.b32.xlu1 %v9469_v24, %s7107_s26  ;;  %4537 = vrot.lane.b32.xlu0 %v9201_v48, %s7106_s30 }
 0x76a   : >> { %4367 = vmatprep.subr.bf16.mxu1 %v4345_v36 }
 0x76b   : >> { %v5726_v7 = vpop.permute.xlu1 %5725  ;;  %v5724_v35 = vpop.permute.xlu0 %5723 }
 0x76c   : >> { %v5741_v57 = vsel %vm9849_vm15, %v5724_v35, %v5726_v7  ;;  %vm9851_vm15 = vmmov %vm9842_vm12 }
 0x76d   : >> { %4547 = vrot.lane.b32.xlu1 %v6880_v37, %s7106_s30  ;;  %4545 = vrot.lane.b32.xlu0 %v6881_v59, %s7106_s30 }
 0x76e   : >> { %5763 = vmatprep.subr.bf16.mxu0 %v5741_v57 }
 0x76f   : >> { %v5722_v51 = vpop.permute.xlu1 %5721  ;;  %v4326_v9 = vpop.permute.xlu0 %4325 }
 0x770   : >> { %v5740_v24 = vsel %vm9842_vm12, %v5722_v51, %v5724_v35  ;;  %v4344_v41 = vsel %vm9843_vm13, %v4326_v9, %v4328_v30 }
 0x771   : >> { %5943 = vrot.lane.b32.xlu1 %v9309_v15, %s7107_s26  ;;  %5941 = vrot.lane.b32.xlu0 %v6880_v37, %s7107_s26  ;;  %v6883_v15 = vld [vmem:[%s8541_s13 + $0x88] sm:$0xff]  ;;  %s6072_s13 = scalar_lea.vmem %s7341_s29, %s6309_s12 [#allocation11]  ;;  %s6381_s12 = sshll.u32 (%p3285_p12), %s7162_s22, 11 }
 0x772   : >> { %4368 = vmatpush1.bf16.msra.mxu1 %v4344_v41  ;;  %5764 = vmatpush1.bf16.msra.mxu0 %v5740_v24  ;;  %s9667_s14 = scalar_lea.hbm (%p3285_p12), %s9719_s5, %s6381_s12 }
 0x773   : >> { %v4336_v48 = vpop.permute.xlu1 %4335  ;;  %v4334_v17 = vpop.permute.xlu0 %4333 }
 0x774   : >> { %v4347_v4 = vsel %vm9850_vm14, %v4334_v17, %v4336_v48  ;;  %vm9852_vm14 = vcmask 15360  }
 0x775   : >> { %5939 = vrot.lane.b32.xlu1 %v6881_v59, %s7107_s26  ;;  %4543 = vrot.lane.b32.xlu0 %v9220_v5, %s7106_s30  ;;  %v6848_v5 = vld [vmem:[#allocation8 + $0x110] sm:$0xff]  }
 0x776   : >> { %4369 = vmatprep.subr.bf16.mxu1 %v4347_v4 }
 0x777   : >> { %v5732_v56 = vpop.permute.xlu1 %5731  ;;  %v5730_v32 = vpop.permute.xlu0 %5729 }
 0x778   : >> { %v5743_v62 = vsel %vm9851_vm15, %v5730_v32, %v5732_v56  ;;  %vm9853_vm15 = vcmask 842752  }
 0x779   : >> { %4553 = vrot.lane.b32.xlu1 %v6882_v6, %s7106_s30  ;;  %4551 = vrot.lane.b32.xlu0 %v6883_v15, %s7106_s30 }
 0x77a   : >> { %5765 = vmatprep.subr.bf16.mxu0 %v5743_v62 }
 0x77b   : >> { %v5728_v60 = vpop.permute.xlu1 %5727  ;;  %v4332_v16 = vpop.permute.xlu0 %4331 }
 0x77c   : >> { %v5742_v26 = vsel %vm9842_vm12, %v5728_v60, %v5730_v32  ;;  %v4346_v33 = vsel %vm9843_vm13, %v4332_v16, %v4334_v17  ;;  %vm9854_vm12 = vmmov %vm9853_vm15  ;;  %v6850_v60 = vld [vmem:[#allocation8 + $0x118] sm:$0xff]   ;;  %v6851_v16 = vld [vmem:[#allocation8 + $0x180] sm:$0xff]  }
 0x77d   : >> { %5949 = vrot.lane.b32.xlu1 %v9328_v54, %s7107_s26  ;;  %5947 = vrot.lane.b32.xlu0 %v6882_v6, %s7107_s26  ;;  %v6362_v54 = vld [vmem:[%s9716_s2 + $0x10] sm:$0xff]  ;;  %vm9855_vm13 = vmmov %vm9852_vm14 }
 0x77e   : >> { %4370 = vmatpush1.bf16.msra.mxu1 %v4346_v33  ;;  %5766 = vmatpush1.bf16.msra.mxu0 %v5742_v26  ;;  %vm9858_vm4 = vmmov %vm9854_vm12 }
 0x77f   : >> { %v4421_v39 = vpop.permute.xlu1 %4420  ;;  %v4419_v22 = vpop.permute.xlu0 %4418  ;;  %vm9859_vm5 = vmmov %vm9855_vm13 }
 0x780   : >> { %v4448_v49 = vsel %vm9852_vm14, %v4419_v22, %v4421_v39  ;;  %vm9856_vm14 = vmmov %vm9855_vm13 }
 0x781   : >> { %5945 = vrot.lane.b32.xlu1 %v6883_v15, %s7107_s26  ;;  %4549 = vrot.lane.b32.xlu0 %v6884_v38, %s7106_s30  ;;  %s6076_s30 = scalar_lea.sflag (%p3285_p12), [#allocation6], %s7294_s8  ;;  %s6958_s26 = scalar_lea.vmem (%p3285_p12), %s9670_s17, 2048 }
 0x782   : >> { %4470 = vmatprep.subr.bf16.mxu1 %v4448_v49  ;;  %6331 = vmatmul.mubr.msk.bf16.vlgmr.msra.gmra.mrb[0].mxu1 %vm488_vm6, %v6848_v5  ;;  %p6959_p10 = scmp.ne.s32.totalorder (%p3285_p12), %s9670_s17, %s6958_s26 }
 0x783   : >> { %v5817_v10 = vpop.permute.xlu1 %5816  ;;  %v5815_v40 = vpop.permute.xlu0 %5814  ;;  %6357 = vmatmul.mubr.msk.bf16.vlgmr.msra.gmra.mrb[0].mxu0 %vm488_vm6, %v6849_v34  ;;  %4502 = vmatprep.mubr.bf16.mxu1 %v7084_v42 }
 0x784   : >> { %v5844_v18 = vsel %vm9853_vm15, %v5815_v40, %v5817_v10  ;;  %5898 = vmatprep.mubr.bf16.mxu0 %v7084_v42  ;;  %vm9857_vm15 = vmmov %vm9854_vm12  ;;  %p6960_p1 = pnand (%p3285_p12), %p6959_p10, %p7242_p7 }
 0x785   : >> { %5866 = vmatprep.subr.bf16.mxu0 %v5844_v18  ;;  %6027 = vperm.xlu0 %6827, %v6362_v54  }
 0x786   : >> { %6032 = vperm.xlu1 %6828, %v6363_v25   ;;  %p6961_p6 = pneg (%p3285_p12), %p6960_p1 }
 0x787   : >> { %v5813_v63 = vpop.permute.xlu1 %5812  ;;  %v4417_v50 = vpop.permute.xlu0 %4416 }
 0x788   : >> { %v5843_v53 = vsel %vm9854_vm12, %v5813_v63, %v5815_v40  ;;  %v4447_v44 = vsel %vm9855_vm13, %v4417_v50, %v4419_v22  ;;  %vm9860_vm12 = vmmov %vm9859_vm5 }
 0x789   : >> { %4471 = vmatpush1.bf16.msra.mxu1 %v4447_v44  ;;  %5867 = vmatpush1.bf16.msra.mxu0 %v5843_v53  ;;  %vm9861_vm13 = vmmov %vm9858_vm4 }
 0x78b   : >> { %v4427_v23 = vpop.permute.xlu1 %4426  ;;  %v4425_v45 = vpop.permute.xlu0 %4424 }
 0x78c   : >> { %v4450_v47 = vsel %vm9856_vm14, %v4425_v45, %v4427_v23  ;;  %vm9862_vm14 = vmmov %vm9858_vm4 }
 0x78d   : >> { %4472 = vmatprep.subr.bf16.mxu1 %v4450_v47 }
 0x78f   : >> { %v5823_v28 = vpop.permute.xlu1 %5822  ;;  %v5821_v61 = vpop.permute.xlu0 %5820 }
 0x790   : >> { %v5846_v27 = vsel %vm9857_vm15, %v5821_v61, %v5823_v28  ;;  %vm9863_vm15 = vmmov %vm9859_vm5 }
 0x791   : >> { %5868 = vmatprep.subr.bf16.mxu0 %v5846_v27 }
 0x793   : >> { %v5819_v43 = vpop.permute.xlu1 %5818  ;;  %v4423_v58 = vpop.permute.xlu0 %4422 }
 0x794   : >> { %v5845_v11 = vsel %vm9858_vm4, %v5819_v43, %v5821_v61  ;;  %v4449_v20 = vsel %vm9859_vm5, %v4423_v58, %v4425_v45  ;;  %vm9864_vm4 = vmmov %vm9859_vm5 }
 0x795   : >> { %4473 = vmatpush1.bf16.msra.mxu1 %v4449_v20  ;;  %5869 = vmatpush1.bf16.msra.mxu0 %v5845_v11  ;;  %vm9865_vm5 = vmmov %vm9861_vm13 }
 0x797   : >> { %v4433_v13 = vpop.permute.xlu1 %4432  ;;  %v4431_v52 = vpop.permute.xlu0 %4430 }
 0x798   : >> { %v4452_v55 = vsel %vm9860_vm12, %v4431_v52, %v4433_v13  ;;  %vm9866_vm12 = vmmov %vm9865_vm5 }
 0x799   : >> { %4474 = vmatprep.subr.bf16.mxu1 %v4452_v55 }
 0x79b   : >> { %v5829_v19 = vpop.permute.xlu1 %5828  ;;  %v5827_v14 = vpop.permute.xlu0 %5826 }
 0x79c   : >> { %v5848_v21 = vsel %vm9861_vm13, %v5827_v14, %v5829_v19  ;;  %vm9867_vm13 = vmmov %vm9864_vm4 }
 0x79d   : >> { %5870 = vmatprep.subr.bf16.mxu0 %v5848_v21 }
 0x79f   : >> { %v5825_v31 = vpop.permute.xlu1 %5824  ;;  %v4429_v12 = vpop.permute.xlu0 %4428 }
 0x7a0   : >> { %v5847_v46 = vsel %vm9862_vm14, %v5825_v31, %v5827_v14  ;;  %v4451_v29 = vsel %vm9863_vm15, %v4429_v12, %v4431_v52  ;;  %vm9868_vm14 = vmmov %vm9864_vm4 }
 0x7a1   : >> { %4475 = vmatpush1.bf16.msra.mxu1 %v4451_v29  ;;  %5871 = vmatpush1.bf16.msra.mxu0 %v5847_v46  ;;  %vm9869_vm15 = vmmov %vm9865_vm5 }
 0x7a3   : >> { %v4439_v8 = vpop.permute.xlu1 %4438  ;;  %v4437_v30 = vpop.permute.xlu0 %4436 }
 0x7a4   : >> { %v4454_v36 = vsel %vm9864_vm4, %v4437_v30, %v4439_v8  ;;  %vm9870_vm4 = vmmov %vm9865_vm5 }
 0x7a5   : >> { %4476 = vmatprep.subr.bf16.mxu1 %v4454_v36 }
 0x7a7   : >> { %v5835_v7 = vpop.permute.xlu1 %5834  ;;  %v5833_v35 = vpop.permute.xlu0 %5832 }
 0x7a8   : >> { %v5850_v57 = vsel %vm9865_vm5, %v5833_v35, %v5835_v7  ;;  %vm9871_vm5 = vmmov %vm9867_vm13 }
 0x7a9   : >> { %5872 = vmatprep.subr.bf16.mxu0 %v5850_v57 }
 0x7ab   : >> { %v5831_v37 = vpop.permute.xlu1 %5830  ;;  %v4435_v59 = vpop.permute.xlu0 %4434 }
 0x7ac   : >> { %v5849_v51 = vsel %vm9866_vm12, %v5831_v37, %v5833_v35  ;;  %v4453_v9 = vsel %vm9867_vm13, %v4435_v59, %v4437_v30  ;;  %vm9872_vm12 = vcmask 7168   ;;  %vm9873_vm13 = vcmask 834560  }
 0x7ad   : >> { %4477 = vmatpush1.bf16.msra.mxu1 %v4453_v9  ;;  %5873 = vmatpush1.bf16.msra.mxu0 %v5849_v51 }
 0x7af   : >> { %v4445_v24 = vpop.permute.xlu1 %4444  ;;  %v4443_v41 = vpop.permute.xlu0 %4442 }
 0x7b0   : >> { %v4456_v48 = vsel %vm9868_vm14, %v4443_v41, %v4445_v24  ;;  %vm9874_vm14 = vmmov %vm9873_vm13 }
 0x7b1   : >> { %4478 = vmatprep.subr.bf16.mxu1 %v4456_v48  ;;  %v6852_v48 = vld [vmem:[#allocation8 + $0x120] sm:$0xff]  }
 0x7b3   : >> { %v5841_v17 = vpop.permute.xlu1 %5840  ;;  %v5839_v4 = vpop.permute.xlu0 %5838 }
 0x7b4   : >> { %v5852_v56 = vsel %vm9869_vm15, %v5839_v4, %v5841_v17  ;;  %vm9875_vm15 = vmmov %vm9872_vm12  ;;  %v6853_v17 = vld [vmem:[#allocation8 + $0x188] sm:$0xff]  }
 0x7b5   : >> { %5874 = vmatprep.subr.bf16.mxu0 %v5852_v56 }
 0x7b7   : >> { %v5837_v32 = vpop.permute.xlu1 %5836  ;;  %v4441_v62 = vpop.permute.xlu0 %4440 }
 0x7b8   : >> { %v5851_v6 = vsel %vm9870_vm4, %v5837_v32, %v5839_v4  ;;  %v4455_v15 = vsel %vm9871_vm5, %v4441_v62, %v4443_v41  ;;  %vm9876_vm4 = vmmov %vm9872_vm12 }
 0x7b9   : >> { %4479 = vmatpush1.bf16.msra.mxu1 %v4455_v15  ;;  %5875 = vmatpush1.bf16.msra.mxu0 %v5851_v6  ;;  %vm9877_vm5 = vmmov %vm9873_vm13 }
 0x7bb   : >> { %v4530_v26 = vpop.permute.xlu1 %4529  ;;  %v4528_v33 = vpop.permute.xlu0 %4527 }
 0x7bc   : >> { %v4557_v5 = vsel %vm9872_vm12, %v4528_v33, %v4530_v26  ;;  %6333 = vmatmul.mubr.msk.bf16.vlgmr.msra.gmra.mrb[0].mxu1 %vm488_vm6, %v6850_v60  ;;  %6359 = vmatmul.mubr.msk.bf16.vlgmr.msra.gmra.mrb[0].mxu0 %vm488_vm6, %v6851_v16  ;;  %vm9878_vm12 = vmmov %vm9877_vm5 }
 0x7bd   : >> { %4579 = vmatprep.subr.bf16.mxu1 %v4557_v5  ;;  %4611 = vmatprep.mubr.bf16.mxu1 %v7084_v42  ;;  %v6043_v5 = vstv %s8531_s27  ;;  %s7108_s27 = smov (%p3285_p12), [#allocation11]  }
 0x7be   : >> { %6007 = vmatprep.mubr.bf16.mxu0 %v7084_v42  ;;  %s6962_s11 = sshll.u32 (%p3285_p12), %s7108_s27, 4  ;;  %s6963_s11 = int_to_ptr.vmem [resolvable:$false] %s6962_s11 }
 0x7bf   : >> { %v5926_v39 = vpop.permute.xlu1 %5925  ;;  %v5924_v22 = vpop.permute.xlu0 %5923  ;;  %s6964_s22 = scalar_lea.vmem (%p3285_p12), %s6963_s11, 4096  ;;  %p6965_p8 = scmp.lt.s32.totalorder (%p3285_p12), %s9670_s17, %s6963_s11 }
 0x7c0   : >> { %v5953_v34 = vsel %vm9873_vm13, %v5924_v22, %v5926_v39  ;;  %vm9879_vm13 = vmmov %vm9876_vm4  ;;  %p6966_p13 = scmp.lt.s32.totalorder (%p3285_p12), %s6964_s22, %s6958_s26 }
 0x7c1   : >> { %5975 = vmatprep.subr.bf16.mxu0 %v5953_v34 }
 0x7c2   : > { %p6967_p2 = por (%p3285_p12), %p6966_p13, %p6965_p8 }
 0x7c3   : >> { %v5922_v49 = vpop.permute.xlu1 %5921  ;;  %v4526_v38 = vpop.permute.xlu0 %4525 }
 0x7c4   : >> { %v5952_v54 = vsel %vm9874_vm14, %v5922_v49, %v5924_v22  ;;  %v4556_v10 = vsel %vm9875_vm15, %v4526_v38, %v4528_v33  ;;  %vm9880_vm14 = vmmov %vm9876_vm4  ;;  %p6968_p4 = pnand (%p3285_p12), %p6967_p2, %p6961_p6 }
 0x7c5   : >> { %4580 = vmatpush1.bf16.msra.mxu1 %v4556_v10  ;;  %5976 = vmatpush1.bf16.msra.mxu0 %v5952_v54  ;;  %vm9881_vm15 = vmmov %vm9877_vm5 }
 0x7c7   : >> { %v4536_v40 = vpop.permute.xlu1 %4535  ;;  %v4534_v25 = vpop.permute.xlu0 %4533 }
 0x7c8   : >> { %v4559_v18 = vsel %vm9876_vm4, %v4534_v25, %v4536_v40  ;;  %vm9882_vm4 = vmmov %vm9877_vm5 }
 0x7c9   : >> { %4581 = vmatprep.subr.bf16.mxu1 %v4559_v18 }
 0x7cb   : >> { %v5932_v63 = vpop.permute.xlu1 %5931  ;;  %v5930_v42 = vpop.permute.xlu0 %5929 }
 0x7cc   : >> { %v5955_v50 = vsel %vm9877_vm5, %v5930_v42, %v5932_v63  ;;  %vm9883_vm5 = vmmov %vm9879_vm13 }
 0x7cd   : >> { %5977 = vmatprep.subr.bf16.mxu0 %v5955_v50 }
 0x7cf   : >> { %v5928_v53 = vpop.permute.xlu1 %5927  ;;  %v4532_v44 = vpop.permute.xlu0 %4531 }
 0x7d0   : >> { %v5954_v23 = vsel %vm9878_vm12, %v5928_v53, %v5930_v42  ;;  %v4558_v45 = vsel %vm9879_vm13, %v4532_v44, %v4534_v25  ;;  %vm9884_vm12 = vmmov %vm9883_vm5 }
 0x7d1   : >> { %4582 = vmatpush1.bf16.msra.mxu1 %v4558_v45  ;;  %5978 = vmatpush1.bf16.msra.mxu0 %v5954_v23  ;;  %vm9885_vm13 = vmmov %vm9882_vm4 }
 0x7d3   : >> { %v4542_v47 = vpop.permute.xlu1 %4541  ;;  %v4540_v28 = vpop.permute.xlu0 %4539 }
 0x7d4   : >> { %v4561_v61 = vsel %vm9880_vm14, %v4540_v28, %v4542_v47  ;;  %vm9886_vm14 = vmmov %vm9882_vm4 }
 0x7d5   : >> { %4583 = vmatprep.subr.bf16.mxu1 %v4561_v61 }
 0x7d7   : >> { %v5938_v27 = vpop.permute.xlu1 %5937  ;;  %v5936_v43 = vpop.permute.xlu0 %5935 }
 0x7d8   : >> { %v5957_v58 = vsel %vm9881_vm15, %v5936_v43, %v5938_v27  ;;  %vm9887_vm15 = vmmov %vm9883_vm5 }
 0x7d9   : >> { %5979 = vmatprep.subr.bf16.mxu0 %v5957_v58 }
 0x7db   : >> { %v5934_v11 = vpop.permute.xlu1 %5933  ;;  %v4538_v20 = vpop.permute.xlu0 %4537 }
 0x7dc   : >> { %v5956_v13 = vsel %vm9882_vm4, %v5934_v11, %v5936_v43  ;;  %v4560_v52 = vsel %vm9883_vm5, %v4538_v20, %v4540_v28  ;;  %vm9888_vm4 = vmmov %vm9883_vm5 }
 0x7dd   : >> { %4584 = vmatpush1.bf16.msra.mxu1 %v4560_v52  ;;  %5980 = vmatpush1.bf16.msra.mxu0 %v5956_v13  ;;  %vm9889_vm5 = vmmov %vm9885_vm13 }
 0x7df   : >> { %v4548_v55 = vpop.permute.xlu1 %4547  ;;  %v4546_v19 = vpop.permute.xlu0 %4545 }
 0x7e0   : >> { %v4563_v14 = vsel %vm9884_vm12, %v4546_v19, %v4548_v55  ;;  %vm9890_vm12 = vmmov %vm9889_vm5 }
 0x7e1   : >> { %4585 = vmatprep.subr.bf16.mxu1 %v4563_v14 }
 0x7e3   : >> { %v5944_v21 = vpop.permute.xlu1 %5943  ;;  %v5942_v31 = vpop.permute.xlu0 %5941 }
 0x7e4   : >> { %v5959_v12 = vsel %vm9885_vm13, %v5942_v31, %v5944_v21  ;;  %vm9891_vm13 = vmmov %vm9888_vm4 }
 0x7e5   : >> { %5981 = vmatprep.subr.bf16.mxu0 %v5959_v12 }
 0x7e7   : >> { %v5940_v46 = vpop.permute.xlu1 %5939  ;;  %v4544_v29 = vpop.permute.xlu0 %4543 }
 0x7e8   : >> { %v5958_v8 = vsel %vm9886_vm14, %v5940_v46, %v5942_v31  ;;  %v4562_v30 = vsel %vm9887_vm15, %v4544_v29, %v4546_v19 }
 0x7e9   : >> { %4586 = vmatpush1.bf16.msra.mxu1 %v4562_v30  ;;  %5982 = vmatpush1.bf16.msra.mxu0 %v5958_v8 }
 0x7eb   : >> { %v4554_v36 = vpop.permute.xlu1 %4553  ;;  %v4552_v7 = vpop.permute.xlu0 %4551 }
 0x7ec   : >> { %v4565_v35 = vsel %vm9888_vm4, %v4552_v7, %v4554_v36 }
 0x7ed   : >> { %4587 = vmatprep.subr.bf16.mxu1 %v4565_v35 }
 0x7ef   : >> { %v5950_v57 = vpop.permute.xlu1 %5949  ;;  %v5948_v37 = vpop.permute.xlu0 %5947 }
 0x7f0   : >> { %v5961_v59 = vsel %vm9889_vm5, %v5948_v37, %v5950_v57 }
 0x7f1   : >> { %5983 = vmatprep.subr.bf16.mxu0 %v5961_v59 }
 0x7f3   : >> { %v5946_v51 = vpop.permute.xlu1 %5945  ;;  %v4550_v9 = vpop.permute.xlu0 %4549 }
 0x7f4   : >> { %v5960_v24 = vsel %vm9890_vm12, %v5946_v51, %v5948_v37  ;;  %v4564_v41 = vsel %vm9891_vm13, %v4550_v9, %v4552_v7 }
 0x7f5   : >> { %4588 = vmatpush1.bf16.msra.mxu1 %v4564_v41  ;;  %5984 = vmatpush1.bf16.msra.mxu0 %v5960_v24 }
 0x7f8   : >> { %6335 = vmatmul.mubr.msk.bf16.vlgmr.msra.gmra.mrb[0].mxu1 %vm488_vm6, %v6852_v48  ;;  %6361 = vmatmul.mubr.msk.bf16.vlgmr.msra.gmra.mrb[0].mxu0 %vm488_vm6, %v6853_v17 }
 0x804   : >> { %v6028_v4 = vpop.permute.xlu0 %6027 }
 0x805   : >> { %v6033_v56 = vpop.permute.xlu1 %6032 }
 0x8cb   : >> { %v4613_v32 = vpop.f32.mrb[0].mxu1  ;;  %v6009_v62 = vpop.f32.mrb[0].mxu0 }
 0x8cc   : >> { %v6478_v6 = vadd.f32 %v6009_v62, %v4613_v32  ;;  %v4615_v15 = vpop.f32.mrb[1].mxu1  ;;  %v6011_v60 = vpop.f32.mrb[1].mxu0 }
 0x8cd   : >> { %v6479_v16 = vadd.f32 %v6011_v60, %v4615_v15  ;;  %v4617_v26 = vpop.f32.mrb[2].mxu1  ;;  %v6013_v33 = vpop.f32.mrb[2].mxu0 }
 0x8ce   : >> { %v6480_v39 = vadd.f32 %v6013_v33, %v4617_v26  ;;  %v6035_v22 = vadd.f32 %v6478_v6, %v6028_v4  ;;  %v4619_v34 = vpop.f32.mrb[3].mxu1  ;;  %v6015_v49 = vpop.f32.mrb[3].mxu0 }
 0x8cf   : >> { %v6036_v38 = vadd.f32 %v6479_v16, %v6028_v4  ;;  %v6481_v54 = vadd.f32 %v6015_v49, %v4619_v34 }
 0x8d0   : >> { %vm6039_vm14 = vcmp.gt.f32.partialorder %v6035_v22, 0.0  ;;  %v6044_v10 = vmul.f32 %v6043_v5, %v6035_v22  ;;  %v6037_v40 = vadd.f32 %v6480_v39, %v6033_v56 }
 0x8d1   : >> { %vm6040_vm15 = vcmp.gt.f32.partialorder %v6036_v38, 0.0  ;;  %v6045_v25 = vmul.f32 %v6043_v5, %v6036_v38  ;;  %v6038_v18 = vadd.f32 %v6481_v54, %v6033_v56 }
 0x8d2   : >> { %v6048_v63 = vsel %vm6039_vm14, %v6035_v22, %v6044_v10  ;;  %vm6041_vm4 = vcmp.gt.f32.partialorder %v6037_v40, 0.0  ;;  %v6046_v42 = vmul.f32 %v6043_v5, %v6037_v40 }
 0x8d3   : >> { %v6049_v50 = vsel %vm6040_vm15, %v6036_v38, %v6045_v25  ;;  %v6052_v53 = vsel %vm277_vm0, %v6048_v63, 0.0  ;;  %vm6042_vm5 = vcmp.gt.f32.partialorder %v6038_v18, 0.0  ;;  %v6047_v44 = vmul.f32 %v6043_v5, %v6038_v18  ;;  %3287 = sbr.rel (!%p3285_p12) target bundleno = 1198 (0x4ae), region = 173 }
 0x8d4   : >> { %v6053_v23 = vsel %vm278_vm1, %v6049_v50, 0.0  ;;  %v6050_v45 = vsel %vm6041_vm4, %v6037_v40, %v6046_v42 }
 0x8d5   : >> { %v6378_v47 = vpack.c.bf16 %v6053_v23, %v6052_v53  ;;  %v6051_v28 = vsel %vm6042_vm5, %v6038_v18, %v6047_v44  ;;  %v6054_v61 = vsel %vm279_vm2, %v6050_v45, 0.0 }
 0x8d6   : >> { %v6055_v27 = vsel %vm280_vm3, %v6051_v28, 0.0 }
 0x8d7   : >> { %6073 = vst [vmem:[%s6072_s13] sm:$0xff] %v6378_v47  ;;  %v6379_v43 = vpack.c.bf16 %v6055_v27, %v6054_v61 }
 0x8d9   : >> { %6074 = vst [vmem:[%s6072_s13 + $0x8] sm:$0xff] %v6379_v43 }
 0x8da   : > { %6971 = shalt.err (!%p6968_p4)
}
 0x8db   : > { %s6972_s29 = scalar_lea.hbm %s9667_s14, 2048  ;;  %s6976_s23 = scalar_lea.hbm %s9719_s5, 4096 }
 0x8dc   : > { %p6973_p11 = scmp.ne.s32.totalorder %s9667_s14, %s6972_s29  ;;  %p6977_p5 = scmp.lt.u32.totalorder %s9667_s14, %s9719_s5 }
 0x8dd   : > { %p6978_p9 = scmp.lt.u32.totalorder %s6976_s23, %s6972_s29  ;;  %p6980_p10 = scmp.lt.u32.totalorder %s6972_s29, %s9667_s14 }
 0x8de   : > { %p6974_p0 = pnand %p6973_p11, %p7242_p7 }
 0x8df   : > { %p6979_p12 = por %p6978_p9, %p6977_p5 }
 0x8e0   : > { %p6975_p3 = pneg %p6974_p0 }
 0x8e1   : > { %p6981_p1 = por %p6980_p10, %p6979_p12 }
 0x8e3   : > { %p6982_p6 = pnand %p6981_p1, %p6975_p3 }
 0x8e5   : > { %6985 = shalt.err (!%p6982_p6)
}
 0x8e6   : > { %s7109_s12 = smov 128   ;;  %s7110_s15 = smov 8  }
 0x8e7   : > { %6587 = dma.vmem_to_hbm [thread:$0]  (%p7242_p7), %s9670_s17, 2048, %s9667_s14, %s6076_s30, %s7109_s12, %s7109_s12, %s7110_s15  }
 0x8e8 PF: > { %s6104_s6 = sand.u32 1, %s7028_s18   ;;  %p9892_p8 = scmp.ne.s32.totalorder %s9743_s25, 0 }
 0x8e9   : > { %p9893_p13 = scmp.ge.s32.totalorder %s7040_s21, 2  ;;  %s6105_s26 = scalar_lea.sflag [#allocation6], %s6104_s6 }
 0x8eb   : > { %p6601_p2 = pnand %p9893_p13, %p9892_p8 }
 0x8ed   : > { %7023 = dma.done.wait (!%p6601_p2), %s6105_s26, 2048  }
 0x8ee   : > { %7025 = vsyncadd (!%p6601_p2), %s6105_s26, 4294965248  ;;  %p20_p4 = scmp.ge.s32.totalorder %s7232_s28, 4   ;;  %s9894_s18 = smov %s7032_s19 }
 0x8ef   : > { %s9895_s19 = smov %s7036_s20  ;;  %s9896_s20 = smov %s7248_s10 }
 0x8f0   : > { %s9897_s21 = smov %s7232_s28  ;;  %22 = sbr.rel (!%p20_p4) target bundleno = 7 (0x7), region = 184 }
 0x8f7   :  { %6110 = vsyncpa [#allocation5], 1 }
 0x8f8   :  { %6112 = vsyncpa [#allocation5 + $0x1], 1 }
 0x8f9   :  { %6113 = vsyncpa [#allocation9], 1 }
 0x8fa   :  { %6114 = vsyncpa [#allocation6], 1 }
 0x8fb   :  { %6116 = vsyncpa [#allocation6 + $0x1], 1 }
 0x8fc   :  { %6117 = vsyncpa [#allocation7], 1 }
 0x8fd   :  { %6119 = vsyncpa [#allocation7 + $0x1], 1 }

</bundles_post_ra>
